<compile_context>
chip_gen: v7x
topology: tpu7x:2x2x1
jax: 0.10.0
libtpu: 0.0.40
codegen_flags: <defaults>
</compile_context>

<pallas_src>
import functools

import jax
import jax.numpy as jnp
from jax.experimental import pallas as pl
from jax.experimental.pallas import tpu as pltpu

EPS = 1e-5


@functools.lru_cache(maxsize=None)
def _vmem_limit_bytes():
    """Generation-aware scoped-VMEM limit (~65% of physical capacity)."""
    cap = 128 * 1024 * 1024  # v5e/v6e physical; conservative fallback
    try:
        cap = int(pltpu.get_tpu_info().vmem_capacity_bytes)
    except Exception:  # pragma: no cover - older runtimes / CPU tracing
        pass
    return int(cap * 0.65)


def _compiler_params(n_grid_axes):
    return pltpu.CompilerParams(
        dimension_semantics=("parallel",) * n_grid_axes,
        vmem_limit_bytes=_vmem_limit_bytes(),
    )


# --------------------------------------------------------------------------
# Kernels
# --------------------------------------------------------------------------
def _linear_stats_kernel(x_ref, w_ref, h_ref, stats_ref):
    """h = x @ W (bf16 operands, f32 accum), bf16 writeback + BN partial sums.

    Padded x rows are zero (and no bias is added), so their h rows are exactly
    zero and contribute nothing to the statistics — no mask needed here.
    """
    x = x_ref[...].astype(jnp.bfloat16)          # in-kernel cast, hides under MXU
    h = jnp.dot(x, w_ref[...], preferred_element_type=jnp.float32)
    h_ref[...] = h.astype(h_ref.dtype)           # bf16 intermediate to HBM
    # Single lane-dense (2, tile_d) store for the partial statistics.
    stats_ref[0] = jnp.concatenate(
        [jnp.sum(h, axis=0, keepdims=True),
         jnp.sum(h * h, axis=0, keepdims=True)], axis=0)


def _bn_relu_linear_stats_kernel(h_ref, sc_ref, sh_ref, w_ref, o_ref, stats_ref,
                                 *, tile_n, valid_rows, mask_rows):
    """Fused BN-apply (f32) -> ReLU -> bf16 matmul (f32 accum) -> partial stats."""
    a = jnp.maximum(h_ref[...].astype(jnp.float32) * sc_ref[...] + sh_ref[...],
                    0.0)
    h = jnp.dot(a.astype(jnp.bfloat16), w_ref[...],
                preferred_element_type=jnp.float32)
    o_ref[...] = h.astype(o_ref.dtype)
    if mask_rows:
        # Only the statistics must exclude zero-padded batch rows; the garbage
        # activation rows themselves are discarded after the last layer.  This
        # keeps the iota/compare/select off the MXU input dependency and sized
        # (tile_n, d_out) instead of (tile_n, d_in).
        rows = (pl.program_id(0) * tile_n
                + jax.lax.broadcasted_iota(jnp.int32, (tile_n, 1), 0))
        hm = jnp.where(rows < valid_rows, h, 0.0)
    else:
        hm = h
    stats_ref[0] = jnp.concatenate(
        [jnp.sum(hm, axis=0, keepdims=True),
         jnp.sum(hm * hm, axis=0, keepdims=True)], axis=0)


# --------------------------------------------------------------------------
# pallas_call wrappers
# --------------------------------------------------------------------------
def _linear_stats(x, w, tile_n, tile_d):
    n_pad, d_in = x.shape
    d_out = w.shape[1]
    tn = n_pad // tile_n
    td = d_out // tile_d
    # Weight block is grid-invariant when not column-tiled -> single buffer.
    w_spec = pl.BlockSpec((d_in, tile_d), lambda i, j: (0, j),
                          pipeline_mode=pl.Buffered(1) if td == 1 else None)
    return pl.pallas_call(
        _linear_stats_kernel,
        grid=(tn, td),
        in_specs=[
            pl.BlockSpec((tile_n, d_in), lambda i, j: (i, 0)),   # streamed x tile
            w_spec,                                              # resident weight
        ],
        out_specs=(
            pl.BlockSpec((tile_n, tile_d), lambda i, j: (i, j)),
            pl.BlockSpec((1, 2, tile_d), lambda i, j: (i, 0, j)),
        ),
        out_shape=(
            jax.ShapeDtypeStruct((n_pad, d_out), jnp.bfloat16),   # bf16 intermediate
            jax.ShapeDtypeStruct((tn, 2, d_out), jnp.float32),
        ),
        compiler_params=_compiler_params(2),
    )(x, w)


def _bn_relu_linear_stats(h, scale, shift, w, tile_n, tile_d, valid_rows,
                          out_dtype):
    n_pad, d_in = h.shape
    d_out = w.shape[1]
    tn = n_pad // tile_n
    td = d_out // tile_d
    kernel = functools.partial(
        _bn_relu_linear_stats_kernel,
        tile_n=tile_n, valid_rows=valid_rows, mask_rows=(valid_rows != n_pad))
    single = pl.Buffered(1)   # grid-invariant blocks: no second pipeline buffer
    return pl.pallas_call(
        kernel,
        grid=(tn, td),
        in_specs=[
            pl.BlockSpec((tile_n, d_in), lambda i, j: (i, 0)),     # streamed h tile
            pl.BlockSpec((1, d_in), lambda i, j: (0, 0), pipeline_mode=single),
            pl.BlockSpec((1, d_in), lambda i, j: (0, 0), pipeline_mode=single),
            pl.BlockSpec((d_in, tile_d), lambda i, j: (0, j),
                         pipeline_mode=single if td == 1 else None),
        ],
        out_specs=(
            pl.BlockSpec((tile_n, tile_d), lambda i, j: (i, j)),
            pl.BlockSpec((1, 2, tile_d), lambda i, j: (i, 0, j)),
        ),
        out_shape=(
            jax.ShapeDtypeStruct((n_pad, d_out), out_dtype),
            jax.ShapeDtypeStruct((tn, 2, d_out), jnp.float32),
        ),
        compiler_params=_compiler_params(2),
    )(h, scale, shift, w)


def _bn_scale_shift(stats, n_valid, gamma, beta):
    """Per-tile partial (sum, sumsq) -> per-feature BN scale/shift (f32, tiny)."""
    s = jnp.sum(stats[:, 0, :], axis=0)
    ss = jnp.sum(stats[:, 1, :], axis=0)
    mean = s / n_valid
    # One-pass biased variance in f32; clamp tiny negatives from cancellation.
    # (Post-BN activations are well-centered, so cancellation risk is minimal.)
    var = jnp.maximum(ss / n_valid - mean * mean, 0.0)
    inv_std = jax.lax.rsqrt(var + EPS)
    scale = gamma.reshape(-1) * inv_std
    shift = beta.reshape(-1) - mean * scale
    return scale.reshape(1, -1), shift.reshape(1, -1)


# --------------------------------------------------------------------------
# Forward pass
# --------------------------------------------------------------------------
@functools.partial(jax.jit, static_argnames=("tile_n", "tile_d"))
def projection_mlp(x, params, tile_n=512, tile_d=None):
    """tile_n: batch tile (512 is a good default on v5e/v6e/v7x).
    tile_d: optional output-feature tile for the weights (set e.g. 2048 on v7x
    at real BYOL dims to bound resident VMEM); None = full-width weight."""
    n, in_dim = x.shape
    mid_dim = params["w1"].shape[1]
    out_dim = params["w3"].shape[1]
    assert tile_n % 16 == 0, "tile_n must be a multiple of 16 (bf16 stores)"
    for d in (in_dim, mid_dim, out_dim):
        assert d % 128 == 0, "feature dims must be lane-aligned (multiple of 128)"
    if tile_d is not None:
        assert tile_d % 128 == 0
    # TODO(synk): zero-pad feature dims (weights/gamma/beta columns) to lift the
    # multiple-of-128 restriction for arbitrary in/mid/out_dim.

    def td(d):
        if tile_d is None:
            return d
        assert d % tile_d == 0
        return tile_d

    n_pad = int(pl.cdiv(n, tile_n)) * tile_n
    if n_pad != n:
        # Zero rows + no in-kernel linear bias => padded h1 rows are exactly 0.
        x = jnp.pad(x, ((0, n_pad - n), (0, 0)))
    # NOTE: no wrapper-side bf16 cast of x; the first kernel casts in-VMEM.

    # Layer 1: Linear (+ partial BN stats).  Biases omitted (cancelled by BN mean).
    h1, st1 = _linear_stats(x, params["w1"], tile_n, td(mid_dim))
    sc1, sh1 = _bn_scale_shift(st1, n, params["g1"], params["be1"])

    # Layer 2: BN1 -> ReLU -> Linear (+ partial BN stats), fused per tile.
    h2, st2 = _bn_relu_linear_stats(h1, sc1, sh1, params["w2"],
                                    tile_n, td(mid_dim), n, jnp.bfloat16)
    sc2, sh2 = _bn_scale_shift(st2, n, params["g2"], params["be2"])

    # Layer 3: BN2 -> ReLU -> Linear (+ partial BN stats), fused per tile.
    # Final pre-BN activation kept f32 for output precision.
    h3, st3 = _bn_relu_linear_stats(h2, sc2, sh2, params["w3"],
                                    tile_n, td(out_dim), n, jnp.float32)
    sc3, sh3 = _bn_scale_shift(st3, n, params["g3"], params["be3"])

    # Final BatchNorm (no ReLU): trivially fusible elementwise — let XLA fuse it
    # with the un-pad slice instead of paying another pallas_call (and never
    # touch the padded garbage rows).
    return h3[:n] * sc3 + sh3


# --------------------------------------------------------------------------
# Params / reference / test
# --------------------------------------------------------------------------
def init_params(key, in_dim, mid_dim, out_dim):
    """PyTorch-like uniform init.  Weights are (fan_in, fan_out) in bf16 for the
    MXU.  Linear biases are created for the reference but unused by the kernels
    (training-mode BatchNorm cancels them exactly)."""
    ks = jax.random.split(key, 6)

    def linear(kw, kb, fan_in, fan_out):
        bound = 1.0 / jnp.sqrt(jnp.float32(fan_in))
        w = jax.random.uniform(kw, (fan_in, fan_out), jnp.float32, -bound, bound)
        b = jax.random.uniform(kb, (1, fan_out), jnp.float32, -bound, bound)
        return w.astype(jnp.bfloat16), b

    w1, b1 = linear(ks[0], ks[1], in_dim, mid_dim)
    w2, b2 = linear(ks[2], ks[3], mid_dim, mid_dim)
    w3, b3 = linear(ks[4], ks[5], mid_dim, out_dim)
    ones, zeros = jnp.ones, jnp.zeros
    return dict(
        w1=w1, b1=b1, g1=ones((1, mid_dim), jnp.float32), be1=zeros((1, mid_dim), jnp.float32),
        w2=w2, b2=b2, g2=ones((1, mid_dim), jnp.float32), be2=zeros((1, mid_dim), jnp.float32),
        w3=w3, b3=b3, g3=ones((1, out_dim), jnp.float32), be3=zeros((1, out_dim), jnp.float32),
    )


def projection_mlp_ref(x, p):
    """Pure-JAX reference with the module's exact semantics (training-mode BN,
    biased variance, eps=1e-5, Linear biases applied) at the same bf16 matmul
    operand precision the kernel uses (f32 accumulation, f32 intermediates)."""
    def dot(a, w):
        return jnp.dot(a.astype(jnp.bfloat16), w, preferred_element_type=jnp.float32)

    def bn(h, g, b):
        m = jnp.mean(h, axis=0, keepdims=True)
        v = jnp.mean((h - m) ** 2, axis=0, keepdims=True)
        return (h - m) / jnp.sqrt(v + EPS) * g + b

    h = jnp.maximum(bn(dot(x, p["w1"]) + p["b1"], p["g1"], p["be1"]), 0.0)
    h = jnp.maximum(bn(dot(h, p["w2"]) + p["b2"], p["g2"], p["be2"]), 0.0)
    return bn(dot(h, p["w3"]) + p["b3"], p["g3"], p["be3"])


if __name__ == "__main__":
    key = jax.random.PRNGKey(0)
    k_x, k_p = jax.random.split(key)

    # Small but lane-aligned feature dims; batch deliberately NOT a tile
    # multiple so the zero-pad + stats-mask path is exercised (200 -> 256,
    # 2 row tiles).  tile_d=128 additionally exercises the column-tiled-weight
    # path (2 column tiles for mid_dim=256, 1 for out_dim=128).  Production
    # defaults are tile_n=512, tile_d=None (v5e/v6e) / ~2048 (v7x).
    batch, in_dim, mid_dim, out_dim = 200, 128, 256, 128
    x = jax.random.normal(k_x, (batch, in_dim), jnp.float32)
    params = init_params(k_p, in_dim, mid_dim, out_dim)

    out = jax.block_until_ready(projection_mlp(x, params, tile_n=128, tile_d=128))
    ref = jax.block_until_ready(projection_mlp_ref(x, params))

    assert out.shape == (batch, out_dim), out.shape
    assert bool(jnp.all(jnp.isfinite(out))), "non-finite output"
    # Tolerance accounts for bf16 storage of h1/h2 (reference keeps them f32).
    assert bool(jnp.allclose(out, ref, atol=2.5e-2, rtol=2.5e-2)), (
        f"mismatch vs reference: max abs err {jnp.max(jnp.abs(out - ref))}")

    print("KERNEL_OK")
</pallas_src>

<mosaic_0001>
module attributes {stable_mosaic.version = 11 : i64} {
  func.func @_linear_stats_kernel(%arg0: i32, %arg1: i32, %arg2: memref<128x128xf32, #tpu.memory_space<vmem>>, %arg3: memref<128x128xbf16, #tpu.memory_space<vmem>>, %arg4: memref<128x128xbf16, #tpu.memory_space<vmem>>, %arg5: memref<1x2x128xf32, #tpu.memory_space<vmem>>) attributes {dimension_semantics = [#tpu.dimension_semantics<parallel>, #tpu.dimension_semantics<parallel>], iteration_bounds = array<i64: 2, 2>, scalar_prefetch = 0 : i64, scratch_operands = 0 : i64, tpu.core_type = #tpu.core_type<tc>, window_params = [{transform_indices = @transform_0, window_bounds = array<i64: 128, 128>}, {transform_indices = @transform_1, window_bounds = array<i64: 128, 128>}, {transform_indices = @transform_2, window_bounds = array<i64: 128, 128>}, {transform_indices = @transform_3, window_bounds = array<i64: 1, 2, 128>}]} {
    %c0 = arith.constant 0 : index
    %c0_0 = arith.constant 0 : index
    %0 = vector.load %arg2[%c0, %c0_0] : memref<128x128xf32, #tpu.memory_space<vmem>>, vector<128x128xf32>
    %1 = arith.truncf %0 : vector<128x128xf32> to vector<128x128xbf16>
    %c0_1 = arith.constant 0 : index
    %c0_2 = arith.constant 0 : index
    %2 = vector.load %arg3[%c0_1, %c0_2] : memref<128x128xbf16, #tpu.memory_space<vmem>>, vector<128x128xbf16>
    %cst = arith.constant dense<0.000000e+00> : vector<128x128xf32>
    %3 = tpu.matmul %1, %2, %cst {dimension_numbers = #tpu.dot_dimension_numbers<[1], [0], [0], [1], [0, 0, 1, 1], [], []>} : vector<128x128xbf16>, vector<128x128xbf16>, vector<128x128xf32> -> vector<128x128xf32>
    %4 = arith.truncf %3 : vector<128x128xf32> to vector<128x128xbf16>
    %c0_3 = arith.constant 0 : index
    %c0_4 = arith.constant 0 : index
    %5 = vector.load %arg4[%c0_3, %c0_4] : memref<128x128xbf16, #tpu.memory_space<vmem>>, vector<128x128xbf16>
    tpu.vector_store %arg4[%c0_3, %c0_4], %4 {strides = array<i32>} : memref<128x128xbf16, #tpu.memory_space<vmem>>, vector<128x128xbf16>,
    %cst_5 = arith.constant dense<0.000000e+00> : vector<128xf32>
    %6 = vector.multi_reduction <add>, %3, %cst_5 [0] : vector<128x128xf32> to vector<128xf32>
    %7 = vector.shape_cast %6 : vector<128xf32> to vector<1x128xf32>
    %8 = arith.mulf %3, %3 : vector<128x128xf32>
    %cst_6 = arith.constant dense<0.000000e+00> : vector<128xf32>
    %9 = vector.multi_reduction <add>, %8, %cst_6 [0] : vector<128x128xf32> to vector<128xf32>
    %10 = vector.shape_cast %9 : vector<128xf32> to vector<1x128xf32>
    %11 = tpu.concatenate %7, %10 in 0 : vector<1x128xf32>, vector<1x128xf32> -> vector<2x128xf32>
    %c0_7 = arith.constant 0 : index
    %c0_8 = arith.constant 0 : index
    %c0_9 = arith.constant 0 : index
    %12 = vector.load %arg5[%c0_7, %c0_8, %c0_9] : memref<1x2x128xf32, #tpu.memory_space<vmem>>, vector<1x2x128xf32>
    %13 = vector.shape_cast %12 : vector<1x2x128xf32> to vector<2x128xf32>
    %14 = vector.shape_cast %11 : vector<2x128xf32> to vector<1x2x128xf32>
    tpu.vector_store %arg5[%c0_7, %c0_8, %c0_9], %14 {strides = array<i32>} : memref<1x2x128xf32, #tpu.memory_space<vmem>>, vector<1x2x128xf32>,
    return
  }
  func.func @transform_0(%arg0: i32, %arg1: i32) -> (i32, i32) {
    %c0_i32 = arith.constant 0 : i32
    %c0_i32_0 = arith.constant 0 : i32
    return %arg0, %c0_i32 : i32, i32
  }
  func.func @transform_1(%arg0: i32, %arg1: i32) -> (i32, i32) {
    %c0_i32 = arith.constant 0 : i32
    %c0_i32_0 = arith.constant 0 : i32
    return %c0_i32, %arg1 : i32, i32
  }
  func.func @transform_2(%arg0: i32, %arg1: i32) -> (i32, i32) {
    %c0_i32 = arith.constant 0 : i32
    return %arg0, %arg1 : i32, i32
  }
  func.func @transform_3(%arg0: i32, %arg1: i32) -> (i32, i32, i32) {
    %c0_i32 = arith.constant 0 : i32
    %c0_i32_0 = arith.constant 0 : i32
    return %arg0, %c0_i32, %arg1 : i32, i32, i32
  }
}

module attributes {stable_mosaic.version = 11 : i64} {
  func.func @_bn_relu_linear_stats_kernel(%arg0: i32, %arg1: i32, %arg2: memref<128x256xbf16, #tpu.memory_space<vmem>>, %arg3: memref<1x256xf32, #tpu.memory_space<vmem>>, %arg4: memref<1x256xf32, #tpu.memory_space<vmem>>, %arg5: memref<256x128xbf16, #tpu.memory_space<vmem>>, %arg6: memref<128x128xbf16, #tpu.memory_space<vmem>>, %arg7: memref<1x2x128xf32, #tpu.memory_space<vmem>>) attributes {dimension_semantics = [#tpu.dimension_semantics<parallel>, #tpu.dimension_semantics<parallel>], iteration_bounds = array<i64: 2, 2>, scalar_prefetch = 0 : i64, scratch_operands = 0 : i64, tpu.core_type = #tpu.core_type<tc>, window_params = [{transform_indices = @transform_0, window_bounds = array<i64: 128, 256>}, {pipeline_mode = #tpu.pipeline_mode<synchronous>, transform_indices = @transform_1, window_bounds = array<i64: 1, 256>}, {pipeline_mode = #tpu.pipeline_mode<synchronous>, transform_indices = @transform_2, window_bounds = array<i64: 1, 256>}, {transform_indices = @transform_3, window_bounds = array<i64: 256, 128>}, {transform_indices = @transform_4, window_bounds = array<i64: 128, 128>}, {transform_indices = @transform_5, window_bounds = array<i64: 1, 2, 128>}]} {
    %c0 = arith.constant 0 : index
    %c0_0 = arith.constant 0 : index
    %0 = vector.load %arg2[%c0, %c0_0] : memref<128x256xbf16, #tpu.memory_space<vmem>>, vector<128x256xbf16>
    %1 = arith.extf %0 : vector<128x256xbf16> to vector<128x256xf32>
    %c0_1 = arith.constant 0 : index
    %c0_2 = arith.constant 0 : index
    %2 = vector.load %arg3[%c0_1, %c0_2] : memref<1x256xf32, #tpu.memory_space<vmem>>, vector<1x256xf32>
    %3 = vector.broadcast %2 : vector<1x256xf32> to vector<128x256xf32>
    %4 = arith.mulf %1, %3 : vector<128x256xf32>
    %c0_3 = arith.constant 0 : index
    %c0_4 = arith.constant 0 : index
    %5 = vector.load %arg4[%c0_3, %c0_4] : memref<1x256xf32, #tpu.memory_space<vmem>>, vector<1x256xf32>
    %6 = vector.broadcast %5 : vector<1x256xf32> to vector<128x256xf32>
    %7 = arith.addf %4, %6 : vector<128x256xf32>
    %cst = arith.constant 0.000000e+00 : f32
    %8 = vector.broadcast %cst : f32 to vector<128x256xf32>
    %9 = arith.maximumf %7, %8 : vector<128x256xf32>
    %10 = arith.truncf %9 : vector<128x256xf32> to vector<128x256xbf16>
    %c0_5 = arith.constant 0 : index
    %c0_6 = arith.constant 0 : index
    %11 = vector.load %arg5[%c0_5, %c0_6] : memref<256x128xbf16, #tpu.memory_space<vmem>>, vector<256x128xbf16>
    %cst_7 = arith.constant dense<0.000000e+00> : vector<128x128xf32>
    %12 = tpu.matmul %10, %11, %cst_7 {dimension_numbers = #tpu.dot_dimension_numbers<[1], [0], [0], [1], [0, 0, 1, 1], [], []>} : vector<128x256xbf16>, vector<256x128xbf16>, vector<128x128xf32> -> vector<128x128xf32>
    %13 = arith.truncf %12 : vector<128x128xf32> to vector<128x128xbf16>
    %c0_8 = arith.constant 0 : index
    %c0_9 = arith.constant 0 : index
    %14 = vector.load %arg6[%c0_8, %c0_9] : memref<128x128xbf16, #tpu.memory_space<vmem>>, vector<128x128xbf16>
    tpu.vector_store %arg6[%c0_8, %c0_9], %13 {strides = array<i32>} : memref<128x128xbf16, #tpu.memory_space<vmem>>, vector<128x128xbf16>,
    %c128_i32 = arith.constant 128 : i32
    %15 = arith.muli %arg0, %c128_i32 : i32
    %16 = tpu.iota {dimensions = array<i32: 0>} : vector<128x1xi32>
    %17 = vector.broadcast %15 : i32 to vector<128x1xi32>
    %18 = arith.addi %17, %16 : vector<128x1xi32>
    %c200_i32 = arith.constant 200 : i32
    %19 = vector.broadcast %c200_i32 : i32 to vector<128x1xi32>
    %20 = arith.cmpi slt, %18, %19 : vector<128x1xi32>
    %cst_10 = arith.constant 0.000000e+00 : f32
    %21 = vector.shape_cast %20 : vector<128x1xi1> to vector<128x1xi1>
    %22 = vector.broadcast %21 : vector<128x1xi1> to vector<128x128xi1>
    %23 = vector.broadcast %cst_10 : f32 to vector<128x128xf32>
    %24 = arith.select %22, %12, %23 : vector<128x128xi1>, vector<128x128xf32>
    %cst_11 = arith.constant dense<0.000000e+00> : vector<128xf32>
    %25 = vector.multi_reduction <add>, %24, %cst_11 [0] : vector<128x128xf32> to vector<128xf32>
    %26 = vector.shape_cast %25 : vector<128xf32> to vector<1x128xf32>
    %27 = arith.mulf %24, %24 : vector<128x128xf32>
    %cst_12 = arith.constant dense<0.000000e+00> : vector<128xf32>
    %28 = vector.multi_reduction <add>, %27, %cst_12 [0] : vector<128x128xf32> to vector<128xf32>
    %29 = vector.shape_cast %28 : vector<128xf32> to vector<1x128xf32>
    %30 = tpu.concatenate %26, %29 in 0 : vector<1x128xf32>, vector<1x128xf32> -> vector<2x128xf32>
    %c0_13 = arith.constant 0 : index
    %c0_14 = arith.constant 0 : index
    %c0_15 = arith.constant 0 : index
    %31 = vector.load %arg7[%c0_13, %c0_14, %c0_15] : memref<1x2x128xf32, #tpu.memory_space<vmem>>, vector<1x2x128xf32>
    %32 = vector.shape_cast %31 : vector<1x2x128xf32> to vector<2x128xf32>
    %33 = vector.shape_cast %30 : vector<2x128xf32> to vector<1x2x128xf32>
    tpu.vector_store %arg7[%c0_13, %c0_14, %c0_15], %33 {strides = array<i32>} : memref<1x2x128xf32, #tpu.memory_space<vmem>>, vector<1x2x128xf32>,
    return
  }
  func.func @transform_0(%arg0: i32, %arg1: i32) -> (i32, i32) {
    %c0_i32 = arith.constant 0 : i32
    %c0_i32_0 = arith.constant 0 : i32
    return %arg0, %c0_i32 : i32, i32
  }
  func.func @transform_1(%arg0: i32, %arg1: i32) -> (i32, i32) {
    %c0_i32 = arith.constant 0 : i32
    %c0_i32_0 = arith.constant 0 : i32
    %c0_i32_1 = arith.constant 0 : i32
    return %c0_i32, %c0_i32_0 : i32, i32
  }
  func.func @transform_2(%arg0: i32, %arg1: i32) -> (i32, i32) {
    %c0_i32 = arith.constant 0 : i32
    %c0_i32_0 = arith.constant 0 : i32
    %c0_i32_1 = arith.constant 0 : i32
    return %c0_i32, %c0_i32_0 : i32, i32
  }
  func.func @transform_3(%arg0: i32, %arg1: i32) -> (i32, i32) {
    %c0_i32 = arith.constant 0 : i32
    %c0_i32_0 = arith.constant 0 : i32
    return %c0_i32, %arg1 : i32, i32
  }
  func.func @transform_4(%arg0: i32, %arg1: i32) -> (i32, i32) {
    %c0_i32 = arith.constant 0 : i32
    return %arg0, %arg1 : i32, i32
  }
  func.func @transform_5(%arg0: i32, %arg1: i32) -> (i32, i32, i32) {
    %c0_i32 = arith.constant 0 : i32
    %c0_i32_0 = arith.constant 0 : i32
    return %arg0, %c0_i32, %arg1 : i32, i32, i32
  }
}

module attributes {stable_mosaic.version = 11 : i64} {
  func.func @_bn_relu_linear_stats_kernel(%arg0: i32, %arg1: i32, %arg2: memref<128x256xbf16, #tpu.memory_space<vmem>>, %arg3: memref<1x256xf32, #tpu.memory_space<vmem>>, %arg4: memref<1x256xf32, #tpu.memory_space<vmem>>, %arg5: memref<256x128xbf16, #tpu.memory_space<vmem>>, %arg6: memref<128x128xf32, #tpu.memory_space<vmem>>, %arg7: memref<1x2x128xf32, #tpu.memory_space<vmem>>) attributes {dimension_semantics = [#tpu.dimension_semantics<parallel>, #tpu.dimension_semantics<parallel>], iteration_bounds = array<i64: 2, 1>, scalar_prefetch = 0 : i64, scratch_operands = 0 : i64, tpu.core_type = #tpu.core_type<tc>, window_params = [{transform_indices = @transform_0, window_bounds = array<i64: 128, 256>}, {pipeline_mode = #tpu.pipeline_mode<synchronous>, transform_indices = @transform_1, window_bounds = array<i64: 1, 256>}, {pipeline_mode = #tpu.pipeline_mode<synchronous>, transform_indices = @transform_2, window_bounds = array<i64: 1, 256>}, {pipeline_mode = #tpu.pipeline_mode<synchronous>, transform_indices = @transform_3, window_bounds = array<i64: 256, 128>}, {transform_indices = @transform_4, window_bounds = array<i64: 128, 128>}, {transform_indices = @transform_5, window_bounds = array<i64: 1, 2, 128>}]} {
    %c0 = arith.constant 0 : index
    %c0_0 = arith.constant 0 : index
    %0 = vector.load %arg2[%c0, %c0_0] : memref<128x256xbf16, #tpu.memory_space<vmem>>, vector<128x256xbf16>
    %1 = arith.extf %0 : vector<128x256xbf16> to vector<128x256xf32>
    %c0_1 = arith.constant 0 : index
    %c0_2 = arith.constant 0 : index
    %2 = vector.load %arg3[%c0_1, %c0_2] : memref<1x256xf32, #tpu.memory_space<vmem>>, vector<1x256xf32>
    %3 = vector.broadcast %2 : vector<1x256xf32> to vector<128x256xf32>
    %4 = arith.mulf %1, %3 : vector<128x256xf32>
    %c0_3 = arith.constant 0 : index
    %c0_4 = arith.constant 0 : index
    %5 = vector.load %arg4[%c0_3, %c0_4] : memref<1x256xf32, #tpu.memory_space<vmem>>, vector<1x256xf32>
    %6 = vector.broadcast %5 : vector<1x256xf32> to vector<128x256xf32>
    %7 = arith.addf %4, %6 : vector<128x256xf32>
    %cst = arith.constant 0.000000e+00 : f32
    %8 = vector.broadcast %cst : f32 to vector<128x256xf32>
    %9 = arith.maximumf %7, %8 : vector<128x256xf32>
    %10 = arith.truncf %9 : vector<128x256xf32> to vector<128x256xbf16>
    %c0_5 = arith.constant 0 : index
    %c0_6 = arith.constant 0 : index
    %11 = vector.load %arg5[%c0_5, %c0_6] : memref<256x128xbf16, #tpu.memory_space<vmem>>, vector<256x128xbf16>
    %cst_7 = arith.constant dense<0.000000e+00> : vector<128x128xf32>
    %12 = tpu.matmul %10, %11, %cst_7 {dimension_numbers = #tpu.dot_dimension_numbers<[1], [0], [0], [1], [0, 0, 1, 1], [], []>} : vector<128x256xbf16>, vector<256x128xbf16>, vector<128x128xf32> -> vector<128x128xf32>
    %c0_8 = arith.constant 0 : index
    %c0_9 = arith.constant 0 : index
    %13 = vector.load %arg6[%c0_8, %c0_9] : memref<128x128xf32, #tpu.memory_space<vmem>>, vector<128x128xf32>
    tpu.vector_store %arg6[%c0_8, %c0_9], %12 {strides = array<i32>} : memref<128x128xf32, #tpu.memory_space<vmem>>, vector<128x128xf32>,
    %c128_i32 = arith.constant 128 : i32
    %14 = arith.muli %arg0, %c128_i32 : i32
    %15 = tpu.iota {dimensions = array<i32: 0>} : vector<128x1xi32>
    %16 = vector.broadcast %14 : i32 to vector<128x1xi32>
    %17 = arith.addi %16, %15 : vector<128x1xi32>
    %c200_i32 = arith.constant 200 : i32
    %18 = vector.broadcast %c200_i32 : i32 to vector<128x1xi32>
    %19 = arith.cmpi slt, %17, %18 : vector<128x1xi32>
    %cst_10 = arith.constant 0.000000e+00 : f32
    %20 = vector.shape_cast %19 : vector<128x1xi1> to vector<128x1xi1>
    %21 = vector.broadcast %20 : vector<128x1xi1> to vector<128x128xi1>
    %22 = vector.broadcast %cst_10 : f32 to vector<128x128xf32>
    %23 = arith.select %21, %12, %22 : vector<128x128xi1>, vector<128x128xf32>
    %cst_11 = arith.constant dense<0.000000e+00> : vector<128xf32>
    %24 = vector.multi_reduction <add>, %23, %cst_11 [0] : vector<128x128xf32> to vector<128xf32>
    %25 = vector.shape_cast %24 : vector<128xf32> to vector<1x128xf32>
    %26 = arith.mulf %23, %23 : vector<128x128xf32>
    %cst_12 = arith.constant dense<0.000000e+00> : vector<128xf32>
    %27 = vector.multi_reduction <add>, %26, %cst_12 [0] : vector<128x128xf32> to vector<128xf32>
    %28 = vector.shape_cast %27 : vector<128xf32> to vector<1x128xf32>
    %29 = tpu.concatenate %25, %28 in 0 : vector<1x128xf32>, vector<1x128xf32> -> vector<2x128xf32>
    %c0_13 = arith.constant 0 : index
    %c0_14 = arith.constant 0 : index
    %c0_15 = arith.constant 0 : index
    %30 = vector.load %arg7[%c0_13, %c0_14, %c0_15] : memref<1x2x128xf32, #tpu.memory_space<vmem>>, vector<1x2x128xf32>
    %31 = vector.shape_cast %30 : vector<1x2x128xf32> to vector<2x128xf32>
    %32 = vector.shape_cast %29 : vector<2x128xf32> to vector<1x2x128xf32>
    tpu.vector_store %arg7[%c0_13, %c0_14, %c0_15], %32 {strides = array<i32>} : memref<1x2x128xf32, #tpu.memory_space<vmem>>, vector<1x2x128xf32>,
    return
  }
  func.func @transform_0(%arg0: i32, %arg1: i32) -> (i32, i32) {
    %c0_i32 = arith.constant 0 : i32
    %c0_i32_0 = arith.constant 0 : i32
    return %arg0, %c0_i32 : i32, i32
  }
  func.func @transform_1(%arg0: i32, %arg1: i32) -> (i32, i32) {
    %c0_i32 = arith.constant 0 : i32
    %c0_i32_0 = arith.constant 0 : i32
    %c0_i32_1 = arith.constant 0 : i32
    return %c0_i32, %c0_i32_0 : i32, i32
  }
  func.func @transform_2(%arg0: i32, %arg1: i32) -> (i32, i32) {
    %c0_i32 = arith.constant 0 : i32
    %c0_i32_0 = arith.constant 0 : i32
    %c0_i32_1 = arith.constant 0 : i32
    return %c0_i32, %c0_i32_0 : i32, i32
  }
  func.func @transform_3(%arg0: i32, %arg1: i32) -> (i32, i32) {
    %c0_i32 = arith.constant 0 : i32
    %c0_i32_0 = arith.constant 0 : i32
    return %c0_i32, %arg1 : i32, i32
  }
  func.func @transform_4(%arg0: i32, %arg1: i32) -> (i32, i32) {
    %c0_i32 = arith.constant 0 : i32
    return %arg0, %arg1 : i32, i32
  }
  func.func @transform_5(%arg0: i32, %arg1: i32) -> (i32, i32, i32) {
    %c0_i32 = arith.constant 0 : i32
    %c0_i32_0 = arith.constant 0 : i32
    return %arg0, %c0_i32, %arg1 : i32, i32, i32
  }
}

</mosaic_0001>

<bundles_post_ra>
// kernel: projection_mlp.3
= control target key start
LH: loop header
LB: loop body
LE: loop exit
PB: predicated region body
PF: predicated region fallthrough
CT: control target
= control target key end

     0   :  { %s1830_s0 = inlined_call_operand.hbm [shape: f32[256,128], index: 0, kind: input, shape index: {}]   ;;  %s1831_s1 = inlined_call_operand.hbm [shape: bf16[128,256], index: 1, kind: input, shape index: {}]   ;;  %s1832_s2 = inlined_call_operand.hbm [shape: bf16[256,256], index: 2, kind: output, shape index: {0}]   ;;  %s1833_s3 = inlined_call_operand.hbm [shape: f32[2,2,256], index: 3, kind: output, shape index: {1}]  }
   0x1   :  { %1848 = sst [smem:[#allocation20_spill]] %s1830_s0 }
   0x2   :  { %1849 = sst [smem:[#allocation21_spill]] %s1832_s2 }
   0x3   :  { %1850 = sst [smem:[#allocation22_spill]] %s1833_s3 }
   0x4   :  { %9 = vsyncpa [#allocation3], 0 }
   0x5   :  { %11 = vsyncpa [#allocation3 + $0x1], 0 }
   0x6   :  { %12 = vsyncpa [#allocation6], 0 }
   0x7   :  { %14 = vsyncpa [#allocation6 + $0x1], 0 }
   0x8   :  { %15 = vsyncpa [#allocation4], 0 }
   0x9   :  { %17 = vsyncpa [#allocation4 + $0x1], 0 }
   0xa   :  { %18 = vsyncpa [#allocation9], 0 }
   0xb   :  { %20 = vsyncpa [#allocation9 + $0x1], 0  ;;  %s1365_s12 = smov 0   ;;  %s1367_s13 = smov 0  }
   0xc   :  { %s1369_s14 = smov 0   ;;  %s1371_s15 = smov 0  }
   0xd   :  { %s1373_s16 = smov 0   ;;  %s1375_s17 = smov 0  }
   0xe   :  { %s1377_s18 = smov 0   ;;  %s1379_s19 = smov 0  }
   0xf   :  { %s1381_s20 = smov 0   ;;  %s1383_s21 = smov 0  }
  0x10   :  { %s1385_s22 = smov 0   ;;  %s1387_s23 = smov 0  }
  0x11   :  { %s1389_s24 = smov 0   ;;  %s1391_s25 = smov 0  }
  0x12 LB: > { %1851 = sst [smem:[#allocation14_spill]] %s1316_s21  ;;  %s763_s26 = sadd.s32 4294967295, %s1332_s25   ;;  %s1332_s25 = sphi %s1391_s25, %s26_s25   ;;  %s1328_s24 = sphi %s1389_s24, %s1887_s24   ;;  %s1324_s23 = sphi %s1387_s23, %s1898_s23   ;;  %s1320_s22 = sphi %s1385_s22, %s1885_s22   ;;  %s1316_s21 = sphi %s1383_s21, %s1897_s21   ;;  %s1312_s20 = sphi %s1381_s20, %s1896_s20   ;;  %s1308_s19 = sphi %s1379_s19, %s1895_s19   ;;  %s1304_s18 = sphi %s1377_s18, %s1894_s18   ;;  %s1300_s17 = sphi %s1375_s17, %s1893_s17   ;;  %s1296_s16 = sphi %s1373_s16, %s1892_s16   ;;  %s1292_s15 = sphi %s1371_s15, %s1891_s15   ;;  %s1288_s14 = sphi %s1369_s14, %s1890_s14   ;;  %s1284_s13 = sphi %s1367_s13, %s1889_s13   ;;  %s1280_s12 = sphi %s1365_s12, %s1888_s12  }
  0x13   : > { %1852 = sst [smem:[#allocation15_spill]] %s1328_s24  ;;  %p52_p0 = scmp.ne.s32.totalorder %s1312_s20, %s1308_s19 }
  0x14   : > { %p1835_p1 = scmp.eq.s32.totalorder %s1332_s25, 0  ;;  %p58_p2 = scmp.ne.s32.totalorder %s1308_s19, %s1304_s18 }
  0x15   : > { %p1440_p3 = scmp.eq.s32.totalorder %s763_s26, 0  ;;  %p1444_p4 = scmp.eq.s32.totalorder %s763_s26, 3 }
  0x16   : > { %p54_p5 = por %p1835_p1, %p52_p0  ;;  %p1834_p7 = scmp.lt.s32.totalorder %s1332_s25, 4 }
  0x17   : > { %s1854_s30 = scalar_select %p1444_p4, 1, 0 }
  0x18   : > { %p1452_p6 = por %p1440_p3, %p58_p2  ;;  %s164_s5 = sand.u32 1, %s1312_s20  }
  0x19   : > { %s810_s6 = sshll.u32 %s1328_s24, 11  ;;  %s767_s7 = sshll.u32 %s164_s5, 7 }
  0x1a   : > { %s1855_s4 = scalar_select %p1452_p6, 1, 0 }
  0x1b   : > { %s1856_s0 = sld [smem:[#allocation20_spill]]  ;;  %s168_s11 = scalar_lea.vmem [#allocation2], %s767_s7 }
  0x1c   : > { %s175_s18 = sshll.u32 %s168_s11, 4  ;;  %p1466_p8 = pnand %p1834_p7, %p54_p5  ;;  %s1470_s18 = int_to_ptr.vmem [resolvable:$true] %s175_s18 }
  0x1d   : > { %s1472_s28 = scalar_lea.sflag [#allocation3], %s164_s5 }
  0x1e   : > { %p1092_p10 = pneg %p1466_p8 }
  0x21   : > { %s1462_s10 = scalar_lea.hbm %s1856_s0, %s810_s6  ;;  %s1095_s9 = scalar_lea.hbm %s1856_s0, 4096 }
  0x22   : > { %s1090_s8 = scalar_lea.hbm %s1462_s10, 2048  ;;  %p1096_p13 = scmp.lt.u32.totalorder %s1462_s10, %s1856_s0 }
  0x23   : > { %p1091_p9 = scmp.ne.s32.totalorder %s1462_s10, %s1090_s8  ;;  %p1097_p0 = scmp.lt.u32.totalorder %s1095_s9, %s1090_s8 }
  0x24   : > { %p1099_p5 = scmp.lt.u32.totalorder %s1090_s8, %s1462_s10 }
  0x25   : > { %p1093_p11 = pnand %p1092_p10, %p1091_p9  ;;  %p1098_p2 = por %p1097_p0, %p1096_p13 }
  0x27   : > { %p1094_p12 = pneg %p1093_p11  ;;  %p1100_p7 = por %p1099_p5, %p1098_p2 }
  0x29   : > { %p1101_p1 = pnand %p1100_p7, %p1094_p12 }
  0x2b   : > { %1104 = shalt.err (!%p1101_p1)
}
  0x2c   : > { %s1105_s5 = scalar_lea.vmem %s1470_s18, 2048  ;;  %s1334_s6 = smov [#allocation2]  }
  0x2d   : > { %p1106_p9 = scmp.ne.s32.totalorder %s1470_s18, %s1105_s5  ;;  %s1110_s7 = sshll.u32 %s1334_s6, 4  ;;  %s1111_s7 = int_to_ptr.vmem [resolvable:$false] %s1110_s7 }
  0x2e   : > { %s1112_s27 = scalar_lea.vmem %s1111_s7, 4096  ;;  %p1113_p4 = scmp.lt.s32.totalorder %s1470_s18, %s1111_s7 }
  0x2f   : > { %p1108_p11 = pnand %p1106_p9, %p1092_p10  ;;  %p1114_p13 = scmp.lt.s32.totalorder %s1112_s27, %s1105_s5 }
  0x31   : > { %p1109_p6 = pneg %p1108_p11  ;;  %p1115_p0 = por %p1114_p13, %p1113_p4 }
  0x33   : > { %p1116_p2 = pnand %p1115_p0, %p1109_p6 }
  0x35   : > { %1119 = shalt.err (!%p1116_p2)
}
  0x36   : > { %s1837_s8 = smov 128   ;;  %s1336_s9 = smov 8  }
  0x37   : > { %950 = dma.hbm_to_vmem [thread:$0]  (!%p1466_p8), %s1462_s10, 2048, %s1470_s18, %s1472_s28, %s1837_s8, %s1837_s8, %s1336_s9  }
  0x38   : > { %p772_p1 = scmp.ge.s32.totalorder %s1332_s25, 1  ;;  %p203_p4 = scmp.lt.s32.totalorder %s1332_s25, 5 }
  0x39   : > { %s764_s5 = sadd.s32 4294967294, %s1332_s25   ;;  %s35_s6 = sadd.s32 1, %s1324_s23 }
  0x3a   : > { %p1504_p6 = pnand %p772_p1, %p203_p4  ;;  %s71_s7 = sadd.s32 1, %s1300_s17 }
  0x3b   : > { %p36_p7 = scmp.ge.s32.totalorder %s35_s6, 2  ;;  %p78_p10 = scmp.ne.s32.totalorder %s1300_s17, %s1296_s16 }
  0x3c   : > { %p84_p12 = scmp.ne.s32.totalorder %s1296_s16, %s1292_s15  ;;  %s99_s26 = sadd.s32 1, %s1288_s14 }
  0x3d   : > { %s1900_s6 = smov (%p36_p7, %s35_s6), 0  ;;  %s1860_s28 = sadd.s32 1, %s1328_s24 }
  0x3e   : > { %1859 = sst [smem:[#allocation16_spill]] %s1900_s6  ;;  %s1902_s28 = smov (!%p36_p7, %s1860_s28), %s1328_s24 }
  0x3f   : > { %s68_s10 = ssub.s32 %s1324_s23, %s1900_s6  ;;  %p1861_p8 = scmp.eq.s32.totalorder %s1332_s25, 0 }
  0x40   : > { %p40_p9 = scmp.ge.s32.totalorder %s1902_s28, 2  ;;  %p69_p11 = scmp.eq.s32.totalorder %s68_s10, 0 }
  0x41   : > { %p1525_p5 = por %p78_p10, %p1861_p8  ;;  %p1531_p13 = por %p84_p12, %p1440_p3 }
  0x42   : > { %p109_p0 = scmp.ne.s32.totalorder %s1288_s14, %s1284_s13  ;;  %s1904_s28 = smov (%p40_p9, %s1902_s28), 0 }
  0x43   : > { %s1863_s15 = scalar_select %p1531_p13, 1, 0 }
  0x44   : > { %1864 = sst [smem:[#allocation17_spill]] %s1904_s28  ;;  %s42_s9 = ssub.s32 %s1328_s24, %s1904_s28 }
  0x45   : > { %s1540_s27 = scalar_select %p69_p11, %s1300_s17, %s71_s7  }
  0x46   : > { %p1866_p2 = scmp.ne.s32.totalorder %s1854_s30, 0  ;;  %p43_p4 = scmp.eq.s32.totalorder %s42_s9, 0 }
  0x47   : > { %1865 = sst [smem:[#allocation18_spill]] %s1540_s27  ;;  %s96_s29 = sor.u32 %s68_s10, %s42_s9 }
  0x48   : > { %p1546_p1 = por %p1866_p2, %p109_p0  ;;  %p97_p3 = scmp.eq.s32.totalorder %s96_s29, 0 }
  0x49   : > { %p115_p7 = scmp.ne.s32.totalorder %s1284_s13, %s1280_s12  ;;  %s1869_s0 = sadd.s32 1, %s1312_s20 }
  0x4a   : > { %s1867_s8 = scalar_select %p1546_p1, 1, 0 }
  0x4b   : > { %s1555_s6 = scalar_select %p43_p4, %s1312_s20, %s1869_s0  }
  0x4c   : > { %1868 = sst [smem:[#allocation19_spill]] %s1867_s8  ;;  %p116_p10 = scmp.eq.s32.totalorder %s764_s5, 3 }
  0x4d   : > { %s1558_s3 = scalar_select %p97_p3, %s1288_s14, %s99_s26  }
  0x4e   : > { %s185_s7 = sand.u32 1, %s1300_s17   ;;  %p1561_p12 = por %p116_p10, %p115_p7 }
  0x4f   : > { %s770_s27 = sshll.u32 %s185_s7, 6  ;;  %s771_s28 = sshll.u32 %s1324_s23, 6 }
  0x50   : > { %s1870_s30 = scalar_select %p1561_p12, 1, 0 }
  0x51   : > { %s189_s24 = scalar_lea.vmem [#allocation5], %s770_s27  ;;  %s1569_s10 = scalar_lea.hbm %s1831_s1, %s771_s28 }
  0x52   : > { %s195_s2 = sshll.u32 %s189_s24, 4  ;;  %p1871_p8 = scmp.lt.s32.totalorder %s1332_s25, 4  ;;  %s1571_s2 = int_to_ptr.vmem [resolvable:$true] %s195_s2 }
  0x53   : > { %s1581_s24 = scalar_lea.sflag [#allocation6], %s185_s7  ;;  %s1120_s5 = scalar_lea.hbm %s1569_s10, 1024 }
  0x54   : > { %p1577_p9 = pnand %p1871_p8, %p1525_p5  ;;  %p1121_p11 = scmp.ne.s32.totalorder %s1569_s10, %s1120_s5 }
  0x55   : > { %s1125_s26 = scalar_lea.hbm %s1831_s1, 2048  ;;  %p1126_p5 = scmp.lt.u32.totalorder %s1569_s10, %s1831_s1 }
  0x56   : > { %p1122_p0 = pneg %p1577_p9  ;;  %p1127_p3 = scmp.lt.u32.totalorder %s1125_s26, %s1120_s5 }
  0x57   : > { %p1129_p10 = scmp.lt.u32.totalorder %s1120_s5, %s1569_s10 }
  0x58   : > { %p1123_p2 = pnand %p1122_p0, %p1121_p11  ;;  %p1128_p7 = por %p1127_p3, %p1126_p5 }
  0x5a   : > { %p1124_p4 = pneg %p1123_p2  ;;  %p1130_p8 = por %p1129_p10, %p1128_p7 }
  0x5c   : > { %p1131_p12 = pnand %p1130_p8, %p1124_p4 }
  0x5e   : > { %1134 = shalt.err (!%p1131_p12)
}
  0x5f   : > { %s1135_s27 = scalar_lea.vmem %s1571_s2, 1024  ;;  %s1337_s9 = smov [#allocation5]  }
  0x60   : > { %p1136_p11 = scmp.ne.s32.totalorder %s1571_s2, %s1135_s27  ;;  %s1140_s29 = sshll.u32 %s1337_s9, 4  ;;  %s1141_s29 = int_to_ptr.vmem [resolvable:$false] %s1140_s29 }
  0x61   : > { %s1142_s7 = scalar_lea.vmem %s1141_s29, 2048  ;;  %p1143_p13 = scmp.lt.s32.totalorder %s1571_s2, %s1141_s29 }
  0x62   : > { %p1138_p2 = pnand %p1136_p11, %p1122_p0  ;;  %p1144_p5 = scmp.lt.s32.totalorder %s1142_s7, %s1135_s27 }
  0x64   : > { %p1139_p1 = pneg %p1138_p2  ;;  %p1145_p3 = por %p1144_p5, %p1143_p13 }
  0x66   : > { %p1146_p7 = pnand %p1145_p3, %p1139_p1 }
  0x68   : > { %1149 = shalt.err (!%p1146_p7)
}
  0x69   : > { %s1338_s5 = smov 64   ;;  %s1339_s21 = smov 4  }
  0x6a   : > { %s1873_s8 = smov 128   ;;  %207 = sbr.rel (%p1504_p6) target bundleno = 436 (0x1b4), region = 28 }
  0x6b   : > { %953 = dma.hbm_to_vmem [thread:$0]  (!%p1577_p9), %s1569_s10, 1024, %s1571_s2, %s1581_s24, %s1873_s8, %s1338_s5, %s1339_s21  }
  0x6c   : > { %s209_s26 = sand.u32 (!%p1504_p6), 1, %s1308_s19   ;;  %p1874_p13 = scmp.ne.s32.totalorder (!%p1504_p6), %s1855_s4, 0 }
  0x6d   : > { %s773_s28 = sshll.u32 (!%p1504_p6), %s209_s26, 7  ;;  %s210_s18 = scalar_lea.sflag (!%p1504_p6), [#allocation3], %s209_s26 }
  0x6e   : > { %s1613_s27 = scalar_lea.vmem (!%p1504_p6), [#allocation2], %s773_s28 }
  0x71   : > { %1263 = dma.done.wait (%p1874_p13), %s210_s18, 2048  }
  0x72   : > { %1265 = vsyncadd (%p1874_p13), %s210_s18, 4294965248  ;;  %s218_s0 = sand.u32 1, %s1296_s16   ;;  %p1875_p6 = scmp.ne.s32.totalorder %s1863_s15, 0 }
  0x73   : > { %s774_s9 = sshll.u32 %s218_s0, 6  ;;  %s219_s2 = scalar_lea.sflag [#allocation6], %s218_s0 }
  0x74   : > { %s1620_s10 = scalar_lea.vmem [#allocation5], %s774_s9 }
  0x75   : > { %1267 = dma.done.wait (%p1875_p6), %s219_s2, 1024  }
  0x76   : > { %1269 = vsyncadd (%p1875_p6), %s219_s2, 4294966272  ;;  %v1082_v0 = vld [vmem:[%s1620_s10] sm:$0xff]   ;;  %v1083_v1 = vld [vmem:[%s1620_s10 + $0x8] sm:$0xff]   ;;  %s1651_s4 = sand.u32 1, %s1284_s13   ;;  %s1876_s15 = sld [smem:[#allocation14_spill]] }
  0x77   : > { %891 = vmatprep.subr.bf16.mxu0 %v1082_v0  ;;  %923 = vmatprep.subr.bf16.mxu1 %v1082_v0  ;;  %v1084_v2 = vld [vmem:[%s1620_s10 + $0x10] sm:$0xff]   ;;  %v1085_v3 = vld [vmem:[%s1620_s10 + $0x18] sm:$0xff]   ;;  %v258_v4 = vld [vmem:[%s1613_s27] sm:$0xff]  ;;  %s775_s11 = sshll.u32 %s1651_s4, 6  ;;  %s827_s24 = sshll.u32 %s1320_s22, 5 }
  0x78   : > { %892 = vmatpush3.bf16.msra.mxu0 %v1082_v0  ;;  %931 = vmatpush3.bf16.msra.mxu1 %v1082_v0  ;;  %v259_v5 = vld [vmem:[%s1613_s27 + $0x8] sm:$0xff]  ;;  %v266_v7 = vld [vmem:[%s1613_s27 + $0x40] sm:$0xff]  ;;  %v1088_v12 = vld [vmem:[%s1620_s10 + $0x30] sm:$0xff]   ;;  %s1667_s29 = scalar_lea.vmem [#allocation7], %s775_s11  ;;  %s1877_s8 = sld [smem:[#allocation19_spill]] }
  0x79   : > { %893 = vmatprep.subr.bf16.mxu0 %v1083_v1  ;;  %924 = vmatprep.subr.bf16.mxu1 %v1083_v1  ;;  %v274_v6 = vpack.c.bf16 %v259_v5, %v258_v4  ;;  %v267_v8 = vld [vmem:[%s1613_s27 + $0x48] sm:$0xff]  ;;  %v1086_v9 = vld [vmem:[%s1620_s10 + $0x20] sm:$0xff]   ;;  %v1089_v13 = vld [vmem:[%s1620_s10 + $0x38] sm:$0xff]   ;;  %s605_s5 = sshll.u32 %s1667_s29, 4  ;;  %s1878_s18 = sld [smem:[#allocation21_spill]]  ;;  %s1681_s5 = int_to_ptr.vmem [resolvable:$true] %s605_s5 }
  0x7a   : > { %v278_v10 = vpack.c.bf16 %v267_v8, %v266_v7  ;;  %v1087_v11 = vld [vmem:[%s1620_s10 + $0x28] sm:$0xff]   ;;  %v260_v14 = vld [vmem:[%s1613_s27 + $0x10] sm:$0xff]  ;;  %v261_v15 = vld [vmem:[%s1613_s27 + $0x18] sm:$0xff]  ;;  %s585_s9 = scalar_lea.sflag [#allocation4], %s1651_s4  ;;  %s1150_s2 = scalar_lea.vmem %s1681_s5, 1024 }
  0x7b   : > { %907 = vmatprep.mubr.bf16.mxu0 %v274_v6  ;;  %v262_v16 = vld [vmem:[%s1613_s27 + $0x20] sm:$0xff]  ;;  %v268_v17 = vld [vmem:[%s1613_s27 + $0x50] sm:$0xff]  ;;  %v269_v18 = vld [vmem:[%s1613_s27 + $0x58] sm:$0xff]  ;;  %v275_v22 = vpack.c.bf16 %v261_v15, %v260_v14  ;;  %p1151_p1 = scmp.ne.s32.totalorder %s1681_s5, %s1150_s2  ;;  %s1340_s10 = smov [#allocation7]  }
  0x7c   : > { %894 = vmatpush3.bf16.msra.mxu0 %v1083_v1  ;;  %932 = vmatpush3.bf16.msra.mxu1 %v1083_v1  ;;  %v263_v19 = vld [vmem:[%s1613_s27 + $0x28] sm:$0xff]  ;;  %v270_v20 = vld [vmem:[%s1613_s27 + $0x60] sm:$0xff]  ;;  %v279_v23 = vpack.c.bf16 %v269_v18, %v268_v17  ;;  %v264_v26 = vld [vmem:[%s1613_s27 + $0x30] sm:$0xff]  ;;  %s602_s7 = sadd.s32 %s1876_s15, %s827_s24  ;;  %s1154_s11 = sshll.u32 %s1340_s10, 4  ;;  %s1155_s11 = int_to_ptr.vmem [resolvable:$false] %s1154_s11 }
  0x7d   : > { %895 = vmatprep.subr.bf16.mxu0 %v1084_v2  ;;  %925 = vmatprep.subr.bf16.mxu1 %v1084_v2  ;;  %v271_v21 = vld [vmem:[%s1613_s27 + $0x68] sm:$0xff]  ;;  %v276_v24 = vpack.c.bf16 %v263_v19, %v262_v16  ;;  %v265_v27 = vld [vmem:[%s1613_s27 + $0x38] sm:$0xff]  ;;  %v272_v28 = vld [vmem:[%s1613_s27 + $0x70] sm:$0xff]  ;;  %s805_s21 = sshll.u32 %s602_s7, 6  ;;  %s1156_s24 = scalar_lea.vmem %s1155_s11, 2048 }
  0x7e   : > { %915 = vmatprep.mubr.bf16.mxu1 %v278_v10  ;;  %v280_v25 = vpack.c.bf16 %v271_v21, %v270_v20  ;;  %v273_v29 = vld [vmem:[%s1613_s27 + $0x78] sm:$0xff]  ;;  %v277_v30 = vpack.c.bf16 %v265_v27, %v264_v26  ;;  %p1880_p12 = scmp.ne.s32.totalorder %s1877_s8, 0  ;;  %p1157_p4 = scmp.lt.s32.totalorder %s1681_s5, %s1155_s11 }
  0x7f   : > { %v281_v31 = vpack.c.bf16 %v273_v29, %v272_v28  ;;  %s1879_s27 = smov %s1878_s18  ;;  %s1694_s0 = scalar_lea.hbm %s1878_s18, %s805_s21 }
  0x80   : > { %896 = vmatpush3.bf16.msra.mxu0 %v1084_v2  ;;  %933 = vmatpush3.bf16.msra.mxu1 %v1084_v2  ;;  %p1152_p9 = pnand %p1151_p1, %p1880_p12  ;;  %p1158_p10 = scmp.lt.s32.totalorder %s1156_s24, %s1150_s2 }
  0x81   : > { %897 = vmatprep.subr.bf16.mxu0 %v1085_v3  ;;  %926 = vmatprep.subr.bf16.mxu1 %v1085_v3 }
  0x82   : > { %p1153_p0 = pneg %p1152_p9  ;;  %p1159_p8 = por %p1158_p10, %p1157_p4 }
  0x84   : > { %898 = vmatpush3.bf16.msra.mxu0 %v1085_v3  ;;  %934 = vmatpush3.bf16.msra.mxu1 %v1085_v3  ;;  %p1160_p11 = pnand %p1159_p8, %p1153_p0 }
  0x85   : > { %899 = vmatprep.subr.bf16.mxu0 %v1086_v9  ;;  %927 = vmatprep.subr.bf16.mxu1 %v1086_v9 }
  0x88   : > { %900 = vmatpush3.bf16.msra.mxu0 %v1086_v9  ;;  %935 = vmatpush3.bf16.msra.mxu1 %v1086_v9 }
  0x89   : > { %901 = vmatprep.subr.bf16.mxu0 %v1087_v11  ;;  %928 = vmatprep.subr.bf16.mxu1 %v1087_v11 }
  0x8c   : > { %902 = vmatpush3.bf16.msra.mxu0 %v1087_v11  ;;  %936 = vmatpush3.bf16.msra.mxu1 %v1087_v11 }
  0x8d   : > { %903 = vmatprep.subr.bf16.mxu0 %v1088_v12  ;;  %929 = vmatprep.subr.bf16.mxu1 %v1088_v12 }
  0x90   : > { %904 = vmatpush3.bf16.msra.mxu0 %v1088_v12  ;;  %937 = vmatpush3.bf16.msra.mxu1 %v1088_v12 }
  0x91   : > { %905 = vmatprep.subr.bf16.mxu0 %v1089_v13  ;;  %930 = vmatprep.subr.bf16.mxu1 %v1089_v13 }
  0x94   : > { %906 = vmatpush3.bf16.msra.mxu0 %v1089_v13  ;;  %938 = vmatpush3.bf16.msra.mxu1 %v1089_v13 }
  0x97   : > { %908 = vmatmul.mubr.bf16.vlgmr.msra.gmra.mrb[0].mxu0 %v275_v22  ;;  %916 = vmatmul.mubr.bf16.vlgmr.msra.gmra.mrb[0].mxu1 %v279_v23 }
  0x98   : > { %911 = vmatprep.mubr.bf16.mxu0 %v276_v24  ;;  %919 = vmatprep.mubr.bf16.mxu1 %v280_v25 }
  0x9f   : > { %912 = vmatmul.mubr.bf16.gmra.mrb[4].mxu0 %v277_v30  ;;  %920 = vmatmul.mubr.bf16.gmra.mrb[4].mxu1 %v281_v31 }
 0x16a   : > { %v909_v32 = vpop.f32.mrb[0].mxu0  ;;  %v1654_v33 = vpop.f32.mrb[0].mxu1 }
 0x16b   : > { %v380_v34 = vpop.f32.mrb[1].mxu0  ;;  %v1656_v35 = vpop.f32.mrb[1].mxu1  ;;  %v546_v47 = vmul.f32 %v909_v32, %v909_v32 }
 0x16c   : > { %v910_v36 = vpop.f32.mrb[2].mxu0  ;;  %v1658_v37 = vpop.f32.mrb[2].mxu1  ;;  %v544_v38 = vmul.f32 %v380_v34, %v380_v34  ;;  %v552_v13 = vmul.f32 %v1656_v35, %v1656_v35 }
 0x16d   : > { %v836_v39 = vpack.c.bf16 %v910_v36, %v909_v32  ;;  %v383_v40 = vpop.f32.mrb[3].mxu0  ;;  %v856_v41 = vpack.c.bf16 %v1658_v37, %v1654_v33  ;;  %v1662_v42 = vpop.f32.mrb[3].mxu1  ;;  %v547_v50 = vmul.f32 %v910_v36, %v910_v36 }
 0x16e   : > { %v831_v43 = vpack.c.bf16 %v383_v40, %v380_v34  ;;  %v523_v44 = vadd.f32 %v383_v40, %v380_v34  ;;  %v545_v45 = vmul.f32 %v383_v40, %v383_v40  ;;  %v851_v46 = vpack.c.bf16 %v1662_v42, %v1656_v35 }
 0x16f   : > { %868 = vst [vmem:[%s1667_s29 + $0x8] sm:$0xff] %v836_v39   ;;  %872 = vst [vmem:[%s1667_s29 + $0x28] sm:$0xff] %v856_v41  }
 0x170   : > { %832 = vst [vmem:[%s1667_s29] sm:$0xff] %v831_v43   ;;  %v524_v48 = vadd.f32 %v909_v32, %v523_v44  ;;  %v560_v49 = vadd.f32 %v545_v45, %v544_v38  ;;  %871 = vst [vmem:[%s1667_s29 + $0x20] sm:$0xff] %v851_v46  }
 0x172   : > { %v561_v51 = vadd.f32 %v560_v49, %v546_v47  ;;  %v913_v52 = vpop.f32.mrb[4].mxu0  ;;  %v525_v53 = vadd.f32 %v910_v36, %v524_v48  ;;  %v1675_v54 = vpop.f32.mrb[4].mxu1 }
 0x173   : > { %v396_v55 = vpop.f32.mrb[5].mxu0  ;;  %v1677_v56 = vpop.f32.mrb[5].mxu1  ;;  %v550_v7 = vmul.f32 %v913_v52, %v913_v52 }
 0x174   : > { %v526_v57 = vadd.f32 %v525_v53, %v396_v55  ;;  %v548_v58 = vmul.f32 %v396_v55, %v396_v55  ;;  %v562_v59 = vadd.f32 %v561_v51, %v547_v50  ;;  %v914_v60 = vpop.f32.mrb[6].mxu0  ;;  %v1679_v61 = vpop.f32.mrb[6].mxu1 }
 0x175   : > { %v846_v62 = vpack.c.bf16 %v914_v60, %v913_v52  ;;  %v399_v63 = vpop.f32.mrb[7].mxu0  ;;  %v866_v0 = vpack.c.bf16 %v1679_v61, %v1675_v54  ;;  %v1685_v1 = vpop.f32.mrb[7].mxu1  ;;  %v551_v10 = vmul.f32 %v914_v60, %v914_v60 }
 0x176   : > { %v563_v2 = vadd.f32 %v562_v59, %v548_v58  ;;  %v841_v3 = vpack.c.bf16 %v399_v63, %v396_v55  ;;  %v527_v4 = vadd.f32 %v526_v57, %v399_v63  ;;  %v549_v5 = vmul.f32 %v399_v63, %v399_v63 }
 0x177   : > { %870 = vst [vmem:[%s1667_s29 + $0x18] sm:$0xff] %v846_v62   ;;  %874 = vst [vmem:[%s1667_s29 + $0x38] sm:$0xff] %v866_v0   ;;  %v861_v6 = vpack.c.bf16 %v1685_v1, %v1677_v56 }
 0x178   : > { %869 = vst [vmem:[%s1667_s29 + $0x10] sm:$0xff] %v841_v3   ;;  %v528_v8 = vadd.f32 %v913_v52, %v527_v4  ;;  %v564_v9 = vadd.f32 %v563_v2, %v549_v5 }
 0x179   : > { %873 = vst [vmem:[%s1667_s29 + $0x30] sm:$0xff] %v861_v6  }
 0x17a   : > { %v565_v11 = vadd.f32 %v564_v9, %v550_v7  ;;  %v529_v12 = vadd.f32 %v914_v60, %v528_v8 }
 0x17b   : > { %1163 = shalt.err (!%p1160_p11)
}
 0x17c   : > { %s1164_s29 = scalar_lea.hbm %s1694_s0, 1024  ;;  %s1168_s26 = scalar_lea.hbm %s1879_s27, 4096 }
 0x17d   : > { %p1165_p2 = scmp.ne.s32.totalorder %s1694_s0, %s1164_s29  ;;  %p1169_p7 = scmp.lt.u32.totalorder %s1694_s0, %s1879_s27 }
 0x17e   : > { %p1170_p13 = scmp.lt.u32.totalorder %s1168_s26, %s1164_s29  ;;  %p1172_p1 = scmp.lt.u32.totalorder %s1164_s29, %s1694_s0 }
 0x17f   : > { %p1166_p5 = pnand %p1165_p2, %p1880_p12 }
 0x180   : > { %p1171_p6 = por %p1170_p13, %p1169_p7 }
 0x181   : > { %p1167_p3 = pneg %p1166_p5 }
 0x182   : > { %p1173_p9 = por %p1172_p1, %p1171_p6 }
 0x184   : > { %p1174_p0 = pnand %p1173_p9, %p1167_p3 }
 0x186   : > { %1177 = shalt.err (!%p1174_p0)
}
 0x187   : > { %s1341_s2 = smov 64   ;;  %s1342_s10 = smov 128   ;;  %v530_v14 = vadd.f32 %v529_v12, %v1656_v35  ;;  %v566_v15 = vadd.f32 %v565_v11, %v551_v10  ;;  %v553_v18 = vmul.f32 %v1662_v42, %v1662_v42  ;;  %v554_v19 = vmul.f32 %v1654_v33, %v1654_v33 }
 0x188   : > { %s1343_s11 = smov 4   ;;  %v555_v22 = vmul.f32 %v1658_v37, %v1658_v37  ;;  %v556_v25 = vmul.f32 %v1677_v56, %v1677_v56  ;;  %v557_v30 = vmul.f32 %v1685_v1, %v1685_v1  ;;  %v558_v31 = vmul.f32 %v1675_v54, %v1675_v54  ;;  %s1881_s28 = sld [smem:[#allocation22_spill]] }
 0x189   : > { %943 = dma.vmem_to_hbm [thread:$0]  (%p1880_p12), %s1681_s5, 1024, %s1694_s0, %s585_s9, %s1341_s2, %s1342_s10, %s1343_s11   ;;  %v567_v16 = vadd.f32 %v566_v15, %v552_v13  ;;  %v531_v17 = vadd.f32 %v530_v14, %v1662_v42  ;;  %v559_v34 = vmul.f32 %v1679_v61, %v1679_v61  ;;  %vm581_vm0 = vcmask 1040384  }
 0x18a   : > { %s776_s5 = sshll.u32 %s1651_s4, 1  ;;  %s806_s0 = sshll.u32 %s1320_s22, 1 }
 0x18b   : > { %v532_v20 = vadd.f32 %v1654_v33, %v531_v17  ;;  %v568_v21 = vadd.f32 %v567_v16, %v553_v18  ;;  %s619_s9 = sadd.s32 %s1876_s15, %s806_s0  ;;  %s254_s29 = scalar_lea.vmem [#allocation8], %s776_s5 }
 0x18c   : > { %s807_s24 = sshll.u32 %s619_s9, 5  ;;  %s623_s7 = sshll.u32 %s254_s29, 4  ;;  %s1754_s7 = int_to_ptr.vmem [resolvable:$true] %s623_s7 }
 0x18d   : > { %v569_v23 = vadd.f32 %v568_v21, %v554_v19  ;;  %v533_v24 = vadd.f32 %v1658_v37, %v532_v20  ;;  %s590_s22 = scalar_lea.sflag [#allocation9], %s1651_s4  ;;  %s1178_s15 = scalar_lea.vmem %s1754_s7, 32 }
 0x18e   : > { %s1752_s18 = scalar_lea.hbm %s1881_s28, %s807_s24  ;;  %p1179_p4 = scmp.ne.s32.totalorder %s1754_s7, %s1178_s15 }
 0x18f   : > { %v534_v26 = vadd.f32 %v533_v24, %v1677_v56  ;;  %v570_v27 = vadd.f32 %v569_v23, %v555_v22  ;;  %s1344_s2 = smov [#allocation8]  }
 0x190   : > { %p1180_p10 = pnand %p1179_p4, %p1880_p12  ;;  %s1182_s10 = sshll.u32 %s1344_s2, 4  ;;  %s1183_s10 = int_to_ptr.vmem [resolvable:$false] %s1182_s10 }
 0x191   : > { %v571_v28 = vadd.f32 %v570_v27, %v556_v25  ;;  %v535_v29 = vadd.f32 %v534_v26, %v1685_v1  ;;  %s1184_s11 = scalar_lea.vmem %s1183_s10, 64  ;;  %p1185_p11 = scmp.lt.s32.totalorder %s1754_s7, %s1183_s10 }
 0x192   : > { %p1181_p8 = pneg %p1180_p10  ;;  %p1186_p2 = scmp.lt.s32.totalorder %s1184_s11, %s1178_s15 }
 0x193   : > { %v536_v32 = vadd.f32 %v1675_v54, %v535_v29  ;;  %v572_v33 = vadd.f32 %v571_v28, %v557_v30 }
 0x194   : > { %p1187_p5 = por %p1186_p2, %p1185_p11 }
 0x195   : > { %v537_v35 = vadd.f32 %v1679_v61, %v536_v32  ;;  %v573_v36 = vadd.f32 %v572_v33, %v558_v31 }
 0x196   : > { %p1188_p3 = pnand %p1187_p5, %p1181_p8 }
 0x197   : > { %v538_v37 = vrot.slane %v537_v35, 4  ;;  %v574_v38 = vadd.f32 %v573_v36, %v559_v34 }
 0x199   : > { %v539_v39 = vadd.f32 %v538_v37, %v537_v35  ;;  %v575_v40 = vrot.slane %v574_v38, 4 }
 0x19b   : > { %v540_v41 = vrot.slane %v539_v39, 2  ;;  %v576_v42 = vadd.f32 %v575_v40, %v574_v38 }
 0x19d   : > { %v541_v43 = vadd.f32 %v540_v41, %v539_v39  ;;  %v577_v44 = vrot.slane %v576_v42, 2 }
 0x19f   : > { %v542_v45 = vrot.slane %v541_v43, 1  ;;  %v578_v46 = vadd.f32 %v577_v44, %v576_v42 }
 0x1a1   : > { %v579_v47 = vrot.slane %v578_v46, 1  ;;  %v543_v48 = vadd.f32 %v542_v45, %v541_v43 }
 0x1a3   : > { %v580_v49 = vadd.f32 %v579_v47, %v578_v46 }
 0x1a5   : > { %v582_v50 = vsel %vm581_vm0, %v543_v48, %v580_v49 }
 0x1a6   : > { %583 = vst [vmem:[%s254_s29] sm:$0x3] %v582_v50 }
 0x1a7   : > { %1191 = shalt.err (!%p1188_p3)
}
 0x1a8   : > { %s1192_s4 = scalar_lea.hbm %s1752_s18, 32  ;;  %s1196_s9 = scalar_lea.hbm %s1881_s28, 128 }
 0x1a9   : > { %p1193_p7 = scmp.ne.s32.totalorder %s1752_s18, %s1192_s4  ;;  %p1197_p1 = scmp.lt.u32.totalorder %s1752_s18, %s1881_s28 }
 0x1aa   : > { %p1198_p9 = scmp.lt.u32.totalorder %s1196_s9, %s1192_s4  ;;  %p1200_p4 = scmp.lt.u32.totalorder %s1192_s4, %s1752_s18 }
 0x1ab   : > { %p1194_p13 = pnand %p1193_p7, %p1880_p12 }
 0x1ac   : > { %p1199_p0 = por %p1198_p9, %p1197_p1 }
 0x1ad   : > { %p1195_p6 = pneg %p1194_p13 }
 0x1ae   : > { %p1201_p10 = por %p1200_p4, %p1199_p0 }
 0x1b0   : > { %p1202_p8 = pnand %p1201_p10, %p1195_p6 }
 0x1b2   : > { %1205 = shalt.err (!%p1202_p8)
}
 0x1b3   : > { %944 = dma.vmem_to_hbm [thread:$0]  (%p1880_p12), %s1754_s7, 32, %s1752_s18, %s590_s22  }
 0x1b4 PF: > { %p962_p11 = scmp.ge.s32.totalorder %s1332_s25, 2  ;;  %s635_s21 = sand.u32 1, %s1280_s12  }
 0x1b5   : > { %p1882_p2 = scmp.ne.s32.totalorder %s1870_s30, 0  ;;  %s636_s26 = scalar_lea.sflag [#allocation4], %s635_s21 }
 0x1b7   : > { %p955_p5 = pnand %p962_p11, %p1882_p2 }
 0x1b9   : > { %1271 = dma.done.wait (!%p955_p5), %s636_s26, 1024  }
 0x1ba   : > { %1273 = vsyncadd (!%p955_p5), %s636_s26, 4294966272  ;;  %s645_s15 = scalar_lea.sflag [#allocation9], %s635_s21 }
 0x1bb   : > { %1275 = dma.done.wait (!%p955_p5), %s645_s15, 32  }
 0x1bc   : > { %1277 = vsyncadd (!%p955_p5), %s645_s15, 4294967264  ;;  %s26_s25 = sadd.s32 1, %s1332_s25   ;;  %s1884_s7 = sld [smem:[#allocation18_spill]] }
 0x1bd   : > { %p1783_p3 = scmp.ge.s32.totalorder %s26_s25, 6   ;;  %s1885_s22 = sld [smem:[#allocation15_spill]] }
 0x1be   : > { %s1886_s30 = sld [smem:[#allocation16_spill]]  ;;  %s1887_s24 = sld [smem:[#allocation17_spill]] }
 0x1bf   : > { %s1888_s12 = smov %s1284_s13  ;;  %s1889_s13 = smov %s1288_s14 }
 0x1c0   : > { %s1890_s14 = smov %s1558_s3  ;;  %s1891_s15 = smov %s1296_s16 }
 0x1c1   : > { %s1892_s16 = smov %s1300_s17  ;;  %s1894_s18 = smov %s1308_s19 }
 0x1c2   : > { %s1893_s17 = smov %s1884_s7  ;;  %s1895_s19 = smov %s1312_s20 }
 0x1c3   : > { %s1896_s20 = smov %s1555_s6  ;;  %s1897_s21 = smov %s1324_s23 }
 0x1c4   : > { %s1898_s23 = smov %s1886_s30  ;;  %25 = sbr.rel (!%p1783_p3) target bundleno = 18 (0x12), region = 103 }
 0x1cb   :  { %650 = vsyncpa [#allocation3], 1 }
 0x1cc   :  { %652 = vsyncpa [#allocation3 + $0x1], 1 }
 0x1cd   :  { %653 = vsyncpa [#allocation6], 1 }
 0x1ce   :  { %655 = vsyncpa [#allocation6 + $0x1], 1 }
 0x1cf   :  { %656 = vsyncpa [#allocation4], 1 }
 0x1d0   :  { %658 = vsyncpa [#allocation4 + $0x1], 1 }
 0x1d1   :  { %659 = vsyncpa [#allocation9], 1 }
 0x1d2   :  { %661 = vsyncpa [#allocation9 + $0x1], 1 }

// kernel: projection_mlp.4
= control target key start
LH: loop header
LB: loop body
LE: loop exit
PB: predicated region body
PF: predicated region fallthrough
CT: control target
= control target key end

     0   :  { %s2550_s0 = inlined_call_operand.hbm [shape: bf16[256,256], index: 0, kind: input, shape index: {}]   ;;  %s2551_s1 = inlined_call_operand.hbm [shape: f32[1,256], index: 1, kind: input, shape index: {}]   ;;  %s2552_s2 = inlined_call_operand.hbm [shape: f32[1,256], index: 2, kind: input, shape index: {}]   ;;  %s2553_s3 = inlined_call_operand.hbm [shape: bf16[256,256], index: 3, kind: input, shape index: {}]   ;;  %s2554_s4 = inlined_call_operand.hbm [shape: bf16[256,256], index: 4, kind: output, shape index: {0}]   ;;  %s2555_s5 = inlined_call_operand.hbm [shape: f32[2,2,256], index: 5, kind: output, shape index: {1}]  }
   0x1   :  { %2574 = sst [smem:[#allocation25_spill]] %s2550_s0 }
   0x2   :  { %2575 = sst [smem:[#allocation26_spill]] %s2551_s1 }
   0x3   :  { %2576 = sst [smem:[#allocation27_spill]] %s2552_s2 }
   0x4   :  { %2577 = sst [smem:[#allocation28_spill]] %s2554_s4 }
   0x5   :  { %2578 = sst [smem:[#allocation29_spill]] %s2555_s5 }
   0x6   :  { %11 = vsyncpa [#allocation3], 0 }
   0x7   :  { %13 = vsyncpa [#allocation3 + $0x1], 0 }
   0x8   :  { %14 = vsyncpa [#allocation6], 0 }
   0x9   :  { %15 = vsyncpa [#allocation9], 0 }
   0xa   :  { %17 = vsyncpa [#allocation9 + $0x1], 0 }
   0xb   :  { %18 = vsyncpa [#allocation4], 0 }
   0xc   :  { %20 = vsyncpa [#allocation4 + $0x1], 0 }
   0xd   :  { %21 = vsyncpa [#allocation12], 0 }
   0xe   :  { %23 = vsyncpa [#allocation12 + $0x1], 0  ;;  %s1919_s18 = smov 0   ;;  %s1921_s19 = smov 0  }
   0xf   :  { %s1923_s20 = smov 0   ;;  %s1925_s21 = smov 0  }
  0x10   :  { %s1927_s22 = smov 0   ;;  %s1929_s23 = smov 0  }
  0x11   :  { %s1931_s24 = smov 0   ;;  %s1933_s25 = smov 0  }
  0x12   :  { %s1935_s26 = smov 0   ;;  %s1937_s27 = smov 0  }
  0x13   :  { %s1939_s28 = smov 0   ;;  %s1941_s29 = smov 0  }
  0x14   :  { %s1943_s30 = smov 0   ;;  %s1945_s6 = smov 0  }
  0x15 LB: > { %2579 = sst [smem:[#allocation18_spill]] %s1822_s18  ;;  %s1185_s7 = sadd.s32 4294967295, %s1874_s6   ;;  %s1874_s6 = sphi %s1945_s6, %s29_s6   ;;  %s1870_s30 = sphi %s1943_s30, %s2633_s30   ;;  %s1866_s29 = sphi %s1941_s29, %s2632_s29   ;;  %s1862_s28 = sphi %s1939_s28, %s2631_s28   ;;  %s1858_s27 = sphi %s1937_s27, %s2630_s27   ;;  %s1854_s26 = sphi %s1935_s26, %s2629_s26   ;;  %s1850_s25 = sphi %s1933_s25, %s2628_s25   ;;  %s1846_s24 = sphi %s1931_s24, %s2627_s24   ;;  %s1842_s23 = sphi %s1929_s23, %s2626_s23   ;;  %s1838_s22 = sphi %s1927_s22, %s2625_s22   ;;  %s1834_s21 = sphi %s1925_s21, %s2624_s21   ;;  %s1830_s20 = sphi %s1923_s20, %s2623_s20   ;;  %s1826_s19 = sphi %s1921_s19, %s2622_s19   ;;  %s1822_s18 = sphi %s1919_s18, %s2621_s18  }
  0x16   : > { %2580 = sst [smem:[#allocation19_spill]] %s1858_s27  ;;  %s1186_s8 = sadd.s32 4294967294, %s1874_s6  }
  0x17   : > { %2581 = sst [smem:[#allocation20_spill]] %s1866_s29  ;;  %p61_p0 = scmp.ne.s32.totalorder %s1850_s25, %s1846_s24 }
  0x18   : > { %p1988_p1 = scmp.eq.s32.totalorder %s1185_s7, 0  ;;  %p129_p2 = scmp.ne.s32.totalorder %s1838_s22, %s1834_s21 }
  0x19   : > { %p154_p4 = scmp.ne.s32.totalorder %s1830_s20, %s1826_s19  ;;  %p155_p6 = scmp.eq.s32.totalorder %s1185_s7, 3 }
  0x1a   : > { %s2582_s9 = scalar_select %p1988_p1, 1, 0 }
  0x1b   : > { %p1996_p3 = por %p1988_p1, %p61_p0  ;;  %p2004_p5 = por %p129_p2, %p1988_p1 }
  0x1c   : > { %p160_p7 = scmp.ne.s32.totalorder %s1826_s19, %s1822_s18  ;;  %p161_p8 = scmp.eq.s32.totalorder %s1186_s8, 3 }
  0x1d   : > { %s2583_s11 = scalar_select %p1996_p3, 1, 0 }
  0x1e   : > { %s2584_s12 = scalar_select %p2004_p5, 1, 0 }
  0x1f   : > { %p2010_p9 = por %p155_p6, %p154_p4  ;;  %p1187_p10 = scmp.ge.s32.totalorder %s1874_s6, 1 }
  0x20   : > { %p2015_p11 = por %p161_p8, %p160_p7  ;;  %p196_p12 = scmp.lt.s32.totalorder %s1874_s6, 5 }
  0x21   : > { %s2585_s13 = scalar_select %p2010_p9, 1, 0 }
  0x22   : > { %s2587_s14 = scalar_select %p2015_p11, 1, 0 }
  0x23   : > { %2586 = sst [smem:[#allocation21_spill]] %s2585_s13  ;;  %p2020_p13 = pnand %p1187_p10, %p196_p12 }
  0x24   : > { %2588 = sst [smem:[#allocation22_spill]] %s2587_s14  ;;  %s1876_s16 = smov [#allocation5]  }
  0x25   : > { %s2589_s15 = scalar_select %p2020_p13, 1, 0 }
  0x26   : > { %s209_s17 = sshll.u32 %s1876_s16, 4  ;;  %p1408_p0 = pneg %p2020_p13  ;;  %s210_s17 = int_to_ptr.vmem [resolvable:$true] %s209_s17 }
  0x27   : > { %s1877_s21 = smov [#allocation7]   ;;  %s2591_s1 = sld [smem:[#allocation26_spill]] }
  0x28   : > { %s220_s24 = sshll.u32 %s1877_s21, 4  ;;  %p2028_p2 = pnand %p1408_p0, %p1988_p1  ;;  %s2032_s24 = int_to_ptr.vmem [resolvable:$true] %s220_s24 }
  0x2a   : > { %p1574_p6 = pneg %p2028_p2 }
  0x2d   : > { %s1572_s14 = scalar_lea.hbm %s2591_s1, 32 }
  0x2e   : > { %p1573_p4 = scmp.ne.s32.totalorder %s2591_s1, %s1572_s14  ;;  %p1579_p10 = scmp.lt.u32.totalorder %s1572_s14, %s2591_s1 }
  0x30   : > { %p1575_p7 = pnand %p1574_p6, %p1573_p4 }
  0x32   : > { %p1576_p8 = pneg %p1575_p7 }
  0x34   : > { %p1581_p12 = pnand %p1579_p10, %p1576_p8 }
  0x36   : > { %1584 = shalt.err (!%p1581_p12)
}
  0x37   : > { %s1585_s4 = scalar_lea.vmem %s210_s17, 32  ;;  %p1593_p5 = scmp.lt.s32.totalorder %s210_s17, %s210_s17 }
  0x38   : > { %p1586_p0 = scmp.ne.s32.totalorder %s210_s17, %s1585_s4  ;;  %p1594_p1 = scmp.lt.s32.totalorder %s1585_s4, %s1585_s4 }
  0x3a   : > { %p1588_p11 = pnand %p1586_p0, %p1574_p6  ;;  %p1595_p3 = por %p1594_p1, %p1593_p5 }
  0x3c   : > { %p1589_p9 = pneg %p1588_p11 }
  0x3e   : > { %p1596_p13 = pnand %p1595_p3, %p1589_p9 }
  0x40   : > { %1599 = shalt.err (!%p1596_p13)
}
  0x41   : > { %1411 = dma.hbm_to_vmem [thread:$0]  (!%p2028_p2), %s2591_s1, 32, %s210_s17, [#allocation6]  }
  0x42   : > { %s2592_s2 = sld [smem:[#allocation27_spill]] }
  0x48   : > { %s1600_s8 = scalar_lea.hbm %s2592_s2, 32 }
  0x49   : > { %p1601_p11 = scmp.ne.s32.totalorder %s2592_s2, %s1600_s8  ;;  %p1607_p5 = scmp.lt.u32.totalorder %s1600_s8, %s2592_s2 }
  0x4b   : > { %p1603_p1 = pnand %p1601_p11, %p1574_p6 }
  0x4d   : > { %p1604_p3 = pneg %p1603_p1 }
  0x4f   : > { %p1609_p9 = pnand %p1607_p5, %p1604_p3 }
  0x51   : > { %1612 = shalt.err (!%p1609_p9)
}
  0x52   : > { %s1613_s17 = scalar_lea.vmem %s2032_s24, 32  ;;  %p1621_p8 = scmp.lt.s32.totalorder %s2032_s24, %s2032_s24 }
  0x53   : > { %p1614_p13 = scmp.ne.s32.totalorder %s2032_s24, %s1613_s17  ;;  %p1622_p10 = scmp.lt.s32.totalorder %s1613_s17, %s1613_s17 }
  0x55   : > { %p1616_p4 = pnand %p1614_p13, %p1574_p6  ;;  %p1623_p12 = por %p1622_p10, %p1621_p8 }
  0x57   : > { %p1617_p7 = pneg %p1616_p4 }
  0x59   : > { %p1624_p0 = pnand %p1623_p12, %p1617_p7 }
  0x5b   : > { %1627 = shalt.err (!%p1624_p0)
}
  0x5c   : > { %1414 = dma.hbm_to_vmem [thread:$0]  (!%p2028_p2), %s2592_s2, 32, %s2032_s24, [#allocation6]  }
  0x5d   : > { %s41_s10 = sadd.s32 1, %s1870_s30  ;;  %p55_p6 = scmp.ne.s32.totalorder %s1854_s26, %s1850_s25 }
  0x5e   : > { %p56_p11 = scmp.eq.s32.totalorder %s1874_s6, 0  ;;  %p2568_p1 = scmp.lt.s32.totalorder %s1874_s6, 4 }
  0x5f   : > { %s231_s7 = sand.u32 1, %s1854_s26   ;;  %s1247_s8 = sshll.u32 %s1870_s30, 11 }
  0x60   : > { %p57_p3 = por %p56_p11, %p55_p6  ;;  %s1191_s14 = sshll.u32 %s231_s7, 7 }
  0x61   : > { %s2593_s0 = sld [smem:[#allocation25_spill]]  ;;  %s235_s24 = scalar_lea.vmem [#allocation2], %s1191_s14 }
  0x62   : > { %s243_s17 = sshll.u32 %s235_s24, 4  ;;  %p2098_p2 = pnand %p2568_p1, %p57_p3  ;;  %s2102_s17 = int_to_ptr.vmem [resolvable:$true] %s243_s17 }
  0x63   : > { %s2104_s18 = scalar_lea.sflag [#allocation3], %s231_s7 }
  0x64   : > { %p1630_p9 = pneg %p2098_p2 }
  0x67   : > { %s2094_s4 = scalar_lea.hbm %s2593_s0, %s1247_s8  ;;  %s1633_s21 = scalar_lea.hbm %s2593_s0, 4096 }
  0x68   : > { %s1628_s16 = scalar_lea.hbm %s2094_s4, 2048  ;;  %p1634_p7 = scmp.lt.u32.totalorder %s2094_s4, %s2593_s0 }
  0x69   : > { %p1629_p5 = scmp.ne.s32.totalorder %s2094_s4, %s1628_s16  ;;  %p1635_p8 = scmp.lt.u32.totalorder %s1633_s21, %s1628_s16 }
  0x6a   : > { %p1637_p12 = scmp.lt.u32.totalorder %s1628_s16, %s2094_s4 }
  0x6b   : > { %p1631_p13 = pnand %p1630_p9, %p1629_p5  ;;  %p1636_p10 = por %p1635_p8, %p1634_p7 }
  0x6d   : > { %p1632_p4 = pneg %p1631_p13  ;;  %p1638_p0 = por %p1637_p12, %p1636_p10 }
  0x6f   : > { %p1639_p6 = pnand %p1638_p0, %p1632_p4 }
  0x71   : > { %1642 = shalt.err (!%p1639_p6)
}
  0x72   : > { %s1643_s7 = scalar_lea.vmem %s2102_s17, 2048  ;;  %s1878_s14 = smov [#allocation2]  }
  0x73   : > { %p1644_p3 = scmp.ne.s32.totalorder %s2102_s17, %s1643_s7  ;;  %s1648_s8 = sshll.u32 %s1878_s14, 4  ;;  %s1649_s8 = int_to_ptr.vmem [resolvable:$false] %s1648_s8 }
  0x74   : > { %s1650_s5 = scalar_lea.vmem %s1649_s8, 4096  ;;  %p1651_p1 = scmp.lt.s32.totalorder %s2102_s17, %s1649_s8 }
  0x75   : > { %p1646_p5 = pnand %p1644_p3, %p1630_p9  ;;  %p1652_p7 = scmp.lt.s32.totalorder %s1650_s5, %s1643_s7 }
  0x77   : > { %p1647_p13 = pneg %p1646_p5  ;;  %p1653_p8 = por %p1652_p7, %p1651_p1 }
  0x79   : > { %p1654_p10 = pnand %p1653_p8, %p1647_p13 }
  0x7b   : > { %1657 = shalt.err (!%p1654_p10)
}
  0x7c   : > { %s2569_s16 = smov 128   ;;  %s1880_s21 = smov 8  }
  0x7d   : > { %1418 = dma.hbm_to_vmem [thread:$0]  (!%p2098_p2), %s2094_s4, 2048, %s2102_s17, %s2104_s18, %s2569_s16, %s2569_s16, %s1880_s21  }
  0x7e   : > { %s38_s24 = sadd.s32 1, %s1866_s29  ;;  %s116_s7 = sadd.s32 1, %s1842_s23 }
  0x7f   : > { %p39_p1 = scmp.ge.s32.totalorder %s38_s24, 2  ;;  %p123_p9 = scmp.ne.s32.totalorder %s1842_s23, %s1838_s22 }
  0x80   : > { %s253_s14 = sand.u32 1, %s1842_s23   ;;  %s1196_s8 = sshll.u32 %s1866_s29, 6 }
  0x81   : > { %s2635_s24 = smov (%p39_p1, %s38_s24), 0  ;;  %s2637_s10 = smov (!%p39_p1, %s41_s10), %s1870_s30 }
  0x82   : > { %2595 = sst [smem:[#allocation23_spill]] %s2635_s24  ;;  %s113_s13 = ssub.s32 %s1866_s29, %s2635_s24 }
  0x83   : > { %p2149_p2 = por %p123_p9, %p56_p11  ;;  %p43_p4 = scmp.ge.s32.totalorder %s2637_s10, 2 }
  0x84   : > { %p114_p12 = scmp.eq.s32.totalorder %s113_s13, 0  ;;  %s1195_s17 = sshll.u32 %s253_s14, 7 }
  0x85   : > { %s2639_s10 = smov (%p43_p4, %s2637_s10), 0  ;;  %s2163_s1 = scalar_lea.hbm %s2553_s3, %s1196_s8 }
  0x86   : > { %2597 = sst [smem:[#allocation24_spill]] %s2639_s10  ;;  %s45_s5 = ssub.s32 %s1870_s30, %s2639_s10 }
  0x87   : > { %s2156_s18 = scalar_select %p114_p12, %s1842_s23, %s116_s7  }
  0x88   : > { %p46_p0 = scmp.eq.s32.totalorder %s45_s5, 0  ;;  %s141_s21 = sor.u32 %s113_s13, %s45_s5 }
  0x89   : > { %p142_p6 = scmp.eq.s32.totalorder %s141_s21, 0  ;;  %s2598_s2 = sadd.s32 1, %s1854_s26 }
  0x8a   : > { %s2168_s24 = scalar_select %p46_p0, %s1854_s26, %s2598_s2  }
  0x8b   : > { %s2599_s29 = sadd.s32 1, %s1830_s20  ;;  %s257_s7 = scalar_lea.vmem [#allocation8], %s1195_s17 }
  0x8c   : > { %s2173_s27 = scalar_select %p142_p6, %s1830_s20, %s2599_s29  }
  0x8d   : > { %s263_s10 = sshll.u32 %s257_s7, 4  ;;  %p2600_p11 = scmp.lt.s32.totalorder %s1874_s6, 4  ;;  %s2183_s10 = int_to_ptr.vmem [resolvable:$true] %s263_s10 }
  0x8e   : > { %s2185_s0 = scalar_lea.sflag [#allocation9], %s253_s14  ;;  %s1658_s2 = scalar_lea.hbm %s2163_s1, 2048 }
  0x8f   : > { %p2179_p3 = pnand %p2600_p11, %p2149_p2  ;;  %p1659_p5 = scmp.ne.s32.totalorder %s2163_s1, %s1658_s2 }
  0x90   : > { %s1663_s8 = scalar_lea.hbm %s2553_s3, 4096  ;;  %p1664_p10 = scmp.lt.u32.totalorder %s2163_s1, %s2553_s3 }
  0x91   : > { %p1660_p13 = pneg %p2179_p3  ;;  %p1665_p1 = scmp.lt.u32.totalorder %s1663_s8, %s1658_s2 }
  0x92   : > { %p1667_p2 = scmp.lt.u32.totalorder %s1658_s2, %s2163_s1 }
  0x93   : > { %p1661_p7 = pnand %p1660_p13, %p1659_p5  ;;  %p1666_p9 = por %p1665_p1, %p1664_p10 }
  0x95   : > { %p1662_p8 = pneg %p1661_p7  ;;  %p1668_p4 = por %p1667_p2, %p1666_p9 }
  0x97   : > { %p1669_p12 = pnand %p1668_p4, %p1662_p8 }
  0x99   : > { %1672 = shalt.err (!%p1669_p12)
}
  0x9a   : > { %s1673_s14 = scalar_lea.vmem %s2183_s10, 2048  ;;  %s1881_s5 = smov [#allocation8]  }
  0x9b   : > { %p1674_p0 = scmp.ne.s32.totalorder %s2183_s10, %s1673_s14  ;;  %s1678_s21 = sshll.u32 %s1881_s5, 4  ;;  %s1679_s21 = int_to_ptr.vmem [resolvable:$false] %s1678_s21 }
  0x9c   : > { %s1680_s7 = scalar_lea.vmem %s1679_s21, 4096  ;;  %p1681_p5 = scmp.lt.s32.totalorder %s2183_s10, %s1679_s21 }
  0x9d   : > { %p1676_p6 = pnand %p1674_p0, %p1660_p13  ;;  %p1682_p7 = scmp.lt.s32.totalorder %s1680_s7, %s1673_s14 }
  0x9f   : > { %p1677_p11 = pneg %p1676_p6  ;;  %p1683_p10 = por %p1682_p7, %p1681_p5 }
  0xa1   : > { %p1684_p1 = pnand %p1683_p10, %p1677_p11 }
  0xa3   : > { %1687 = shalt.err (!%p1684_p1)
}
  0xa4   : > { %s1882_s2 = smov 64   ;;  %s1883_s29 = smov 4  }
  0xa5   : > { %s2602_s16 = smov 128   ;;  %p2603_p13 = scmp.ne.s32.totalorder %s2589_s15, 0 }
  0xa6   : > { %1421 = dma.hbm_to_vmem [thread:$0]  (!%p2179_p3), %s2163_s1, 2048, %s2183_s10, %s2185_s0, %s2602_s16, %s1882_s2, %s1883_s29  }
  0xa7   : > { %275 = sbr.rel (%p2603_p13) target bundleno = 515 (0x203), region = 36  ;;  %s277_s8 = sand.u32 (!%p2603_p13), 1, %s1850_s25  }
  0xa8   : > { %s1198_s4 = sshll.u32 (!%p2603_p13), %s277_s8, 7  ;;  %s278_s17 = scalar_lea.sflag (!%p2603_p13), [#allocation3], %s277_s8 }
  0xa9   : > { %s2217_s14 = scalar_lea.vmem (!%p2603_p13), [#allocation2], %s1198_s4  ;;  %p2604_p8 = scmp.ne.s32.totalorder (!%p2603_p13), %s2583_s11, 0 }
  0xae   : > { %1801 = dma.done.wait (%p2604_p8), %s278_s17, 2048  }
  0xaf   : > { %1803 = vsyncadd (%p2604_p8), %s278_s17, 4294965248  ;;  %p2605_p9 = scmp.ne.s32.totalorder %s2582_s9, 0 }
  0xb1   : > { %1805 = dma.done.wait (%p2605_p9), [#allocation6], 64  }
  0xb2   : > { %1807 = vsyncadd (%p2605_p9), [#allocation6], 4294967232  ;;  %s294_s1 = sand.u32 1, %s1838_s22   ;;  %p2606_p3 = scmp.ne.s32.totalorder %s2584_s12, 0 }
  0xb3   : > { %s1201_s15 = sshll.u32 %s294_s1, 7  ;;  %s295_s10 = scalar_lea.sflag [#allocation9], %s294_s1 }
  0xb4   : > { %s2228_s13 = scalar_lea.vmem [#allocation8], %s1201_s15 }
  0xb5   : > { %1809 = dma.done.wait (%p2606_p3), %s295_s10, 2048  }
  0xb6   : > { %1811 = vsyncadd (%p2606_p3), %s295_s10, 4294965248  ;;  %v1556_v0 = vld [vmem:[%s2228_s13 + $0x40] sm:$0xff]   ;;  %v1558_v2 = vld [vmem:[%s2228_s13 + $0x48] sm:$0xff]   ;;  %v388_v5 = vlaneseq  ;;  %s1236_s9 = sshll.u32 %s1862_s28, 7  ;;  %s2352_s11 = sand.u32 1, %s1826_s19  }
  0xb7   : > { %v1557_v1 = vld [vmem:[%s2228_s13] sm:$0xff]   ;;  %1312 = vmatprep.subr.bf16.mxu0 %v1556_v0  ;;  %1376 = vmatprep.subr.bf16.mxu1 %v1556_v0  ;;  %v1559_v3 = vld [vmem:[%s2228_s13 + $0x8] sm:$0xff]   ;;  %v1560_v4 = vld [vmem:[%s2228_s13 + $0x50] sm:$0xff]   ;;  %s1202_s12 = sshll.u32 %s2352_s11, 6  ;;  %s1264_s5 = sshll.u32 %s1862_s28, 5 }
  0xb8   : > { %1313 = vmatpush3.bf16.msra.mxu0 %v1557_v1  ;;  %1384 = vmatpush3.bf16.msra.mxu1 %v1557_v1  ;;  %v1561_v6 = vld [vmem:[%s2228_s13 + $0x10] sm:$0xff]   ;;  %v1562_v7 = vld [vmem:[%s2228_s13 + $0x58] sm:$0xff]   ;;  %v2241_v8 = vshrl.u32 %v388_v5, 7  ;;  %v1564_v10 = vld [vmem:[%s2228_s13 + $0x60] sm:$0xff]   ;;  %s2362_s0 = scalar_lea.vmem [#allocation10], %s1202_s12  ;;  %s2607_s21 = sld [smem:[#allocation19_spill]] }
  0xb9   : > { %1314 = vmatprep.subr.bf16.mxu0 %v1558_v2  ;;  %1377 = vmatprep.subr.bf16.mxu1 %v1558_v2  ;;  %v1563_v9 = vld [vmem:[%s2228_s13 + $0x18] sm:$0xff]   ;;  %v1565_v12 = vld [vmem:[%s2228_s13 + $0x20] sm:$0xff]   ;;  %v1566_v14 = vld [vmem:[%s2228_s13 + $0x68] sm:$0xff]   ;;  %s1008_s2 = sshll.u32 %s2362_s0, 4  ;;  %s2608_s16 = sld [smem:[#allocation21_spill]]  ;;  %s2423_s2 = int_to_ptr.vmem [resolvable:$true] %s1008_s2 }
  0xba   : > { %v390_v11 = vsub.s32 0, %v2241_v8  ;;  %v394_v13 = vsub.s32 1, %v2241_v8  ;;  %v338_v15 = vld [vmem:[%s2217_s14] sm:$0xff]  ;;  %v339_v16 = vld [vmem:[%s2217_s14 + $0x8] sm:$0xff]  ;;  %v340_v23 = vld [vmem:[%s2217_s14 + $0x10] sm:$0xff]  ;;  %s2609_s17 = sld [smem:[#allocation28_spill]] }
  0xbb   : > { %v386_v17 = vld [vmem:[#allocation5] sm:$0x3]  ;;  %v354_v18 = vunpack.c.l.bf16 %v338_v15  ;;  %v355_v19 = vunpack.c.h.bf16 %v338_v15  ;;  %v356_v20 = vunpack.c.l.bf16 %v339_v16  ;;  %v357_v21 = vunpack.c.h.bf16 %v339_v16  ;;  %v430_v22 = vld [vmem:[#allocation7] sm:$0x3]  ;;  %v341_v24 = vld [vmem:[%s2217_s14 + $0x18] sm:$0xff]  ;;  %s988_s1 = scalar_lea.sflag [#allocation4], %s2352_s11 }
  0xbc   : > { %1315 = vmatpush3.bf16.msra.mxu0 %v1559_v3  ;;  %1385 = vmatpush3.bf16.msra.mxu1 %v1559_v3  ;;  %v2253_v25 = vrot.slane %v386_v17, %v390_v11  ;;  %v2255_v26 = vrot.slane %v386_v17, %v394_v13  ;;  %v2257_v27 = vrot.slane %v430_v22, %v390_v11  ;;  %v1567_v29 = vld [vmem:[%s2228_s13 + $0x28] sm:$0xff]   ;;  %v359_v30 = vunpack.c.h.bf16 %v340_v23  ;;  %v1568_v34 = vld [vmem:[%s2228_s13 + $0x70] sm:$0xff]   ;;  %v346_v39 = vld [vmem:[%s2217_s14 + $0x40] sm:$0xff]  ;;  %s1688_s15 = scalar_lea.vmem %s2423_s2, 1024  ;;  %s1884_s10 = smov [#allocation10]  }
  0xbd   : > { %1316 = vmatprep.subr.bf16.mxu0 %v1560_v4  ;;  %1378 = vmatprep.subr.bf16.mxu1 %v1560_v4  ;;  %v2259_v28 = vrot.slane %v430_v22, %v394_v13  ;;  %v361_v31 = vunpack.c.h.bf16 %v341_v24  ;;  %v358_v32 = vunpack.c.l.bf16 %v340_v23  ;;  %v360_v33 = vunpack.c.l.bf16 %v341_v24  ;;  %v1569_v48 = vld [vmem:[%s2228_s13 + $0x30] sm:$0xff]   ;;  %v347_v52 = vld [vmem:[%s2217_s14 + $0x48] sm:$0xff]  ;;  %v1570_v54 = vld [vmem:[%s2228_s13 + $0x78] sm:$0xff]   ;;  %p1689_p2 = scmp.ne.s32.totalorder %s2423_s2, %s1688_s15 }
  0xbe   : > { %v399_v35 = vmul.f32 %v2255_v26, %v355_v19  ;;  %v401_v36 = vmul.f32 %v2255_v26, %v357_v21  ;;  %v398_v37 = vmul.f32 %v2253_v25, %v354_v18  ;;  %v400_v38 = vmul.f32 %v2253_v25, %v356_v20  ;;  %v342_v62 = vld [vmem:[%s2217_s14 + $0x20] sm:$0xff]  ;;  %v343_v63 = vld [vmem:[%s2217_s14 + $0x28] sm:$0xff]  ;;  %v348_v22 = vld [vmem:[%s2217_s14 + $0x50] sm:$0xff]  ;;  %s2407_s7 = sadd.s32 %s2607_s21, %s1264_s5 }
  0xbf   : > { %v403_v40 = vmul.f32 %v2255_v26, %v359_v30  ;;  %v405_v41 = vmul.f32 %v2255_v26, %v361_v31  ;;  %v402_v42 = vmul.f32 %v2253_v25, %v358_v32  ;;  %v404_v43 = vmul.f32 %v2253_v25, %v360_v33  ;;  %v1571_v4 = vld [vmem:[%s2228_s13 + $0x38] sm:$0xff]   ;;  %s1241_s29 = sshll.u32 %s2407_s7, 6  ;;  %p2610_p4 = scmp.ne.s32.totalorder %s2608_s16, 0 }
  0xc0   : > { %1317 = vmatpush3.bf16.msra.mxu0 %v1561_v6  ;;  %1386 = vmatpush3.bf16.msra.mxu1 %v1561_v6  ;;  %v443_v44 = vadd.f32 %v2259_v28, %v399_v35  ;;  %v445_v45 = vadd.f32 %v2259_v28, %v401_v36  ;;  %v442_v46 = vadd.f32 %v2257_v27, %v398_v37  ;;  %v370_v53 = vunpack.c.l.bf16 %v346_v39  ;;  %v349_v31 = vld [vmem:[%s2217_s14 + $0x58] sm:$0xff]  ;;  %s1692_s13 = sshll.u32 %s1884_s10, 4  ;;  %s1693_s13 = int_to_ptr.vmem [resolvable:$false] %s1692_s13 }
  0xc1   : > { %1318 = vmatprep.subr.bf16.mxu0 %v1562_v7  ;;  %1379 = vmatprep.subr.bf16.mxu1 %v1562_v7  ;;  %v444_v47 = vadd.f32 %v2257_v27, %v400_v38  ;;  %v447_v49 = vadd.f32 %v2259_v28, %v403_v40  ;;  %v449_v50 = vadd.f32 %v2259_v28, %v405_v41  ;;  %v371_v2 = vunpack.c.h.bf16 %v346_v39  ;;  %p1690_p12 = pnand %p1689_p2, %p2610_p4  ;;  %p1695_p6 = scmp.lt.s32.totalorder %s2423_s2, %s1693_s13 }
  0xc2   : > { %v2280_v51 = vadd.f32 %v2257_v27, %v402_v42  ;;  %v475_v55 = vmax.f32 %v443_v44, 0.0  ;;  %v477_v56 = vmax.f32 %v445_v45, 0.0  ;;  %v474_v57 = vmax.f32 %v442_v46, 0.0  ;;  %v344_v44 = vld [vmem:[%s2217_s14 + $0x30] sm:$0xff]  ;;  %v345_v45 = vld [vmem:[%s2217_s14 + $0x38] sm:$0xff] }
  0xc3   : > { %v476_v58 = vmax.f32 %v444_v47, 0.0  ;;  %v479_v59 = vmax.f32 %v447_v49, 0.0  ;;  %v481_v60 = vmax.f32 %v449_v50, 0.0  ;;  %v448_v61 = vadd.f32 %v2257_v27, %v404_v43  ;;  %p1691_p0 = pneg %p1690_p12 }
  0xc4   : > { %1319 = vmatpush3.bf16.msra.mxu0 %v1563_v9  ;;  %1387 = vmatpush3.bf16.msra.mxu1 %v1563_v9  ;;  %v507_v0 = vpack.c.bf16 %v477_v56, %v475_v55  ;;  %v478_v1 = vmax.f32 %v2280_v51, 0.0  ;;  %v372_v3 = vunpack.c.l.bf16 %v347_v52  ;;  %v373_v7 = vunpack.c.h.bf16 %v347_v52 }
  0xc5   : > { %1320 = vmatprep.subr.bf16.mxu0 %v1564_v10  ;;  %1380 = vmatprep.subr.bf16.mxu1 %v1564_v10  ;;  %v506_v5 = vpack.c.bf16 %v476_v58, %v474_v57  ;;  %v509_v6 = vpack.c.bf16 %v481_v60, %v479_v59  ;;  %v414_v9 = vmul.f32 %v2253_v25, %v370_v53  ;;  %v365_v13 = vunpack.c.h.bf16 %v343_v63 }
  0xc6   : > { %682 = vmatprep.mubr.bf16.mxu0 %v507_v0  ;;  %v415_v10 = vmul.f32 %v2255_v26, %v371_v2  ;;  %v416_v11 = vmul.f32 %v2253_v25, %v372_v3  ;;  %v417_v15 = vmul.f32 %v2255_v26, %v373_v7  ;;  %v362_v17 = vunpack.c.l.bf16 %v342_v62  ;;  %v351_v7 = vld [vmem:[%s2217_s14 + $0x68] sm:$0xff] }
  0xc7   : > { %v458_v16 = vadd.f32 %v2257_v27, %v414_v9  ;;  %v409_v21 = vmul.f32 %v2255_v26, %v365_v13  ;;  %v375_v39 = vunpack.c.h.bf16 %v348_v22  ;;  %v377_v43 = vunpack.c.h.bf16 %v349_v31 }
  0xc8   : > { %1321 = vmatpush3.bf16.msra.mxu0 %v1565_v12  ;;  %1388 = vmatpush3.bf16.msra.mxu1 %v1565_v12  ;;  %v363_v12 = vunpack.c.h.bf16 %v342_v62  ;;  %v459_v18 = vadd.f32 %v2259_v28, %v415_v10  ;;  %v460_v19 = vadd.f32 %v2257_v27, %v416_v11  ;;  %v461_v23 = vadd.f32 %v2259_v28, %v417_v15  ;;  %v350_v62 = vld [vmem:[%s2217_s14 + $0x60] sm:$0xff] }
  0xc9   : > { %1322 = vmatprep.subr.bf16.mxu0 %v1566_v14  ;;  %1381 = vmatprep.subr.bf16.mxu1 %v1566_v14  ;;  %v480_v14 = vmax.f32 %v448_v61, 0.0  ;;  %v490_v24 = vmax.f32 %v458_v16, 0.0  ;;  %v406_v30 = vmul.f32 %v2253_v25, %v362_v17  ;;  %v453_v35 = vadd.f32 %v2259_v28, %v409_v21 }
  0xca   : > { %v407_v20 = vmul.f32 %v2255_v26, %v363_v12  ;;  %v491_v32 = vmax.f32 %v459_v18, 0.0  ;;  %v492_v33 = vmax.f32 %v460_v19, 0.0  ;;  %v493_v36 = vmax.f32 %v461_v23, 0.0 }
  0xcb   : > { %v450_v38 = vadd.f32 %v2257_v27, %v406_v30  ;;  %v485_v42 = vmax.f32 %v453_v35, 0.0  ;;  %v508_v46 = vpack.c.bf16 %v480_v14, %v478_v1  ;;  %v419_v49 = vmul.f32 %v2255_v26, %v375_v39 }
  0xcc   : > { %1323 = vmatpush3.bf16.msra.mxu0 %v1567_v29  ;;  %1389 = vmatpush3.bf16.msra.mxu1 %v1567_v29  ;;  %v364_v29 = vunpack.c.l.bf16 %v343_v63  ;;  %v514_v40 = vpack.c.bf16 %v492_v33, %v490_v24  ;;  %v515_v47 = vpack.c.bf16 %v493_v36, %v491_v32  ;;  %v421_v51 = vmul.f32 %v2255_v26, %v377_v43 }
  0xcd   : > { %1324 = vmatprep.subr.bf16.mxu0 %v1568_v34  ;;  %1382 = vmatprep.subr.bf16.mxu1 %v1568_v34  ;;  %v451_v34 = vadd.f32 %v2259_v28, %v407_v20  ;;  %v482_v50 = vmax.f32 %v450_v38, 0.0  ;;  %v374_v52 = vunpack.c.l.bf16 %v348_v22  ;;  %v376_v53 = vunpack.c.l.bf16 %v349_v31  ;;  %v352_v20 = vld [vmem:[%s2217_s14 + $0x70] sm:$0xff] }
  0xce   : > { %v408_v37 = vmul.f32 %v2253_v25, %v364_v29  ;;  %714 = vmatprep.mubr.bf16.mxu1 %v515_v47  ;;  %v463_v55 = vadd.f32 %v2259_v28, %v419_v49  ;;  %v367_v56 = vunpack.c.h.bf16 %v344_v44  ;;  %v369_v57 = vunpack.c.h.bf16 %v345_v45  ;;  %v353_v29 = vld [vmem:[%s2217_s14 + $0x78] sm:$0xff]  ;;  %s2431_s14 = scalar_lea.hbm %s2609_s17, %s1241_s29 }
  0xcf   : > { %v483_v41 = vmax.f32 %v451_v34, 0.0  ;;  %v465_v58 = vadd.f32 %v2259_v28, %v421_v51  ;;  %v418_v59 = vmul.f32 %v2253_v25, %v374_v52  ;;  %v420_v60 = vmul.f32 %v2253_v25, %v376_v53 }
  0xd0   : > { %1325 = vmatpush3.bf16.msra.mxu0 %v1569_v48  ;;  %1390 = vmatpush3.bf16.msra.mxu1 %v1569_v48  ;;  %v452_v48 = vadd.f32 %v2257_v27, %v408_v37  ;;  %v366_v61 = vunpack.c.l.bf16 %v344_v44  ;;  %v495_v0 = vmax.f32 %v463_v55, 0.0  ;;  %v411_v1 = vmul.f32 %v2255_v26, %v367_v56 }
  0xd1   : > { %1326 = vmatprep.subr.bf16.mxu0 %v1570_v54  ;;  %1383 = vmatprep.subr.bf16.mxu1 %v1570_v54  ;;  %v511_v54 = vpack.c.bf16 %v485_v42, %v483_v41  ;;  %v413_v2 = vmul.f32 %v2255_v26, %v369_v57  ;;  %v497_v3 = vmax.f32 %v465_v58, 0.0  ;;  %v379_v12 = vunpack.c.h.bf16 %v350_v62 }
  0xd2   : > { %v484_v63 = vmax.f32 %v452_v48, 0.0  ;;  %v455_v9 = vadd.f32 %v2259_v28, %v411_v1  ;;  %v410_v11 = vmul.f32 %v2253_v25, %v366_v61  ;;  %v381_v19 = vunpack.c.h.bf16 %v351_v7 }
  0xd3   : > { %v457_v10 = vadd.f32 %v2259_v28, %v413_v2  ;;  %v517_v13 = vpack.c.bf16 %v497_v3, %v495_v0  ;;  %v423_v23 = vmul.f32 %v2255_v26, %v379_v12  ;;  %v378_v24 = vunpack.c.l.bf16 %v350_v62 }
  0xd4   : > { %1327 = vmatpush3.bf16.msra.mxu0 %v1571_v4  ;;  %1391 = vmatpush3.bf16.msra.mxu1 %v1571_v4  ;;  %v462_v4 = vadd.f32 %v2257_v27, %v418_v59  ;;  %v487_v17 = vmax.f32 %v455_v9, 0.0  ;;  %v454_v22 = vadd.f32 %v2257_v27, %v410_v11  ;;  %v510_v30 = vpack.c.bf16 %v484_v63, %v482_v50 }
  0xd5   : > { %v489_v18 = vmax.f32 %v457_v10, 0.0  ;;  %v425_v32 = vmul.f32 %v2255_v26, %v381_v19  ;;  %v380_v33 = vunpack.c.l.bf16 %v351_v7  ;;  %v467_v35 = vadd.f32 %v2259_v28, %v423_v23 }
  0xd6   : > { %v494_v14 = vmax.f32 %v462_v4, 0.0  ;;  %v422_v36 = vmul.f32 %v2253_v25, %v378_v24  ;;  %v383_v37 = vunpack.c.h.bf16 %v352_v20  ;;  %v382_v41 = vunpack.c.l.bf16 %v352_v20 }
  0xd7   : > { %683 = vmatmul.mubr.bf16.vlgmr.msra.gmra.mrb[0].mxu0 %v506_v5  ;;  %715 = vmatmul.mubr.bf16.vlgmr.msra.gmra.mrb[0].mxu1 %v514_v40  ;;  %v464_v5 = vadd.f32 %v2257_v27, %v420_v60  ;;  %v513_v34 = vpack.c.bf16 %v489_v18, %v487_v17  ;;  %v469_v38 = vadd.f32 %v2259_v28, %v425_v32  ;;  %v385_v40 = vunpack.c.h.bf16 %v353_v29 }
  0xd8   : > { %690 = vmatprep.mubr.bf16.mxu0 %v509_v6  ;;  %v368_v6 = vunpack.c.l.bf16 %v345_v45  ;;  %722 = vmatprep.mubr.bf16.mxu1 %v517_v13  ;;  %v424_v39 = vmul.f32 %v2253_v25, %v380_v33  ;;  %v486_v42 = vmax.f32 %v454_v22, 0.0  ;;  %v499_v43 = vmax.f32 %v467_v35, 0.0 }
  0xd9   : > { %v496_v15 = vmax.f32 %v464_v5, 0.0  ;;  %v466_v44 = vadd.f32 %v2257_v27, %v422_v36  ;;  %v427_v45 = vmul.f32 %v2255_v26, %v383_v37  ;;  %v429_v48 = vmul.f32 %v2255_v26, %v385_v40 }
  0xda   : > { %v412_v16 = vmul.f32 %v2253_v25, %v368_v6  ;;  %v468_v47 = vadd.f32 %v2257_v27, %v424_v39  ;;  %v384_v49 = vunpack.c.l.bf16 %v353_v29  ;;  %v426_v53 = vmul.f32 %v2253_v25, %v382_v41 }
  0xdb   : > { %v516_v21 = vpack.c.bf16 %v496_v15, %v494_v14  ;;  %v498_v51 = vmax.f32 %v466_v44, 0.0  ;;  %v471_v52 = vadd.f32 %v2259_v28, %v427_v45  ;;  %v473_v56 = vadd.f32 %v2259_v28, %v429_v48 }
  0xdc   : > { %v456_v31 = vadd.f32 %v2257_v27, %v412_v16  ;;  %v500_v55 = vmax.f32 %v468_v47, 0.0  ;;  %v428_v57 = vmul.f32 %v2253_v25, %v384_v49  ;;  %v470_v59 = vadd.f32 %v2257_v27, %v426_v53 }
  0xdd   : > { %v503_v58 = vmax.f32 %v471_v52, 0.0  ;;  %v505_v60 = vmax.f32 %v473_v56, 0.0  ;;  %v2346_v25 = vstv %s1236_s9  ;;  %v830_v2 = vadd.s32 8, %v2241_v8  ;;  %s1694_s9 = scalar_lea.vmem %s1693_s13, 2048 }
  0xde   : > { %v488_v50 = vmax.f32 %v456_v31, 0.0  ;;  %v518_v26 = vpack.c.bf16 %v500_v55, %v498_v51  ;;  %v472_v61 = vadd.f32 %v2257_v27, %v428_v57  ;;  %v502_v0 = vmax.f32 %v470_v59, 0.0  ;;  %p1696_p11 = scmp.lt.s32.totalorder %s1694_s9, %s1688_s15 }
  0xdf   : > { %691 = vmatmul.mubr.bf16.gmra.mrb[4].mxu0 %v508_v46  ;;  %723 = vmatmul.mubr.bf16.gmra.mrb[4].mxu1 %v516_v21  ;;  %v501_v46 = vmax.f32 %v469_v38, 0.0  ;;  %v521_v63 = vpack.c.bf16 %v505_v60, %v503_v58  ;;  %v846_v3 = vadd.s32 %v2346_v25, %v2241_v8  ;;  %v847_v27 = vadd.s32 %v2346_v25, %v830_v2 }
  0xe0   : > { %698 = vmatprep.mubr.bf16.mxu0 %v511_v54  ;;  %v512_v62 = vpack.c.bf16 %v488_v50, %v486_v42  ;;  %v504_v1 = vmax.f32 %v472_v61, 0.0  ;;  %v831_v6 = vadd.s32 16, %v2241_v8  ;;  %v832_v11 = vadd.s32 24, %v2241_v8  ;;  %p1697_p5 = por %p1696_p11, %p1695_p6 }
  0xe1   : > { %v519_v54 = vpack.c.bf16 %v501_v46, %v499_v43  ;;  %vm862_vm0 = vcmp.lt.s32.totalorder %v846_v3, 200  ;;  %vm863_vm1 = vcmp.lt.s32.totalorder %v847_v27, 200  ;;  %v834_v39 = vadd.s32 40, %v2241_v8 }
  0xe2   : > { %v520_v28 = vpack.c.bf16 %v504_v1, %v502_v0  ;;  %v848_v15 = vadd.s32 %v2346_v25, %v831_v6  ;;  %v849_v24 = vadd.s32 %v2346_v25, %v832_v11  ;;  %v837_v56 = vadd.s32 64, %v2241_v8  ;;  %p1698_p7 = pnand %p1697_p5, %p1691_p0 }
  0xe3   : > { %730 = vmatprep.mubr.bf16.mxu1 %v519_v54  ;;  %v851_v54 = vadd.s32 %v2346_v25, %v834_v39  ;;  %v835_v60 = vadd.s32 48, %v2241_v8  ;;  %v838_v61 = vadd.s32 72, %v2241_v8  ;;  %v836_v1 = vadd.s32 56, %v2241_v8 }
  0xe4   : > { %vm864_vm2 = vcmp.lt.s32.totalorder %v848_v15, 200  ;;  %vm865_vm3 = vcmp.lt.s32.totalorder %v849_v24, 200  ;;  %v854_v2 = vadd.s32 %v2346_v25, %v837_v56 }
  0xe5   : > { %vm867_vm5 = vcmp.lt.s32.totalorder %v851_v54, 200  ;;  %v855_v11 = vadd.s32 %v2346_v25, %v838_v61 }
  0xe6   : > { %vm870_vm7 = vcmp.lt.s32.totalorder %v854_v2, 200 }
  0xe7   : > { %699 = vmatmul.mubr.bf16.gmra.mrb[8].mxu0 %v510_v30  ;;  %731 = vmatmul.mubr.bf16.gmra.mrb[8].mxu1 %v518_v26  ;;  %vm871_vm8 = vcmp.lt.s32.totalorder %v855_v11, 200 }
  0xe8   : > { %706 = vmatprep.mubr.bf16.mxu0 %v513_v34  ;;  %738 = vmatprep.mubr.bf16.mxu1 %v521_v63  ;;  %v833_v34 = vadd.s32 32, %v2241_v8 }
  0xea   : > { %v850_v45 = vadd.s32 %v2346_v25, %v833_v34 }
  0xec   : > { %vm866_vm4 = vcmp.lt.s32.totalorder %v850_v45, 200 }
  0xef   : > { %707 = vmatmul.mubr.bf16.gmra.mrb[12].mxu0 %v512_v62  ;;  %739 = vmatmul.mubr.bf16.gmra.mrb[12].mxu1 %v520_v28 }
 0x1aa   : > { %v1328_v4 = vpop.f32.mrb[0].mxu0  ;;  %v1352_v14 = vpop.f32.mrb[0].mxu1 }
 0x1ab   : > { %v1329_v5 = vpop.f32.mrb[1].mxu0  ;;  %v1353_v16 = vpop.f32.mrb[1].mxu1 }
 0x1ac   : > { %v1330_v7 = vadd.f32 %v1329_v5, %v1328_v4  ;;  %v1331_v9 = vpop.f32.mrb[2].mxu0  ;;  %v2359_v19 = vadd.f32 %v1353_v16, %v1352_v14  ;;  %v1355_v20 = vpop.f32.mrb[2].mxu1  ;;  %v839_v4 = vadd.s32 80, %v2241_v8  ;;  %v853_v14 = vadd.s32 %v2346_v25, %v836_v1 }
 0x1ad   : > { %v1332_v10 = vpop.f32.mrb[3].mxu0  ;;  %v1356_v29 = vpop.f32.mrb[3].mxu1 }
 0x1ae   : > { %v910_v12 = vsel %vm862_vm0, %v1330_v7, 0.0  ;;  %v1333_v13 = vadd.f32 %v1332_v10, %v1331_v9  ;;  %v2365_v31 = vadd.f32 %v1356_v29, %v1355_v20  ;;  %v852_v9 = vadd.s32 %v2346_v25, %v835_v60 }
 0x1af   : > { %v947_v21 = vmul.f32 %v910_v12, %v910_v12  ;;  %vm869_vm9 = vcmp.lt.s32.totalorder %v853_v14, 200  ;;  %v844_v60 = vadd.s32 120, %v2241_v8 }
 0x1b0   : > { %v1268_v17 = vpack.c.bf16 %v1333_v13, %v1330_v7  ;;  %v911_v18 = vsel %vm863_vm1, %v1333_v13, 0.0  ;;  %v1288_v37 = vpack.c.bf16 %v2365_v31, %v2359_v19  ;;  %v840_v7 = vadd.s32 88, %v2241_v8 }
 0x1b1   : > { %v926_v22 = vadd.f32 %v911_v18, %v910_v12  ;;  %v948_v23 = vmul.f32 %v911_v18, %v911_v18  ;;  %vm868_vm6 = vcmp.lt.s32.totalorder %v852_v9, 200 }
 0x1b2   : > { %1269 = vst [vmem:[%s2362_s0] sm:$0xff] %v1268_v17   ;;  %v1334_v30 = vpop.f32.mrb[4].mxu0  ;;  %1308 = vst [vmem:[%s2362_s0 + $0x20] sm:$0xff] %v1288_v37   ;;  %v1358_v42 = vpop.f32.mrb[4].mxu1 }
 0x1b3   : > { %v963_v32 = vadd.f32 %v948_v23, %v947_v21  ;;  %v1335_v33 = vpop.f32.mrb[5].mxu0  ;;  %v1359_v46 = vpop.f32.mrb[5].mxu1 }
 0x1b4   : > { %v1336_v35 = vadd.f32 %v1335_v33, %v1334_v30  ;;  %v1337_v36 = vpop.f32.mrb[6].mxu0  ;;  %v2373_v49 = vadd.f32 %v1359_v46, %v1358_v42  ;;  %v1361_v50 = vpop.f32.mrb[6].mxu1  ;;  %v857_v30 = vadd.s32 %v2346_v25, %v840_v7  ;;  %v843_v42 = vadd.s32 112, %v2241_v8 }
 0x1b5   : > { %v1338_v38 = vpop.f32.mrb[7].mxu0  ;;  %v1362_v55 = vpop.f32.mrb[7].mxu1  ;;  %v918_v46 = vsel %vm870_vm7, %v2359_v19, 0.0 }
 0x1b6   : > { %v912_v40 = vsel %vm864_vm2, %v1336_v35, 0.0  ;;  %v1339_v41 = vadd.f32 %v1338_v38, %v1337_v36  ;;  %v2378_v58 = vadd.f32 %v1362_v55, %v1361_v50  ;;  %v841_v36 = vadd.s32 96, %v2241_v8 }
 0x1b7   : > { %v927_v43 = vadd.f32 %v926_v22, %v912_v40  ;;  %v949_v44 = vmul.f32 %v912_v40, %v912_v40  ;;  %v856_v22 = vadd.s32 %v2346_v25, %v839_v4  ;;  %vm873_vm11 = vcmp.lt.s32.totalorder %v857_v30, 200 }
 0x1b8   : > { %v1273_v47 = vpack.c.bf16 %v1339_v41, %v1336_v35  ;;  %v913_v48 = vsel %vm865_vm3, %v1339_v41, 0.0  ;;  %v1293_v0 = vpack.c.bf16 %v2378_v58, %v2373_v49  ;;  %v842_v41 = vadd.s32 104, %v2241_v8 }
 0x1b9   : > { %v964_v51 = vadd.f32 %v963_v32, %v949_v44  ;;  %v928_v52 = vadd.f32 %v927_v43, %v913_v48  ;;  %v950_v53 = vmul.f32 %v913_v48, %v913_v48  ;;  %vm872_vm10 = vcmp.lt.s32.totalorder %v856_v22, 200 }
 0x1ba   : > { %1305 = vst [vmem:[%s2362_s0 + $0x8] sm:$0xff] %v1273_v47   ;;  %v1340_v57 = vpop.f32.mrb[8].mxu0  ;;  %1309 = vst [vmem:[%s2362_s0 + $0x28] sm:$0xff] %v1293_v0   ;;  %v1364_v10 = vpop.f32.mrb[8].mxu1  ;;  %v858_v50 = vadd.s32 %v2346_v25, %v841_v36  ;;  %v860_v19 = vadd.s32 %v2346_v25, %v843_v42  ;;  %v955_v61 = vmul.f32 %v918_v46, %v918_v46  ;;  %v920_v1 = vsel %vm872_vm10, %v2373_v49, 0.0 }
 0x1bb   : > { %v965_v59 = vadd.f32 %v964_v51, %v950_v53  ;;  %v1341_v26 = vpop.f32.mrb[9].mxu0  ;;  %v1365_v15 = vpop.f32.mrb[9].mxu1  ;;  %v861_v49 = vadd.s32 %v2346_v25, %v844_v60 }
 0x1bc   : > { %v1342_v62 = vadd.f32 %v1341_v26, %v1340_v57  ;;  %v1343_v63 = vpop.f32.mrb[10].mxu0  ;;  %v2392_v20 = vadd.f32 %v1365_v15, %v1364_v10  ;;  %v1367_v21 = vpop.f32.mrb[10].mxu1  ;;  %v919_v57 = vsel %vm871_vm8, %v2365_v31, 0.0  ;;  %vm874_vm12 = vcmp.lt.s32.totalorder %v858_v50, 200 }
 0x1bd   : > { %v1344_v28 = vpop.f32.mrb[11].mxu0  ;;  %v1368_v24 = vpop.f32.mrb[11].mxu1  ;;  %v956_v31 = vmul.f32 %v919_v57, %v919_v57  ;;  %vm876_vm14 = vcmp.lt.s32.totalorder %v860_v19, 200 }
 0x1be   : > { %v914_v3 = vsel %vm866_vm4, %v1342_v62, 0.0  ;;  %v1345_v27 = vadd.f32 %v1344_v28, %v1343_v63  ;;  %v2397_v33 = vadd.f32 %v1368_v24, %v1367_v21 }
 0x1bf   : > { %v929_v5 = vadd.f32 %v928_v52, %v914_v3  ;;  %v951_v6 = vmul.f32 %v914_v3, %v914_v3  ;;  %v921_v3 = vsel %vm873_vm11, %v2378_v58, 0.0 }
 0x1c0   : > { %v1278_v12 = vpack.c.bf16 %v1345_v27, %v1342_v62  ;;  %v915_v13 = vsel %vm867_vm5, %v1345_v27, 0.0  ;;  %v1298_v38 = vpack.c.bf16 %v2397_v33, %v2392_v20  ;;  %v957_v27 = vmul.f32 %v920_v1, %v920_v1 }
 0x1c1   : > { %v966_v16 = vadd.f32 %v965_v59, %v951_v6  ;;  %v930_v17 = vadd.f32 %v929_v5, %v915_v13  ;;  %v952_v18 = vmul.f32 %v915_v13, %v915_v13  ;;  %v859_v59 = vadd.s32 %v2346_v25, %v842_v41 }
 0x1c2   : > { %1306 = vst [vmem:[%s2362_s0 + $0x10] sm:$0xff] %v1278_v12   ;;  %v1346_v23 = vpop.f32.mrb[12].mxu0  ;;  %1310 = vst [vmem:[%s2362_s0 + $0x30] sm:$0xff] %v1298_v38   ;;  %v1370_v45 = vpop.f32.mrb[12].mxu1  ;;  %v922_v6 = vsel %vm874_vm12, %v2392_v20, 0.0 }
 0x1c3   : > { %v967_v29 = vadd.f32 %v966_v16, %v952_v18  ;;  %v1347_v32 = vpop.f32.mrb[13].mxu0  ;;  %v1371_v51 = vpop.f32.mrb[13].mxu1  ;;  %vm875_vm13 = vcmp.lt.s32.totalorder %v859_v59, 200 }
 0x1c4   : > { %v1348_v34 = vadd.f32 %v1347_v32, %v1346_v23  ;;  %v1349_v35 = vpop.f32.mrb[14].mxu0  ;;  %v2414_v55 = vadd.f32 %v1371_v51, %v1370_v45  ;;  %v1373_v56 = vpop.f32.mrb[14].mxu1 }
 0x1c5   : > { %v1350_v37 = vpop.f32.mrb[15].mxu0  ;;  %v1374_v26 = vpop.f32.mrb[15].mxu1 }
 0x1c6   : > { %v916_v39 = vsel %vm868_vm6, %v1348_v34, 0.0  ;;  %v1351_v40 = vadd.f32 %v1350_v37, %v1349_v35  ;;  %v1375_v0 = vadd.f32 %v1374_v26, %v1373_v56 }
 0x1c7   : > { %v931_v43 = vadd.f32 %v930_v17, %v916_v39  ;;  %v953_v44 = vmul.f32 %v916_v39, %v916_v39 }
 0x1c8   : > { %v1283_v47 = vpack.c.bf16 %v1351_v40, %v1348_v34  ;;  %v917_v48 = vsel %vm869_vm9, %v1351_v40, 0.0  ;;  %v1303_v8 = vpack.c.bf16 %v1375_v0, %v2414_v55 }
 0x1c9   : > { %v968_v52 = vadd.f32 %v967_v29, %v953_v44  ;;  %v932_v53 = vadd.f32 %v931_v43, %v917_v48  ;;  %v954_v54 = vmul.f32 %v917_v48, %v917_v48 }
 0x1ca   : > { %1307 = vst [vmem:[%s2362_s0 + $0x18] sm:$0xff] %v1283_v47   ;;  %1311 = vst [vmem:[%s2362_s0 + $0x38] sm:$0xff] %v1303_v8  }
 0x1cb   : > { %v933_v62 = vadd.f32 %v932_v53, %v918_v46  ;;  %v969_v63 = vadd.f32 %v968_v52, %v954_v54 }
 0x1cd   : > { %v934_v28 = vadd.f32 %v933_v62, %v919_v57  ;;  %v970_v2 = vadd.f32 %v969_v63, %v955_v61 }
 0x1cf   : > { %v971_v4 = vadd.f32 %v970_v2, %v956_v31  ;;  %v935_v5 = vadd.f32 %v934_v28, %v920_v1 }
 0x1d0   : > { %1701 = shalt.err (!%p1698_p7)
}
 0x1d1   : > { %s1702_s12 = scalar_lea.hbm %s2431_s14, 1024  ;;  %s1706_s7 = scalar_lea.hbm %s2609_s17, 4096 }
 0x1d2   : > { %p1703_p10 = scmp.ne.s32.totalorder %s2431_s14, %s1702_s12  ;;  %p1707_p8 = scmp.lt.u32.totalorder %s2431_s14, %s2609_s17 }
 0x1d3   : > { %p1708_p9 = scmp.lt.u32.totalorder %s1706_s7, %s1702_s12  ;;  %p1710_p2 = scmp.lt.u32.totalorder %s1702_s12, %s2431_s14 }
 0x1d4   : > { %p1704_p1 = pnand %p1703_p10, %p2610_p4 }
 0x1d5   : > { %p1709_p3 = por %p1708_p9, %p1707_p8 }
 0x1d6   : > { %p1705_p13 = pneg %p1704_p1 }
 0x1d7   : > { %p1711_p12 = por %p1710_p2, %p1709_p3 }
 0x1d9   : > { %p1712_p0 = pnand %p1711_p12, %p1705_p13 }
 0x1db   : > { %1715 = shalt.err (!%p1712_p0)
}
 0x1dc   : > { %s1885_s4 = smov 64   ;;  %s1886_s15 = smov 128   ;;  %v958_v25 = vmul.f32 %v921_v3, %v921_v3  ;;  %v936_v58 = vadd.f32 %v935_v5, %v921_v3  ;;  %v972_v7 = vadd.f32 %v971_v4, %v957_v27  ;;  %v923_v9 = vsel %vm875_vm13, %v2397_v33, 0.0 }
 0x1dd   : > { %s1887_s10 = smov 4   ;;  %v924_v10 = vsel %vm876_vm14, %v2414_v55, 0.0  ;;  %v959_v12 = vmul.f32 %v922_v6, %v922_v6  ;;  %vm877_vm15 = vcmp.lt.s32.totalorder %v861_v49, 200  ;;  %v960_v16 = vmul.f32 %v923_v9, %v923_v9  ;;  %s2611_s7 = sld [smem:[#allocation29_spill]] }
 0x1de   : > { %1404 = dma.vmem_to_hbm [thread:$0]  (%p2610_p4), %s2423_s2, 1024, %s2431_s14, %s988_s1, %s1885_s4, %s1886_s15, %s1887_s10   ;;  %v937_v11 = vadd.f32 %v936_v58, %v922_v6  ;;  %v973_v13 = vadd.f32 %v972_v7, %v958_v25  ;;  %v961_v17 = vmul.f32 %v924_v10, %v924_v10  ;;  %v925_v18 = vsel %vm877_vm15, %v1375_v0, 0.0 }
 0x1df   : > { %v962_v24 = vmul.f32 %v925_v18, %v925_v18  ;;  %s1203_s2 = sshll.u32 %s2352_s11, 1  ;;  %s1242_s14 = sshll.u32 %s1862_s28, 1  ;;  %vm984_vm0 = vcmask 1040384  }
 0x1e0   : > { %v974_v14 = vadd.f32 %v973_v13, %v959_v12  ;;  %v938_v15 = vadd.f32 %v937_v11, %v923_v9  ;;  %s1022_s1 = sadd.s32 %s2607_s21, %s1242_s14  ;;  %s334_s9 = scalar_lea.vmem [#allocation11], %s1203_s2 }
 0x1e1   : > { %s1243_s13 = sshll.u32 %s1022_s1, 5  ;;  %s1026_s12 = sshll.u32 %s334_s9, 4  ;;  %s2474_s12 = int_to_ptr.vmem [resolvable:$true] %s1026_s12 }
 0x1e2   : > { %v975_v20 = vadd.f32 %v974_v14, %v960_v16  ;;  %v939_v21 = vadd.f32 %v938_v15, %v924_v10  ;;  %s993_s28 = scalar_lea.sflag [#allocation12], %s2352_s11  ;;  %s1716_s21 = scalar_lea.vmem %s2474_s12, 32 }
 0x1e3   : > { %s2472_s29 = scalar_lea.hbm %s2611_s7, %s1243_s13  ;;  %p1717_p6 = scmp.ne.s32.totalorder %s2474_s12, %s1716_s21 }
 0x1e4   : > { %v976_v22 = vadd.f32 %v975_v20, %v961_v17  ;;  %v940_v23 = vadd.f32 %v939_v21, %v925_v18  ;;  %s1888_s8 = smov [#allocation11]  }
 0x1e5   : > { %p1718_p11 = pnand %p1717_p6, %p2610_p4  ;;  %s1720_s4 = sshll.u32 %s1888_s8, 4  ;;  %s1721_s4 = int_to_ptr.vmem [resolvable:$false] %s1720_s4 }
 0x1e6   : > { %v941_v29 = vrot.slane %v940_v23, 4  ;;  %v977_v30 = vadd.f32 %v976_v22, %v962_v24  ;;  %s1722_s15 = scalar_lea.vmem %s1721_s4, 64  ;;  %p1723_p7 = scmp.lt.s32.totalorder %s2474_s12, %s1721_s4 }
 0x1e7   : > { %p1719_p5 = pneg %p1718_p11  ;;  %p1724_p10 = scmp.lt.s32.totalorder %s1722_s15, %s1716_s21 }
 0x1e8   : > { %v942_v32 = vadd.f32 %v941_v29, %v940_v23  ;;  %v978_v33 = vrot.slane %v977_v30, 4 }
 0x1e9   : > { %p1725_p1 = por %p1724_p10, %p1723_p7 }
 0x1ea   : > { %v943_v34 = vrot.slane %v942_v32, 2  ;;  %v979_v35 = vadd.f32 %v978_v33, %v977_v30 }
 0x1eb   : > { %p1726_p13 = pnand %p1725_p1, %p1719_p5 }
 0x1ec   : > { %v944_v36 = vadd.f32 %v943_v34, %v942_v32  ;;  %v980_v37 = vrot.slane %v979_v35, 2 }
 0x1ee   : > { %v945_v38 = vrot.slane %v944_v36, 1  ;;  %v981_v39 = vadd.f32 %v980_v37, %v979_v35 }
 0x1f0   : > { %v982_v40 = vrot.slane %v981_v39, 1  ;;  %v946_v41 = vadd.f32 %v945_v38, %v944_v36 }
 0x1f2   : > { %v983_v42 = vadd.f32 %v982_v40, %v981_v39 }
 0x1f4   : > { %v985_v43 = vsel %vm984_vm0, %v946_v41, %v983_v42 }
 0x1f5   : > { %986 = vst [vmem:[%s334_s9] sm:$0x3] %v985_v43 }
 0x1f6   : > { %1729 = shalt.err (!%p1726_p13)
}
 0x1f7   : > { %s1730_s11 = scalar_lea.hbm %s2472_s29, 32  ;;  %s1734_s14 = scalar_lea.hbm %s2611_s7, 128 }
 0x1f8   : > { %p1731_p8 = scmp.ne.s32.totalorder %s2472_s29, %s1730_s11  ;;  %p1735_p2 = scmp.lt.u32.totalorder %s2472_s29, %s2611_s7 }
 0x1f9   : > { %p1736_p12 = scmp.lt.u32.totalorder %s1734_s14, %s1730_s11  ;;  %p1738_p6 = scmp.lt.u32.totalorder %s1730_s11, %s2472_s29 }
 0x1fa   : > { %p1732_p9 = pnand %p1731_p8, %p2610_p4 }
 0x1fb   : > { %p1737_p0 = por %p1736_p12, %p1735_p2 }
 0x1fc   : > { %p1733_p3 = pneg %p1732_p9 }
 0x1fd   : > { %p1739_p11 = por %p1738_p6, %p1737_p0 }
 0x1ff   : > { %p1740_p5 = pnand %p1739_p11, %p1733_p3 }
 0x201   : > { %1743 = shalt.err (!%p1740_p5)
}
 0x202   : > { %1405 = dma.vmem_to_hbm [thread:$0]  (%p2610_p4), %s2474_s12, 32, %s2472_s29, %s993_s28  }
 0x203 PF: > { %s2612_s9 = sld [smem:[#allocation18_spill]]  ;;  %s2613_s0 = sld [smem:[#allocation22_spill]] }
 0x204   : > { %p1434_p7 = scmp.ge.s32.totalorder %s1874_s6, 2 }
 0x209   : > { %s1038_s5 = sand.u32 1, %s2612_s9   ;;  %p2614_p10 = scmp.ne.s32.totalorder %s2613_s0, 0 }
 0x20a   : > { %s1039_s21 = scalar_lea.sflag [#allocation4], %s1038_s5 }
 0x20b   : > { %p1423_p1 = pnand %p1434_p7, %p2614_p10 }
 0x20d   : > { %1813 = dma.done.wait (!%p1423_p1), %s1039_s21, 1024  }
 0x20e   : > { %1815 = vsyncadd (!%p1423_p1), %s1039_s21, 4294966272  ;;  %s1048_s8 = scalar_lea.sflag [#allocation12], %s1038_s5 }
 0x20f   : > { %1817 = dma.done.wait (!%p1423_p1), %s1048_s8, 32  }
 0x210   : > { %1819 = vsyncadd (!%p1423_p1), %s1048_s8, 4294967264  ;;  %s29_s6 = sadd.s32 1, %s1874_s6   ;;  %s2616_s12 = smov %s2156_s18 }
 0x211   : > { %p2503_p13 = scmp.ge.s32.totalorder %s29_s6, 6   ;;  %s2617_s29 = smov %s2168_s24 }
 0x212   : > { %s2618_s28 = sld [smem:[#allocation20_spill]]  ;;  %s2619_s4 = sld [smem:[#allocation23_spill]] }
 0x213   : > { %s2620_s15 = sld [smem:[#allocation24_spill]]  ;;  %s2621_s18 = smov %s1826_s19 }
 0x214   : > { %s2622_s19 = smov %s1830_s20  ;;  %s2623_s20 = smov %s2173_s27 }
 0x215   : > { %s2624_s21 = smov %s1838_s22  ;;  %s2625_s22 = smov %s1842_s23 }
 0x216   : > { %s2626_s23 = smov %s2616_s12  ;;  %s2627_s24 = smov %s1850_s25 }
 0x217   : > { %s2628_s25 = smov %s1854_s26  ;;  %s2629_s26 = smov %s2617_s29 }
 0x218   : > { %s2630_s27 = smov %s2618_s28  ;;  %s2631_s28 = smov %s1870_s30 }
 0x219   : > { %s2632_s29 = smov %s2619_s4  ;;  %s2633_s30 = smov %s2620_s15 }
 0x21a   :  { %28 = sbr.rel (!%p2503_p13) target bundleno = 21 (0x15), region = 119 }
 0x221   :  { %1053 = vsyncpa [#allocation3], 1 }
 0x222   :  { %1055 = vsyncpa [#allocation3 + $0x1], 1 }
 0x223   :  { %1056 = vsyncpa [#allocation6], 1 }
 0x224   :  { %1057 = vsyncpa [#allocation9], 1 }
 0x225   :  { %1059 = vsyncpa [#allocation9 + $0x1], 1 }
 0x226   :  { %1060 = vsyncpa [#allocation4], 1 }
 0x227   :  { %1062 = vsyncpa [#allocation4 + $0x1], 1 }
 0x228   :  { %1063 = vsyncpa [#allocation12], 1 }
 0x229   :  { %1065 = vsyncpa [#allocation12 + $0x1], 1 }

// kernel: projection_mlp.5
= control target key start
LH: loop header
LB: loop body
LE: loop exit
PB: predicated region body
PF: predicated region fallthrough
CT: control target
= control target key end

     0   :  { %11 = vsyncpa [#allocation3], 0  ;;  %s2106_s0 = inlined_call_operand.hbm [shape: bf16[256,256], index: 0, kind: input, shape index: {}]   ;;  %s2107_s1 = inlined_call_operand.hbm [shape: f32[1,256], index: 1, kind: input, shape index: {}]   ;;  %s2108_s2 = inlined_call_operand.hbm [shape: f32[1,256], index: 2, kind: input, shape index: {}]   ;;  %s2109_s3 = inlined_call_operand.hbm [shape: bf16[256,128], index: 3, kind: input, shape index: {}]   ;;  %s2110_s4 = inlined_call_operand.hbm [shape: f32[256,128], index: 4, kind: output, shape index: {0}]   ;;  %s2111_s5 = inlined_call_operand.hbm [shape: f32[2,2,128], index: 5, kind: output, shape index: {1}]  }
   0x1   :  { %13 = vsyncpa [#allocation3 + $0x1], 0 }
   0x2   :  { %14 = vsyncpa [#allocation6], 0 }
   0x3   :  { %15 = vsyncpa [#allocation9], 0 }
   0x4   :  { %16 = vsyncpa [#allocation4], 0 }
   0x5   :  { %18 = vsyncpa [#allocation4 + $0x1], 0 }
   0x6   :  { %19 = vsyncpa [#allocation12], 0 }
   0x7   :  { %21 = vsyncpa [#allocation12 + $0x1], 0  ;;  %s1612_s18 = smov 0   ;;  %s1614_s19 = smov 0  }
   0x8   :  { %s1616_s20 = smov 0   ;;  %s1618_s21 = smov 0  }
   0x9   :  { %s1620_s22 = smov 0   ;;  %s1622_s23 = smov 0  }
   0xa LB: > { %s1087_s24 = sadd.s32 4294967295, %s1568_s23   ;;  %s1088_s25 = sadd.s32 4294967294, %s1568_s23   ;;  %s1568_s23 = sphi %s1622_s23, %s27_s23   ;;  %s1564_s22 = sphi %s1620_s22, %s2135_s22   ;;  %s1560_s21 = sphi %s1618_s21, %s2134_s21   ;;  %s1556_s20 = sphi %s1616_s20, %s2133_s20   ;;  %s1552_s19 = sphi %s1614_s19, %s2132_s19   ;;  %s1548_s18 = sphi %s1612_s18, %s2131_s18  }
   0xb   : > { %p59_p0 = scmp.ne.s32.totalorder %s1552_s19, %s1548_s18  ;;  %p1646_p1 = scmp.eq.s32.totalorder %s1087_s24, 0 }
   0xc   : > { %p1650_p2 = scmp.eq.s32.totalorder %s1087_s24, 1  ;;  %p159_p3 = scmp.eq.s32.totalorder %s1088_s25, 1 }
   0xd   : > { %s2116_s26 = scalar_select %p1646_p1, 1, 0 }
   0xe   : > { %s2117_s27 = scalar_select %p1650_p2, 1, 0 }
   0xf   : > { %p1656_p4 = por %p1646_p1, %p59_p0  ;;  %p1089_p5 = scmp.ge.s32.totalorder %s1568_s23, 1 }
  0x10   : > { %p1661_p6 = por %p159_p3, %p59_p0  ;;  %p194_p7 = scmp.lt.s32.totalorder %s1568_s23, 3 }
  0x11   : > { %s2118_s28 = scalar_select %p1656_p4, 1, 0 }
  0x12   : > { %s2119_s29 = scalar_select %p1661_p6, 1, 0 }
  0x13   : > { %p1666_p8 = pnand %p1089_p5, %p194_p7  ;;  %s1570_s6 = smov [#allocation5]  }
  0x14   : > { %s207_s7 = sshll.u32 %s1570_s6, 4  ;;  %s1571_s8 = smov [#allocation7]   ;;  %s208_s7 = int_to_ptr.vmem [resolvable:$true] %s207_s7 }
  0x15   : > { %s2120_s30 = scalar_select %p1666_p8, 1, 0 }
  0x16   : > { %p1230_p10 = pneg %p1666_p8  ;;  %s218_s9 = sshll.u32 %s1571_s8, 4  ;;  %s1679_s9 = int_to_ptr.vmem [resolvable:$true] %s218_s9 }
  0x17   : > { %s1572_s11 = smov [#allocation8]   ;;  %s1332_s15 = scalar_lea.hbm %s2107_s1, 32 }
  0x18   : > { %p1675_p11 = pnand %p1230_p10, %p1646_p1  ;;  %s230_s12 = sshll.u32 %s1572_s11, 4  ;;  %s1681_s12 = int_to_ptr.vmem [resolvable:$true] %s230_s12 }
  0x19   : > { %p1333_p12 = scmp.ne.s32.totalorder %s2107_s1, %s1332_s15  ;;  %p1339_p5 = scmp.lt.u32.totalorder %s1332_s15, %s2107_s1 }
  0x1a   : > { %p1691_p13 = pneg %p1675_p11 }
  0x1c   : > { %p1335_p0 = pnand %p1691_p13, %p1333_p12 }
  0x1e   : > { %p1336_p3 = pneg %p1335_p0 }
  0x20   : > { %p1341_p7 = pnand %p1339_p5, %p1336_p3 }
  0x22   : > { %1344 = shalt.err (!%p1341_p7)
}
  0x23   : > { %s1345_s8 = scalar_lea.vmem %s208_s7, 32  ;;  %p1353_p1 = scmp.lt.s32.totalorder %s208_s7, %s208_s7 }
  0x24   : > { %p1346_p10 = scmp.ne.s32.totalorder %s208_s7, %s1345_s8  ;;  %p1354_p4 = scmp.lt.s32.totalorder %s1345_s8, %s1345_s8 }
  0x26   : > { %p1348_p9 = pnand %p1346_p10, %p1691_p13  ;;  %p1355_p8 = por %p1354_p4, %p1353_p1 }
  0x28   : > { %p1349_p6 = pneg %p1348_p9 }
  0x2a   : > { %p1356_p2 = pnand %p1355_p8, %p1349_p6 }
  0x2c   : > { %1359 = shalt.err (!%p1356_p2)
}
  0x2d   : > { %1233 = dma.hbm_to_vmem [thread:$0]  (!%p1675_p11), %s2107_s1, 32, %s208_s7, [#allocation6]  }
  0x2e   : > { %s1360_s16 = scalar_lea.hbm %s2108_s2, 32 }
  0x2f   : > { %p1361_p9 = scmp.ne.s32.totalorder %s2108_s2, %s1360_s16  ;;  %p1367_p2 = scmp.lt.u32.totalorder %s1360_s16, %s2108_s2 }
  0x31   : > { %p1363_p12 = pnand %p1361_p9, %p1691_p13 }
  0x33   : > { %p1364_p1 = pneg %p1363_p12 }
  0x35   : > { %p1369_p4 = pnand %p1367_p2, %p1364_p1 }
  0x37   : > { %1372 = shalt.err (!%p1369_p4)
}
  0x38   : > { %s1373_s7 = scalar_lea.vmem %s1679_s9, 32  ;;  %p1381_p3 = scmp.lt.s32.totalorder %s1679_s9, %s1679_s9 }
  0x39   : > { %p1374_p6 = scmp.ne.s32.totalorder %s1679_s9, %s1373_s7  ;;  %p1382_p5 = scmp.lt.s32.totalorder %s1373_s7, %s1373_s7 }
  0x3b   : > { %p1376_p8 = pnand %p1374_p6, %p1691_p13  ;;  %p1383_p7 = por %p1382_p5, %p1381_p3 }
  0x3d   : > { %p1377_p0 = pneg %p1376_p8 }
  0x3f   : > { %p1384_p10 = pnand %p1383_p7, %p1377_p0 }
  0x41   : > { %1387 = shalt.err (!%p1384_p10)
}
  0x42   : > { %1236 = dma.hbm_to_vmem [thread:$0]  (!%p1675_p11), %s2108_s2, 32, %s1679_s9, [#allocation6]  }
  0x43   : > { %s1388_s16 = scalar_lea.hbm %s2109_s3, 2048 }
  0x44   : > { %p1389_p9 = scmp.ne.s32.totalorder %s2109_s3, %s1388_s16  ;;  %p1395_p2 = scmp.lt.u32.totalorder %s1388_s16, %s2109_s3 }
  0x46   : > { %p1391_p12 = pnand %p1389_p9, %p1691_p13 }
  0x48   : > { %p1392_p1 = pneg %p1391_p12 }
  0x4a   : > { %p1397_p4 = pnand %p1395_p2, %p1392_p1 }
  0x4c   : > { %1400 = shalt.err (!%p1397_p4)
}
  0x4d   : > { %s1401_s9 = scalar_lea.vmem %s1681_s12, 2048  ;;  %p1409_p3 = scmp.lt.s32.totalorder %s1681_s12, %s1681_s12 }
  0x4e   : > { %p1402_p6 = scmp.ne.s32.totalorder %s1681_s12, %s1401_s9  ;;  %p1410_p5 = scmp.lt.s32.totalorder %s1401_s9, %s1401_s9 }
  0x50   : > { %p1404_p8 = pnand %p1402_p6, %p1691_p13  ;;  %p1411_p7 = por %p1410_p5, %p1409_p3 }
  0x52   : > { %p1405_p0 = pneg %p1404_p8 }
  0x54   : > { %p1412_p10 = pnand %p1411_p7, %p1405_p0 }
  0x56   : > { %1415 = shalt.err (!%p1412_p10)
}
  0x57   : > { %s1573_s7 = smov 64   ;;  %s1574_s24 = smov 4  }
  0x58   : > { %1239 = dma.hbm_to_vmem [thread:$0]  (!%p1675_p11), %s2109_s3, 2048, %s1681_s12, [#allocation9], %s1573_s7, %s1573_s7, %s1574_s24  }
  0x59   : > { %s46_s14 = sadd.s32 1, %s1556_s20  ;;  %s39_s15 = sadd.s32 1, %s1564_s22 }
  0x5a   : > { %p53_p13 = scmp.ne.s32.totalorder %s1556_s20, %s1552_s19  ;;  %p41_p9 = scmp.ge.s32.totalorder %s39_s15, 2 }
  0x5b   : > { %p54_p12 = scmp.eq.s32.totalorder %s1568_s23, 0  ;;  %p2123_p1 = scmp.ne.s32.totalorder %s2117_s27, 0 }
  0x5c   : > { %p1254_p4 = scmp.lt.s32.totalorder %s1568_s23, 2  ;;  %s2137_s15 = smov (%p41_p9, %s39_s15), 0 }
  0x5d   : > { %p1760_p2 = por %p2123_p1, %p53_p13  ;;  %p55_p6 = por %p54_p12, %p53_p13 }
  0x5e   : > { %s244_s10 = sand.u32 1, %s1556_s20   ;;  %s43_s17 = ssub.s32 %s1564_s22, %s2137_s15 }
  0x5f   : > { %p44_p8 = scmp.eq.s32.totalorder %s43_s17, 0  ;;  %s1094_s12 = sshll.u32 %s244_s10, 7 }
  0x60   : > { %s1130_s25 = sshll.u32 %s1564_s22, 11  ;;  %s248_s7 = scalar_lea.vmem [#allocation2], %s1094_s12 }
  0x61   : > { %s1772_s6 = scalar_select %p44_p8, %s1556_s20, %s46_s14  }
  0x62   : > { %s1777_s27 = scalar_lea.hbm %s2106_s0, %s1130_s25  ;;  %s256_s24 = sshll.u32 %s248_s7, 4  ;;  %s1779_s24 = int_to_ptr.vmem [resolvable:$true] %s256_s24 }
  0x63   : > { %p1783_p11 = pnand %p1254_p4, %p55_p6  ;;  %s1787_s13 = scalar_lea.sflag [#allocation3], %s244_s10 }
  0x64   : > { %s1416_s14 = scalar_lea.hbm %s1777_s27, 2048  ;;  %s1421_s25 = scalar_lea.hbm %s2106_s0, 4096 }
  0x65   : > { %p1417_p0 = scmp.ne.s32.totalorder %s1777_s27, %s1416_s14  ;;  %p1418_p3 = pneg %p1783_p11 }
  0x66   : > { %p1422_p10 = scmp.lt.u32.totalorder %s1777_s27, %s2106_s0  ;;  %p1423_p13 = scmp.lt.u32.totalorder %s1421_s25, %s1416_s14 }
  0x67   : > { %p1419_p5 = pnand %p1418_p3, %p1417_p0  ;;  %p1425_p12 = scmp.lt.u32.totalorder %s1416_s14, %s1777_s27 }
  0x68   : > { %p1424_p9 = por %p1423_p13, %p1422_p10 }
  0x69   : > { %p1420_p7 = pneg %p1419_p5 }
  0x6a   : > { %p1426_p1 = por %p1425_p12, %p1424_p9 }
  0x6c   : > { %p1427_p4 = pnand %p1426_p1, %p1420_p7 }
  0x6e   : > { %1430 = shalt.err (!%p1427_p4)
}
  0x6f   : > { %s1431_s10 = scalar_lea.vmem %s1779_s24, 2048  ;;  %s1575_s7 = smov [#allocation2]  }
  0x70   : > { %p1432_p6 = scmp.ne.s32.totalorder %s1779_s24, %s1431_s10  ;;  %s1436_s17 = sshll.u32 %s1575_s7, 4  ;;  %s1437_s17 = int_to_ptr.vmem [resolvable:$false] %s1436_s17 }
  0x71   : > { %s1438_s12 = scalar_lea.vmem %s1437_s17, 4096  ;;  %p1439_p5 = scmp.lt.s32.totalorder %s1779_s24, %s1437_s17 }
  0x72   : > { %p1434_p8 = pnand %p1432_p6, %p1418_p3  ;;  %p1440_p10 = scmp.lt.s32.totalorder %s1438_s12, %s1431_s10 }
  0x74   : > { %p1435_p0 = pneg %p1434_p8  ;;  %p1441_p13 = por %p1440_p10, %p1439_p5 }
  0x76   : > { %p1442_p9 = pnand %p1441_p13, %p1435_p0 }
  0x78   : > { %1445 = shalt.err (!%p1442_p9)
}
  0x79   : > { %s1576_s14 = smov 128   ;;  %s1577_s25 = smov 8  }
  0x7a   : > { %1243 = dma.hbm_to_vmem [thread:$0]  (!%p1783_p11), %s1777_s27, 2048, %s1779_s24, %s1787_s13, %s1576_s14, %s1576_s14, %s1577_s25  }
  0x7b   : > { %p2126_p3 = scmp.ne.s32.totalorder %s2120_s30, 0 }
  0x7c   : > { %s1818_s8 = sand.u32 (!%p2126_p3), 1, %s1552_s19   ;;  %p2127_p7 = scmp.ne.s32.totalorder (!%p2126_p3), %s2118_s28, 0 }
  0x7d   : > { %268 = sbr.rel (%p2126_p3) target bundleno = 471 (0x1d7), region = 36  ;;  %s1099_s9 = sshll.u32 (!%p2126_p3), %s1818_s8, 7 }
  0x7e   : > { %s271_s10 = scalar_lea.sflag (!%p2126_p3), [#allocation3], %s1818_s8  ;;  %s1824_s7 = scalar_lea.vmem (!%p2126_p3), [#allocation2], %s1099_s9 }
  0x84   : > { %1527 = dma.done.wait (%p2127_p7), %s271_s10, 2048  }
  0x85   : > { %1529 = vsyncadd (%p2127_p7), %s271_s10, 4294965248  ;;  %p2128_p11 = scmp.ne.s32.totalorder %s2116_s26, 0 }
  0x87   : > { %1531 = dma.done.wait (%p2128_p11), [#allocation6], 64  }
  0x88   : > { %1533 = vsyncadd (%p2128_p11), [#allocation6], 4294967232 }
  0x89   : > { %1535 = dma.done.wait (%p2128_p11), [#allocation9], 2048  }
  0x8a   : > { %1537 = vsyncadd (%p2128_p11), [#allocation9], 4294965248  ;;  %v1316_v0 = vld [vmem:[#allocation8 + $0x40] sm:$0xff]   ;;  %v1318_v2 = vld [vmem:[#allocation8 + $0x48] sm:$0xff]   ;;  %v371_v5 = vlaneseq  ;;  %s1121_s26 = sshll.u32 %s1560_s21, 7  ;;  %s1944_s28 = scalar_lea.vmem [#allocation10], %s1099_s9 }
  0x8b   : > { %v1317_v1 = vld [vmem:[#allocation8] sm:$0xff]   ;;  %1132 = vmatprep.subr.bf16.mxu0 %v1316_v0  ;;  %1196 = vmatprep.subr.bf16.mxu1 %v1316_v0  ;;  %v1319_v3 = vld [vmem:[#allocation8 + $0x8] sm:$0xff]   ;;  %v1320_v4 = vld [vmem:[#allocation8 + $0x50] sm:$0xff]   ;;  %s1131_s30 = sshll.u32 %s1560_s21, 11  ;;  %s926_s27 = sshll.u32 %s1944_s28, 4  ;;  %s2015_s27 = int_to_ptr.vmem [resolvable:$true] %s926_s27 }
  0x8c   : > { %1133 = vmatpush3.bf16.msra.mxu0 %v1317_v1  ;;  %1204 = vmatpush3.bf16.msra.mxu1 %v1317_v1  ;;  %v1321_v6 = vld [vmem:[#allocation8 + $0x10] sm:$0xff]   ;;  %v1322_v7 = vld [vmem:[#allocation8 + $0x58] sm:$0xff]   ;;  %v1838_v8 = vshrl.u32 %v371_v5, 7  ;;  %v1324_v10 = vld [vmem:[#allocation8 + $0x60] sm:$0xff]   ;;  %s2013_s13 = scalar_lea.hbm %s2110_s4, %s1131_s30  ;;  %s907_s17 = scalar_lea.sflag [#allocation4], %s1818_s8 }
  0x8d   : > { %1134 = vmatprep.subr.bf16.mxu0 %v1318_v2  ;;  %1197 = vmatprep.subr.bf16.mxu1 %v1318_v2  ;;  %v1323_v9 = vld [vmem:[#allocation8 + $0x18] sm:$0xff]   ;;  %v1325_v12 = vld [vmem:[#allocation8 + $0x20] sm:$0xff]   ;;  %v1326_v14 = vld [vmem:[#allocation8 + $0x68] sm:$0xff]   ;;  %s1446_s12 = scalar_lea.vmem %s2015_s27, 2048  ;;  %s1578_s14 = smov [#allocation10]  }
  0x8e   : > { %v373_v11 = vsub.s32 0, %v1838_v8  ;;  %v377_v13 = vsub.s32 1, %v1838_v8  ;;  %v321_v15 = vld [vmem:[%s1824_s7] sm:$0xff]  ;;  %v322_v16 = vld [vmem:[%s1824_s7 + $0x8] sm:$0xff]  ;;  %v323_v23 = vld [vmem:[%s1824_s7 + $0x10] sm:$0xff]  ;;  %p1447_p12 = scmp.ne.s32.totalorder %s2015_s27, %s1446_s12  ;;  %s1450_s25 = sshll.u32 %s1578_s14, 4  ;;  %s1451_s25 = int_to_ptr.vmem [resolvable:$false] %s1450_s25 }
  0x8f   : > { %v369_v17 = vld [vmem:[#allocation5] sm:$0x3]  ;;  %v337_v18 = vunpack.c.l.bf16 %v321_v15  ;;  %v338_v19 = vunpack.c.h.bf16 %v321_v15  ;;  %v339_v20 = vunpack.c.l.bf16 %v322_v16  ;;  %v340_v21 = vunpack.c.h.bf16 %v322_v16  ;;  %v413_v22 = vld [vmem:[#allocation7] sm:$0x3]  ;;  %v324_v24 = vld [vmem:[%s1824_s7 + $0x18] sm:$0xff]  ;;  %s1452_s9 = scalar_lea.vmem %s1451_s25, 4096  ;;  %p1453_p6 = scmp.lt.s32.totalorder %s2015_s27, %s1451_s25 }
  0x90   : > { %1135 = vmatpush3.bf16.msra.mxu0 %v1319_v3  ;;  %1205 = vmatpush3.bf16.msra.mxu1 %v1319_v3  ;;  %v1846_v25 = vrot.slane %v369_v17, %v373_v11  ;;  %v1848_v26 = vrot.slane %v369_v17, %v377_v13  ;;  %v1850_v27 = vrot.slane %v413_v22, %v373_v11  ;;  %v1327_v29 = vld [vmem:[#allocation8 + $0x28] sm:$0xff]   ;;  %v342_v30 = vunpack.c.h.bf16 %v323_v23  ;;  %v1328_v34 = vld [vmem:[#allocation8 + $0x70] sm:$0xff]   ;;  %v329_v39 = vld [vmem:[%s1824_s7 + $0x40] sm:$0xff]  ;;  %p1448_p1 = pnand %p1447_p12, %p1760_p2  ;;  %p1454_p8 = scmp.lt.s32.totalorder %s1452_s9, %s1446_s12 }
  0x91   : > { %1136 = vmatprep.subr.bf16.mxu0 %v1320_v4  ;;  %1198 = vmatprep.subr.bf16.mxu1 %v1320_v4  ;;  %v1852_v28 = vrot.slane %v413_v22, %v377_v13  ;;  %v344_v31 = vunpack.c.h.bf16 %v324_v24  ;;  %v341_v32 = vunpack.c.l.bf16 %v323_v23  ;;  %v343_v33 = vunpack.c.l.bf16 %v324_v24  ;;  %v1329_v48 = vld [vmem:[#allocation8 + $0x30] sm:$0xff]   ;;  %v330_v52 = vld [vmem:[%s1824_s7 + $0x48] sm:$0xff]  ;;  %v1330_v54 = vld [vmem:[#allocation8 + $0x78] sm:$0xff]  }
  0x92   : > { %v382_v35 = vmul.f32 %v1848_v26, %v338_v19  ;;  %v384_v36 = vmul.f32 %v1848_v26, %v340_v21  ;;  %v381_v37 = vmul.f32 %v1846_v25, %v337_v18  ;;  %v383_v38 = vmul.f32 %v1846_v25, %v339_v20  ;;  %v325_v62 = vld [vmem:[%s1824_s7 + $0x20] sm:$0xff]  ;;  %v326_v63 = vld [vmem:[%s1824_s7 + $0x28] sm:$0xff]  ;;  %v331_v22 = vld [vmem:[%s1824_s7 + $0x50] sm:$0xff]  ;;  %p1449_p4 = pneg %p1448_p1  ;;  %p1455_p0 = por %p1454_p8, %p1453_p6 }
  0x93   : > { %v386_v40 = vmul.f32 %v1848_v26, %v342_v30  ;;  %v388_v41 = vmul.f32 %v1848_v26, %v344_v31  ;;  %v385_v42 = vmul.f32 %v1846_v25, %v341_v32  ;;  %v387_v43 = vmul.f32 %v1846_v25, %v343_v33  ;;  %v1331_v4 = vld [vmem:[#allocation8 + $0x38] sm:$0xff]  }
  0x94   : > { %1137 = vmatpush3.bf16.msra.mxu0 %v1321_v6  ;;  %1206 = vmatpush3.bf16.msra.mxu1 %v1321_v6  ;;  %v426_v44 = vadd.f32 %v1852_v28, %v382_v35  ;;  %v428_v45 = vadd.f32 %v1852_v28, %v384_v36  ;;  %v425_v46 = vadd.f32 %v1850_v27, %v381_v37  ;;  %v353_v53 = vunpack.c.l.bf16 %v329_v39  ;;  %v332_v31 = vld [vmem:[%s1824_s7 + $0x58] sm:$0xff]  ;;  %p1456_p5 = pnand %p1455_p0, %p1449_p4 }
  0x95   : > { %1138 = vmatprep.subr.bf16.mxu0 %v1322_v7  ;;  %1199 = vmatprep.subr.bf16.mxu1 %v1322_v7  ;;  %v427_v47 = vadd.f32 %v1850_v27, %v383_v38  ;;  %v430_v49 = vadd.f32 %v1852_v28, %v386_v40  ;;  %v432_v50 = vadd.f32 %v1852_v28, %v388_v41  ;;  %v354_v2 = vunpack.c.h.bf16 %v329_v39 }
  0x96   : > { %v1870_v51 = vadd.f32 %v1850_v27, %v385_v42  ;;  %v458_v55 = vmax.f32 %v426_v44, 0.0  ;;  %v460_v56 = vmax.f32 %v428_v45, 0.0  ;;  %v457_v57 = vmax.f32 %v425_v46, 0.0  ;;  %v327_v44 = vld [vmem:[%s1824_s7 + $0x30] sm:$0xff]  ;;  %v328_v45 = vld [vmem:[%s1824_s7 + $0x38] sm:$0xff] }
  0x97   : > { %v459_v58 = vmax.f32 %v427_v47, 0.0  ;;  %v462_v59 = vmax.f32 %v430_v49, 0.0  ;;  %v464_v60 = vmax.f32 %v432_v50, 0.0  ;;  %v431_v61 = vadd.f32 %v1850_v27, %v387_v43 }
  0x98   : > { %1139 = vmatpush3.bf16.msra.mxu0 %v1323_v9  ;;  %1207 = vmatpush3.bf16.msra.mxu1 %v1323_v9  ;;  %v490_v0 = vpack.c.bf16 %v460_v56, %v458_v55  ;;  %v461_v1 = vmax.f32 %v1870_v51, 0.0  ;;  %v355_v3 = vunpack.c.l.bf16 %v330_v52  ;;  %v356_v7 = vunpack.c.h.bf16 %v330_v52 }
  0x99   : > { %1140 = vmatprep.subr.bf16.mxu0 %v1324_v10  ;;  %1200 = vmatprep.subr.bf16.mxu1 %v1324_v10  ;;  %v489_v5 = vpack.c.bf16 %v459_v58, %v457_v57  ;;  %v492_v6 = vpack.c.bf16 %v464_v60, %v462_v59  ;;  %v397_v9 = vmul.f32 %v1846_v25, %v353_v53  ;;  %v348_v13 = vunpack.c.h.bf16 %v326_v63 }
  0x9a   : > { %665 = vmatprep.mubr.bf16.mxu0 %v490_v0  ;;  %v398_v10 = vmul.f32 %v1848_v26, %v354_v2  ;;  %v399_v11 = vmul.f32 %v1846_v25, %v355_v3  ;;  %v400_v15 = vmul.f32 %v1848_v26, %v356_v7  ;;  %v345_v17 = vunpack.c.l.bf16 %v325_v62  ;;  %v334_v7 = vld [vmem:[%s1824_s7 + $0x68] sm:$0xff] }
  0x9b   : > { %v441_v16 = vadd.f32 %v1850_v27, %v397_v9  ;;  %v392_v21 = vmul.f32 %v1848_v26, %v348_v13  ;;  %v358_v39 = vunpack.c.h.bf16 %v331_v22  ;;  %v360_v43 = vunpack.c.h.bf16 %v332_v31 }
  0x9c   : > { %1141 = vmatpush3.bf16.msra.mxu0 %v1325_v12  ;;  %1208 = vmatpush3.bf16.msra.mxu1 %v1325_v12  ;;  %v346_v12 = vunpack.c.h.bf16 %v325_v62  ;;  %v442_v18 = vadd.f32 %v1852_v28, %v398_v10  ;;  %v443_v19 = vadd.f32 %v1850_v27, %v399_v11  ;;  %v444_v23 = vadd.f32 %v1852_v28, %v400_v15  ;;  %v333_v62 = vld [vmem:[%s1824_s7 + $0x60] sm:$0xff] }
  0x9d   : > { %1142 = vmatprep.subr.bf16.mxu0 %v1326_v14  ;;  %1201 = vmatprep.subr.bf16.mxu1 %v1326_v14  ;;  %v463_v14 = vmax.f32 %v431_v61, 0.0  ;;  %v473_v24 = vmax.f32 %v441_v16, 0.0  ;;  %v389_v30 = vmul.f32 %v1846_v25, %v345_v17  ;;  %v436_v35 = vadd.f32 %v1852_v28, %v392_v21 }
  0x9e   : > { %v390_v20 = vmul.f32 %v1848_v26, %v346_v12  ;;  %v474_v32 = vmax.f32 %v442_v18, 0.0  ;;  %v475_v33 = vmax.f32 %v443_v19, 0.0  ;;  %v476_v36 = vmax.f32 %v444_v23, 0.0 }
  0x9f   : > { %v433_v38 = vadd.f32 %v1850_v27, %v389_v30  ;;  %v468_v42 = vmax.f32 %v436_v35, 0.0  ;;  %v491_v46 = vpack.c.bf16 %v463_v14, %v461_v1  ;;  %v402_v49 = vmul.f32 %v1848_v26, %v358_v39 }
  0xa0   : > { %1143 = vmatpush3.bf16.msra.mxu0 %v1327_v29  ;;  %1209 = vmatpush3.bf16.msra.mxu1 %v1327_v29  ;;  %v347_v29 = vunpack.c.l.bf16 %v326_v63  ;;  %v497_v40 = vpack.c.bf16 %v475_v33, %v473_v24  ;;  %v498_v47 = vpack.c.bf16 %v476_v36, %v474_v32  ;;  %v404_v51 = vmul.f32 %v1848_v26, %v360_v43 }
  0xa1   : > { %1144 = vmatprep.subr.bf16.mxu0 %v1328_v34  ;;  %1202 = vmatprep.subr.bf16.mxu1 %v1328_v34  ;;  %v434_v34 = vadd.f32 %v1852_v28, %v390_v20  ;;  %v465_v50 = vmax.f32 %v433_v38, 0.0  ;;  %v357_v52 = vunpack.c.l.bf16 %v331_v22  ;;  %v359_v53 = vunpack.c.l.bf16 %v332_v31  ;;  %v335_v20 = vld [vmem:[%s1824_s7 + $0x70] sm:$0xff] }
  0xa2   : > { %v391_v37 = vmul.f32 %v1846_v25, %v347_v29  ;;  %697 = vmatprep.mubr.bf16.mxu1 %v498_v47  ;;  %v446_v55 = vadd.f32 %v1852_v28, %v402_v49  ;;  %v350_v56 = vunpack.c.h.bf16 %v327_v44  ;;  %v352_v57 = vunpack.c.h.bf16 %v328_v45  ;;  %v336_v29 = vld [vmem:[%s1824_s7 + $0x78] sm:$0xff] }
  0xa3   : > { %v466_v41 = vmax.f32 %v434_v34, 0.0  ;;  %v448_v58 = vadd.f32 %v1852_v28, %v404_v51  ;;  %v401_v59 = vmul.f32 %v1846_v25, %v357_v52  ;;  %v403_v60 = vmul.f32 %v1846_v25, %v359_v53 }
  0xa4   : > { %1145 = vmatpush3.bf16.msra.mxu0 %v1329_v48  ;;  %1210 = vmatpush3.bf16.msra.mxu1 %v1329_v48  ;;  %v435_v48 = vadd.f32 %v1850_v27, %v391_v37  ;;  %v349_v61 = vunpack.c.l.bf16 %v327_v44  ;;  %v478_v0 = vmax.f32 %v446_v55, 0.0  ;;  %v394_v1 = vmul.f32 %v1848_v26, %v350_v56 }
  0xa5   : > { %1146 = vmatprep.subr.bf16.mxu0 %v1330_v54  ;;  %1203 = vmatprep.subr.bf16.mxu1 %v1330_v54  ;;  %v494_v54 = vpack.c.bf16 %v468_v42, %v466_v41  ;;  %v396_v2 = vmul.f32 %v1848_v26, %v352_v57  ;;  %v480_v3 = vmax.f32 %v448_v58, 0.0  ;;  %v362_v12 = vunpack.c.h.bf16 %v333_v62 }
  0xa6   : > { %v467_v63 = vmax.f32 %v435_v48, 0.0  ;;  %v438_v9 = vadd.f32 %v1852_v28, %v394_v1  ;;  %v393_v11 = vmul.f32 %v1846_v25, %v349_v61  ;;  %v364_v19 = vunpack.c.h.bf16 %v334_v7 }
  0xa7   : > { %v440_v10 = vadd.f32 %v1852_v28, %v396_v2  ;;  %v500_v13 = vpack.c.bf16 %v480_v3, %v478_v0  ;;  %v406_v23 = vmul.f32 %v1848_v26, %v362_v12  ;;  %v361_v24 = vunpack.c.l.bf16 %v333_v62 }
  0xa8   : > { %1147 = vmatpush3.bf16.msra.mxu0 %v1331_v4  ;;  %1211 = vmatpush3.bf16.msra.mxu1 %v1331_v4  ;;  %v445_v4 = vadd.f32 %v1850_v27, %v401_v59  ;;  %v470_v17 = vmax.f32 %v438_v9, 0.0  ;;  %v437_v22 = vadd.f32 %v1850_v27, %v393_v11  ;;  %v493_v30 = vpack.c.bf16 %v467_v63, %v465_v50 }
  0xa9   : > { %v472_v18 = vmax.f32 %v440_v10, 0.0  ;;  %v408_v32 = vmul.f32 %v1848_v26, %v364_v19  ;;  %v363_v33 = vunpack.c.l.bf16 %v334_v7  ;;  %v450_v35 = vadd.f32 %v1852_v28, %v406_v23 }
  0xaa   : > { %v477_v14 = vmax.f32 %v445_v4, 0.0  ;;  %v405_v36 = vmul.f32 %v1846_v25, %v361_v24  ;;  %v366_v37 = vunpack.c.h.bf16 %v335_v20  ;;  %v365_v41 = vunpack.c.l.bf16 %v335_v20 }
  0xab   : > { %666 = vmatmul.mubr.bf16.vlgmr.msra.gmra.mrb[0].mxu0 %v489_v5  ;;  %698 = vmatmul.mubr.bf16.vlgmr.msra.gmra.mrb[0].mxu1 %v497_v40  ;;  %v447_v5 = vadd.f32 %v1850_v27, %v403_v60  ;;  %v496_v34 = vpack.c.bf16 %v472_v18, %v470_v17  ;;  %v452_v38 = vadd.f32 %v1852_v28, %v408_v32  ;;  %v368_v40 = vunpack.c.h.bf16 %v336_v29 }
  0xac   : > { %673 = vmatprep.mubr.bf16.mxu0 %v492_v6  ;;  %v351_v6 = vunpack.c.l.bf16 %v328_v45  ;;  %705 = vmatprep.mubr.bf16.mxu1 %v500_v13  ;;  %v407_v39 = vmul.f32 %v1846_v25, %v363_v33  ;;  %v469_v42 = vmax.f32 %v437_v22, 0.0  ;;  %v482_v43 = vmax.f32 %v450_v35, 0.0 }
  0xad   : > { %v479_v15 = vmax.f32 %v447_v5, 0.0  ;;  %v449_v44 = vadd.f32 %v1850_v27, %v405_v36  ;;  %v410_v45 = vmul.f32 %v1848_v26, %v366_v37  ;;  %v412_v48 = vmul.f32 %v1848_v26, %v368_v40 }
  0xae   : > { %v395_v16 = vmul.f32 %v1846_v25, %v351_v6  ;;  %v451_v47 = vadd.f32 %v1850_v27, %v407_v39  ;;  %v367_v49 = vunpack.c.l.bf16 %v336_v29  ;;  %v409_v53 = vmul.f32 %v1846_v25, %v365_v41 }
  0xaf   : > { %v499_v21 = vpack.c.bf16 %v479_v15, %v477_v14  ;;  %v481_v51 = vmax.f32 %v449_v44, 0.0  ;;  %v454_v52 = vadd.f32 %v1852_v28, %v410_v45  ;;  %v456_v56 = vadd.f32 %v1852_v28, %v412_v48 }
  0xb0   : > { %v439_v31 = vadd.f32 %v1850_v27, %v395_v16  ;;  %v483_v55 = vmax.f32 %v451_v47, 0.0  ;;  %v411_v57 = vmul.f32 %v1846_v25, %v367_v49  ;;  %v453_v59 = vadd.f32 %v1850_v27, %v409_v53 }
  0xb1   : > { %v486_v58 = vmax.f32 %v454_v52, 0.0  ;;  %v488_v60 = vmax.f32 %v456_v56, 0.0  ;;  %v1934_v25 = vstv %s1121_s26  ;;  %v749_v28 = vadd.s32 8, %v1838_v8 }
  0xb2   : > { %v471_v50 = vmax.f32 %v439_v31, 0.0  ;;  %v501_v26 = vpack.c.bf16 %v483_v55, %v481_v51  ;;  %v455_v61 = vadd.f32 %v1850_v27, %v411_v57  ;;  %v485_v0 = vmax.f32 %v453_v59, 0.0 }
  0xb3   : > { %674 = vmatmul.mubr.bf16.gmra.mrb[4].mxu0 %v491_v46  ;;  %706 = vmatmul.mubr.bf16.gmra.mrb[4].mxu1 %v499_v21  ;;  %v484_v46 = vmax.f32 %v452_v38, 0.0  ;;  %v504_v63 = vpack.c.bf16 %v488_v60, %v486_v58  ;;  %v765_v3 = vadd.s32 %v1934_v25, %v1838_v8  ;;  %v766_v27 = vadd.s32 %v1934_v25, %v749_v28 }
  0xb4   : > { %681 = vmatprep.mubr.bf16.mxu0 %v494_v54  ;;  %v495_v62 = vpack.c.bf16 %v471_v50, %v469_v42  ;;  %v487_v1 = vmax.f32 %v455_v61, 0.0  ;;  %v750_v6 = vadd.s32 16, %v1838_v8  ;;  %v751_v11 = vadd.s32 24, %v1838_v8 }
  0xb5   : > { %v502_v54 = vpack.c.bf16 %v484_v46, %v482_v43  ;;  %vm781_vm0 = vcmp.lt.s32.totalorder %v765_v3, 200  ;;  %vm782_vm1 = vcmp.lt.s32.totalorder %v766_v27, 200  ;;  %v752_v33 = vadd.s32 32, %v1838_v8 }
  0xb6   : > { %v503_v2 = vpack.c.bf16 %v487_v1, %v485_v0  ;;  %v767_v15 = vadd.s32 %v1934_v25, %v750_v6  ;;  %v768_v23 = vadd.s32 %v1934_v25, %v751_v11  ;;  %v753_v37 = vadd.s32 40, %v1838_v8 }
  0xb7   : > { %713 = vmatprep.mubr.bf16.mxu1 %v502_v54  ;;  %v769_v43 = vadd.s32 %v1934_v25, %v752_v33  ;;  %v754_v57 = vadd.s32 48, %v1838_v8  ;;  %v756_v58 = vadd.s32 64, %v1838_v8  ;;  %v755_v60 = vadd.s32 56, %v1838_v8 }
  0xb8   : > { %vm783_vm2 = vcmp.lt.s32.totalorder %v767_v15, 200  ;;  %vm784_vm3 = vcmp.lt.s32.totalorder %v768_v23, 200  ;;  %v770_v51 = vadd.s32 %v1934_v25, %v753_v37  ;;  %v758_v28 = vadd.s32 80, %v1838_v8 }
  0xb9   : > { %vm785_vm4 = vcmp.lt.s32.totalorder %v769_v43, 200  ;;  %v771_v3 = vadd.s32 %v1934_v25, %v754_v57  ;;  %v759_v6 = vadd.s32 88, %v1838_v8 }
  0xba   : > { %vm786_vm5 = vcmp.lt.s32.totalorder %v770_v51, 200 }
  0xbb   : > { %682 = vmatmul.mubr.bf16.gmra.mrb[8].mxu0 %v493_v30  ;;  %714 = vmatmul.mubr.bf16.gmra.mrb[8].mxu1 %v501_v26  ;;  %vm787_vm6 = vcmp.lt.s32.totalorder %v771_v3, 200  ;;  %v776_v23 = vadd.s32 %v1934_v25, %v759_v6 }
  0xbc   : > { %689 = vmatprep.mubr.bf16.mxu0 %v496_v34  ;;  %721 = vmatprep.mubr.bf16.mxu1 %v504_v63 }
  0xbd   : > { %vm792_vm11 = vcmp.lt.s32.totalorder %v776_v23, 200 }
  0xc3   : > { %690 = vmatmul.mubr.bf16.gmra.mrb[12].mxu0 %v495_v62  ;;  %722 = vmatmul.mubr.bf16.gmra.mrb[12].mxu1 %v503_v2  ;;  %v757_v62 = vadd.s32 72, %v1838_v8 }
  0xc5   : > { %v774_v15 = vadd.s32 %v1934_v25, %v757_v62 }
  0xc7   : > { %vm790_vm9 = vcmp.lt.s32.totalorder %v774_v15, 200 }
 0x17e   : > { %v1148_v4 = vpop.f32.mrb[0].mxu0  ;;  %v1172_v14 = vpop.f32.mrb[0].mxu1 }
 0x17f   : > { %v1149_v5 = vpop.f32.mrb[1].mxu0  ;;  %v1173_v16 = vpop.f32.mrb[1].mxu1 }
 0x180   : > { %v1150_v7 = vadd.f32 %v1149_v5, %v1148_v4  ;;  %v1151_v9 = vpop.f32.mrb[2].mxu0  ;;  %v1949_v18 = vadd.f32 %v1173_v16, %v1172_v14  ;;  %v1175_v19 = vpop.f32.mrb[2].mxu1  ;;  %v773_v4 = vadd.s32 %v1934_v25, %v756_v58 }
 0x181   : > { %v1152_v10 = vpop.f32.mrb[3].mxu0  ;;  %v1176_v24 = vpop.f32.mrb[3].mxu1 }
 0x182   : > { %730 = vst [vmem:[%s1944_s28] sm:$0xff] %v1150_v7  ;;  %v829_v12 = vsel %vm781_vm0, %v1150_v7, 0.0  ;;  %v1153_v13 = vadd.f32 %v1152_v10, %v1151_v9  ;;  %738 = vst [vmem:[%s1944_s28 + $0x40] sm:$0xff] %v1949_v18  ;;  %v1954_v30 = vadd.f32 %v1176_v24, %v1175_v19  ;;  %v772_v7 = vadd.s32 %v1934_v25, %v755_v60 }
 0x183   : > { %v866_v20 = vmul.f32 %v829_v12, %v829_v12  ;;  %vm789_vm7 = vcmp.lt.s32.totalorder %v773_v4, 200 }
 0x184   : > { %731 = vst [vmem:[%s1944_s28 + $0x8] sm:$0xff] %v1153_v13  ;;  %v830_v17 = vsel %vm782_vm1, %v1153_v13, 0.0  ;;  %739 = vst [vmem:[%s1944_s28 + $0x48] sm:$0xff] %v1954_v30  ;;  %vm788_vm8 = vcmp.lt.s32.totalorder %v772_v7, 200 }
 0x185   : > { %v845_v21 = vadd.f32 %v830_v17, %v829_v12  ;;  %v867_v22 = vmul.f32 %v830_v17, %v830_v17 }
 0x186   : > { %v1154_v29 = vpop.f32.mrb[4].mxu0  ;;  %v1178_v40 = vpop.f32.mrb[4].mxu1 }
 0x187   : > { %v882_v31 = vadd.f32 %v867_v22, %v866_v20  ;;  %v1155_v32 = vpop.f32.mrb[5].mxu0  ;;  %v1179_v44 = vpop.f32.mrb[5].mxu1  ;;  %v775_v20 = vadd.s32 %v1934_v25, %v758_v28 }
 0x188   : > { %v1156_v34 = vadd.f32 %v1155_v32, %v1154_v29  ;;  %v1157_v35 = vpop.f32.mrb[6].mxu0  ;;  %v1963_v46 = vadd.f32 %v1179_v44, %v1178_v40  ;;  %v1181_v47 = vpop.f32.mrb[6].mxu1  ;;  %v837_v40 = vsel %vm789_vm7, %v1949_v18, 0.0 }
 0x189   : > { %v1158_v36 = vpop.f32.mrb[7].mxu0  ;;  %v1182_v52 = vpop.f32.mrb[7].mxu1  ;;  %vm791_vm10 = vcmp.lt.s32.totalorder %v775_v20, 200 }
 0x18a   : > { %732 = vst [vmem:[%s1944_s28 + $0x10] sm:$0xff] %v1156_v34  ;;  %v831_v38 = vsel %vm783_vm2, %v1156_v34, 0.0  ;;  %v1159_v39 = vadd.f32 %v1158_v36, %v1157_v35  ;;  %740 = vst [vmem:[%s1944_s28 + $0x50] sm:$0xff] %v1963_v46  ;;  %v1968_v54 = vadd.f32 %v1182_v52, %v1181_v47  ;;  %v761_v35 = vadd.s32 104, %v1838_v8 }
 0x18b   : > { %v846_v41 = vadd.f32 %v845_v21, %v831_v38  ;;  %v868_v42 = vmul.f32 %v831_v38, %v831_v38  ;;  %v762_v36 = vadd.s32 112, %v1838_v8  ;;  %v839_v58 = vsel %vm791_vm10, %v1963_v46, 0.0 }
 0x18c   : > { %733 = vst [vmem:[%s1944_s28 + $0x18] sm:$0xff] %v1159_v39  ;;  %v832_v45 = vsel %vm784_vm3, %v1159_v39, 0.0  ;;  %741 = vst [vmem:[%s1944_s28 + $0x58] sm:$0xff] %v1968_v54  ;;  %v778_v51 = vadd.s32 %v1934_v25, %v761_v35  ;;  %v840_v60 = vsel %vm792_vm11, %v1968_v54, 0.0 }
 0x18d   : > { %v883_v48 = vadd.f32 %v882_v31, %v868_v42  ;;  %v847_v49 = vadd.f32 %v846_v41, %v832_v45  ;;  %v869_v50 = vmul.f32 %v832_v45, %v832_v45  ;;  %v760_v31 = vadd.s32 96, %v1838_v8 }
 0x18e   : > { %v1160_v53 = vpop.f32.mrb[8].mxu0  ;;  %v1184_v27 = vpop.f32.mrb[8].mxu1  ;;  %v779_v18 = vadd.s32 %v1934_v25, %v762_v36  ;;  %vm794_vm13 = vcmp.lt.s32.totalorder %v778_v51, 200 }
 0x18f   : > { %v884_v55 = vadd.f32 %v883_v48, %v869_v50  ;;  %v1161_v56 = vpop.f32.mrb[9].mxu0  ;;  %v1185_v9 = vpop.f32.mrb[9].mxu1  ;;  %v777_v42 = vadd.s32 %v1934_v25, %v760_v31  ;;  %v838_v50 = vsel %vm790_vm9, %v1954_v30, 0.0 }
 0x190   : > { %v1162_v59 = vadd.f32 %v1161_v56, %v1160_v53  ;;  %v1163_v26 = vpop.f32.mrb[10].mxu0  ;;  %v1983_v13 = vadd.f32 %v1185_v9, %v1184_v27  ;;  %v1187_v14 = vpop.f32.mrb[10].mxu1  ;;  %v763_v53 = vadd.s32 120, %v1838_v8  ;;  %v875_v8 = vmul.f32 %v838_v50, %v838_v50 }
 0x191   : > { %v1164_v61 = vpop.f32.mrb[11].mxu0  ;;  %v1188_v17 = vpop.f32.mrb[11].mxu1  ;;  %vm793_vm12 = vcmp.lt.s32.totalorder %v777_v42, 200 }
 0x192   : > { %734 = vst [vmem:[%s1944_s28 + $0x20] sm:$0xff] %v1162_v59  ;;  %v833_v63 = vsel %vm785_vm4, %v1162_v59, 0.0  ;;  %v1165_v0 = vadd.f32 %v1164_v61, %v1163_v26  ;;  %742 = vst [vmem:[%s1944_s28 + $0x60] sm:$0xff] %v1983_v13  ;;  %v1989_v22 = vadd.f32 %v1188_v17, %v1187_v14  ;;  %v780_v61 = vadd.s32 %v1934_v25, %v763_v53 }
 0x193   : > { %v848_v1 = vadd.f32 %v847_v49, %v833_v63  ;;  %v870_v2 = vmul.f32 %v833_v63, %v833_v63 }
 0x194   : > { %735 = vst [vmem:[%s1944_s28 + $0x28] sm:$0xff] %v1165_v0  ;;  %v834_v5 = vsel %vm786_vm5, %v1165_v0, 0.0  ;;  %743 = vst [vmem:[%s1944_s28 + $0x68] sm:$0xff] %v1989_v22 }
 0x195   : > { %v885_v10 = vadd.f32 %v884_v55, %v870_v2  ;;  %v849_v11 = vadd.f32 %v848_v1, %v834_v5  ;;  %v871_v12 = vmul.f32 %v834_v5, %v834_v5  ;;  %v874_v55 = vmul.f32 %v837_v40, %v837_v40 }
 0x196   : > { %v1166_v16 = vpop.f32.mrb[12].mxu0  ;;  %v1190_v39 = vpop.f32.mrb[12].mxu1 }
 0x197   : > { %v886_v19 = vadd.f32 %v885_v10, %v871_v12  ;;  %v1167_v21 = vpop.f32.mrb[13].mxu0  ;;  %v1191_v43 = vpop.f32.mrb[13].mxu1 }
 0x198   : > { %v1168_v24 = vadd.f32 %v1167_v21, %v1166_v16  ;;  %v1169_v29 = vpop.f32.mrb[14].mxu0  ;;  %v1192_v48 = vadd.f32 %v1191_v43, %v1190_v39  ;;  %v1193_v49 = vpop.f32.mrb[14].mxu1 }
 0x199   : > { %v1170_v32 = vpop.f32.mrb[15].mxu0  ;;  %v1194_v52 = vpop.f32.mrb[15].mxu1 }
 0x19a   : > { %736 = vst [vmem:[%s1944_s28 + $0x30] sm:$0xff] %v1168_v24  ;;  %v835_v33 = vsel %vm787_vm6, %v1168_v24, 0.0  ;;  %v1171_v34 = vadd.f32 %v1170_v32, %v1169_v29  ;;  %744 = vst [vmem:[%s1944_s28 + $0x70] sm:$0xff] %v1192_v48  ;;  %v1195_v57 = vadd.f32 %v1194_v52, %v1193_v49 }
 0x19b   : > { %v850_v37 = vadd.f32 %v849_v11, %v835_v33  ;;  %v872_v38 = vmul.f32 %v835_v33, %v835_v33 }
 0x19c   : > { %737 = vst [vmem:[%s1944_s28 + $0x38] sm:$0xff] %v1171_v34  ;;  %v836_v41 = vsel %vm788_vm8, %v1171_v34, 0.0  ;;  %745 = vst [vmem:[%s1944_s28 + $0x78] sm:$0xff] %v1195_v57 }
 0x19d   : > { %v887_v44 = vadd.f32 %v886_v19, %v872_v38  ;;  %v851_v45 = vadd.f32 %v850_v37, %v836_v41  ;;  %v873_v47 = vmul.f32 %v836_v41, %v836_v41 }
 0x19f   : > { %v852_v30 = vadd.f32 %v851_v45, %v837_v40  ;;  %v888_v56 = vadd.f32 %v887_v44, %v873_v47 }
 0x1a1   : > { %v853_v59 = vadd.f32 %v852_v30, %v838_v50  ;;  %v889_v26 = vadd.f32 %v888_v56, %v874_v55 }
 0x1a2   : > { %1459 = shalt.err (!%p1456_p5)
}
 0x1a3   : > { %s1460_s10 = scalar_lea.hbm %s2013_s13, 2048  ;;  %s1464_s28 = scalar_lea.hbm %s2110_s4, 4096 }
 0x1a4   : > { %p1461_p10 = scmp.ne.s32.totalorder %s2013_s13, %s1460_s10  ;;  %p1465_p3 = scmp.lt.u32.totalorder %s2013_s13, %s2110_s4 }
 0x1a5   : > { %p1466_p7 = scmp.lt.u32.totalorder %s1464_s28, %s1460_s10  ;;  %p1468_p12 = scmp.lt.u32.totalorder %s1460_s10, %s2013_s13 }
 0x1a6   : > { %p1462_p13 = pnand %p1461_p10, %p1760_p2 }
 0x1a7   : > { %p1467_p11 = por %p1466_p7, %p1465_p3 }
 0x1a8   : > { %p1463_p9 = pneg %p1462_p13 }
 0x1a9   : > { %p1469_p1 = por %p1468_p12, %p1467_p11 }
 0x1ab   : > { %p1470_p4 = pnand %p1469_p1, %p1463_p9 }
 0x1ad   : > { %1473 = shalt.err (!%p1470_p4)
}
 0x1ae   : > { %s1579_s11 = smov 128   ;;  %s1580_s12 = smov 8   ;;  %v876_v25 = vmul.f32 %v839_v58, %v839_v58  ;;  %v890_v46 = vadd.f32 %v889_v26, %v875_v8  ;;  %v854_v54 = vadd.f32 %v853_v59, %v839_v58  ;;  %vm795_vm14 = vcmp.lt.s32.totalorder %v779_v18, 200 }
 0x1af   : > { %1226 = dma.vmem_to_hbm [thread:$0]  (%p1760_p2), %s2015_s27, 2048, %s2013_s13, %s907_s17, %s1579_s11, %s1579_s11, %s1580_s12   ;;  %v841_v62 = vsel %vm793_vm12, %v1983_v13, 0.0  ;;  %v877_v63 = vmul.f32 %v840_v60, %v840_v60  ;;  %v842_v2 = vsel %vm794_vm13, %v1989_v22, 0.0  ;;  %v843_v28 = vsel %vm795_vm14, %v1192_v48, 0.0 }
 0x1b0   : > { %v855_v0 = vadd.f32 %v854_v54, %v840_v60  ;;  %v891_v1 = vadd.f32 %v890_v46, %v876_v25  ;;  %v878_v27 = vmul.f32 %v841_v62, %v841_v62  ;;  %vm796_vm15 = vcmp.lt.s32.totalorder %v780_v61, 200  ;;  %s1104_s27 = sshll.u32 %s1818_s8, 1  ;;  %s1126_s13 = sshll.u32 %s1560_s21, 5 }
 0x1b1   : > { %v879_v7 = vmul.f32 %v842_v2, %v842_v2  ;;  %v880_v9 = vmul.f32 %v843_v28, %v843_v28  ;;  %v844_v10 = vsel %vm796_vm15, %v1195_v57, 0.0  ;;  %s317_s17 = scalar_lea.vmem [#allocation11], %s1104_s27  ;;  %vm903_vm0 = vcmask 1040384   ;;  %s2057_s10 = scalar_lea.hbm %s2111_s5, %s1126_s13 }
 0x1b2   : > { %v856_v3 = vadd.f32 %v855_v0, %v841_v62  ;;  %v892_v4 = vadd.f32 %v891_v1, %v877_v63  ;;  %v881_v15 = vmul.f32 %v844_v10, %v844_v10  ;;  %s943_s14 = sshll.u32 %s317_s17, 4  ;;  %s912_s7 = scalar_lea.sflag [#allocation12], %s1818_s8  ;;  %s2059_s14 = int_to_ptr.vmem [resolvable:$true] %s943_s14 }
 0x1b3   : > { %s1474_s26 = scalar_lea.vmem %s2059_s14, 32  ;;  %s1581_s21 = smov [#allocation11]  }
 0x1b4   : > { %v893_v5 = vadd.f32 %v892_v4, %v878_v27  ;;  %v857_v6 = vadd.f32 %v856_v3, %v842_v2  ;;  %p1475_p6 = scmp.ne.s32.totalorder %s2059_s14, %s1474_s26  ;;  %s1478_s28 = sshll.u32 %s1581_s21, 4  ;;  %s1479_s28 = int_to_ptr.vmem [resolvable:$false] %s1478_s28 }
 0x1b5   : > { %s1480_s30 = scalar_lea.vmem %s1479_s28, 64  ;;  %p1481_p5 = scmp.lt.s32.totalorder %s2059_s14, %s1479_s28 }
 0x1b6   : > { %v894_v11 = vadd.f32 %v893_v5, %v879_v7  ;;  %v858_v12 = vadd.f32 %v857_v6, %v843_v28  ;;  %p1476_p8 = pnand %p1475_p6, %p1760_p2  ;;  %p1482_p10 = scmp.lt.s32.totalorder %s1480_s30, %s1474_s26 }
 0x1b8   : > { %v895_v13 = vadd.f32 %v894_v11, %v880_v9  ;;  %v859_v14 = vadd.f32 %v858_v12, %v844_v10  ;;  %p1477_p0 = pneg %p1476_p8  ;;  %p1483_p13 = por %p1482_p10, %p1481_p5 }
 0x1ba   : > { %v860_v16 = vrot.slane %v859_v14, 4  ;;  %v896_v17 = vadd.f32 %v895_v13, %v881_v15  ;;  %p1484_p9 = pnand %p1483_p13, %p1477_p0 }
 0x1bc   : > { %v861_v19 = vadd.f32 %v860_v16, %v859_v14  ;;  %v897_v20 = vrot.slane %v896_v17, 4 }
 0x1be   : > { %v862_v21 = vrot.slane %v861_v19, 2  ;;  %v898_v22 = vadd.f32 %v897_v20, %v896_v17 }
 0x1c0   : > { %v863_v23 = vadd.f32 %v862_v21, %v861_v19  ;;  %v899_v24 = vrot.slane %v898_v22, 2 }
 0x1c2   : > { %v864_v29 = vrot.slane %v863_v23, 1  ;;  %v900_v31 = vadd.f32 %v899_v24, %v898_v22 }
 0x1c4   : > { %v901_v32 = vrot.slane %v900_v31, 1  ;;  %v865_v33 = vadd.f32 %v864_v29, %v863_v23 }
 0x1c6   : > { %v902_v34 = vadd.f32 %v901_v32, %v900_v31 }
 0x1c8   : > { %v904_v35 = vsel %vm903_vm0, %v865_v33, %v902_v34 }
 0x1c9   : > { %905 = vst [vmem:[%s317_s17] sm:$0x3] %v904_v35 }
 0x1ca   : > { %1487 = shalt.err (!%p1484_p9)
}
 0x1cb   : > { %s1488_s8 = scalar_lea.hbm %s2057_s10, 32  ;;  %s1492_s12 = scalar_lea.hbm %s2111_s5, 64 }
 0x1cc   : > { %p1489_p3 = scmp.ne.s32.totalorder %s2057_s10, %s1488_s8  ;;  %p1493_p12 = scmp.lt.u32.totalorder %s2057_s10, %s2111_s5 }
 0x1cd   : > { %p1494_p1 = scmp.lt.u32.totalorder %s1492_s12, %s1488_s8  ;;  %p1496_p6 = scmp.lt.u32.totalorder %s1488_s8, %s2057_s10 }
 0x1ce   : > { %p1490_p7 = pnand %p1489_p3, %p1760_p2 }
 0x1cf   : > { %p1495_p4 = por %p1494_p1, %p1493_p12 }
 0x1d0   : > { %p1491_p11 = pneg %p1490_p7 }
 0x1d1   : > { %p1497_p8 = por %p1496_p6, %p1495_p4 }
 0x1d3   : > { %p1498_p0 = pnand %p1497_p8, %p1491_p11 }
 0x1d5   : > { %1501 = shalt.err (!%p1498_p0)
}
 0x1d6   : > { %1227 = dma.vmem_to_hbm [thread:$0]  (%p1760_p2), %s2059_s14, 32, %s2057_s10, %s912_s7  }
 0x1d7 PF: > { %s955_s17 = sand.u32 1, %s1548_s18   ;;  %p2129_p5 = scmp.ne.s32.totalorder %s2119_s29, 0 }
 0x1d8   : > { %p2130_p10 = scmp.ge.s32.totalorder %s1568_s23, 2  ;;  %s956_s25 = scalar_lea.sflag [#allocation4], %s955_s17 }
 0x1da   : > { %p1245_p13 = pnand %p2130_p10, %p2129_p5 }
 0x1dc   : > { %1539 = dma.done.wait (!%p1245_p13), %s956_s25, 2048  }
 0x1dd   : > { %1541 = vsyncadd (!%p1245_p13), %s956_s25, 4294965248  ;;  %s965_s9 = scalar_lea.sflag [#allocation12], %s955_s17 }
 0x1de   : > { %1543 = dma.done.wait (!%p1245_p13), %s965_s9, 32  }
 0x1df   : > { %1545 = vsyncadd (!%p1245_p13), %s965_s9, 4294967264  ;;  %s27_s23 = sadd.s32 1, %s1568_s23   ;;  %s2131_s18 = smov %s1552_s19 }
 0x1e0   : > { %p24_p9 = scmp.ge.s32.totalorder %s27_s23, 4   ;;  %s2132_s19 = smov %s1556_s20 }
 0x1e1   : > { %s2133_s20 = smov %s1772_s6  ;;  %s2134_s21 = smov %s1564_s22 }
 0x1e2   : > { %s2135_s22 = smov %s2137_s15  ;;  %26 = sbr.rel (!%p24_p9) target bundleno = 10 (0xa), region = 111 }
 0x1e9   :  { %970 = vsyncpa [#allocation3], 1 }
 0x1ea   :  { %972 = vsyncpa [#allocation3 + $0x1], 1 }
 0x1eb   :  { %973 = vsyncpa [#allocation6], 1 }
 0x1ec   :  { %974 = vsyncpa [#allocation9], 1 }
 0x1ed   :  { %975 = vsyncpa [#allocation4], 1 }
 0x1ee   :  { %977 = vsyncpa [#allocation4 + $0x1], 1 }
 0x1ef   :  { %978 = vsyncpa [#allocation12], 1 }
 0x1f0   :  { %980 = vsyncpa [#allocation12 + $0x1], 1 }

</bundles_post_ra>
